<compile_context>
chip_gen: v7x
topology: tpu7x:2x2x1
jax: 0.10.0
libtpu: 0.0.40
codegen_flags: <defaults>
</compile_context>

<pallas_src>
from functools import partial

import jax
import jax.numpy as jnp
from jax.experimental import pallas as pl
from jax.experimental.pallas import tpu as pltpu


# ----------------------------------------------------------------------------
# Shared in-kernel helpers
# ----------------------------------------------------------------------------

_PAD_L = 8  # left pad (in sublanes) of the VMEM staging buffer: aligned stores

VGG_CFG = [("conv", 3, 64), ("relu",), ("conv", 64, 64), ("relu",)]


def _zero_halo(hpad_ref, H, W):
    """Zero only the halo of the padded staging buffer (review #5)."""
    Wp = hpad_ref.shape[1]
    c = hpad_ref.shape[2]
    dt = hpad_ref.dtype
    hpad_ref[0:1, :, :] = jnp.zeros((1, Wp, c), dt)                     # top row
    hpad_ref[H + 1:H + 2, :, :] = jnp.zeros((1, Wp, c), dt)             # bottom row
    hpad_ref[:, 0:_PAD_L, :] = jnp.zeros((H + 2, _PAD_L, c), dt)        # left pad band
    hpad_ref[:, _PAD_L + W:Wp, :] = jnp.zeros((H + 2, Wp - _PAD_L - W, c), dt)


def _features_from_taps(taps0, w0, b0, w1, b1, hpad_ref, *, emit, H, W):
    """VGG prefix (conv0 -> relu -> conv1 -> relu) for ONE image.

    taps0: (H*W, 9*cin) bf16 im2col of the 3-channel input (already loaded)
    w0:    (9*cin, c1) bf16      b0: (1, c1) f32
    w1:    (3, 3*c1, c2) bf16    b1: (1, c2) f32
    hpad_ref: (H+2, W+2*_PAD_L, c1) bf16 VMEM scratch (halo already zeroed)
    Returns {layer_index: (H*W, C) f32} for the requested `emit` indexes.
    """
    feats = {}
    c1 = w0.shape[-1]
    c2 = w1.shape[-1]

    # layer 0: conv3x3(cin -> c1), single deep-K matmul (K = 9*cin)
    z0 = jnp.dot(taps0, w0, preferred_element_type=jnp.float32) + b0
    if 0 in emit:
        feats[0] = z0

    # layer 1: ReLU (fused, f32)
    a1 = jnp.maximum(z0, 0.0)
    if 1 in emit:
        feats[1] = a1

    if max(emit) >= 2:
        # layer 2: conv3x3(c1 -> c2); intermediate never leaves VMEM.
        # bf16 staging (review #4); interior is fully overwritten each call.
        hpad_ref[1:H + 1, _PAD_L:_PAD_L + W, :] = (
            a1.reshape(H, W, c1).astype(hpad_ref.dtype))
        hp = hpad_ref[...]                                  # (H+2, W+2P, c1) bf16
        # Chunked K (review #3): three K=192 matmuls accumulated in f32
        # instead of one materialized (H*W, 576) concat.
        acc = jnp.zeros((H * W, c2), jnp.float32)
        for dy in range(3):
            taps_dy = jnp.concatenate(
                [hp[dy:dy + H, (_PAD_L - 1) + dx:(_PAD_L - 1) + dx + W, :]
                 for dx in range(3)],
                axis=-1,
            ).reshape(H * W, 3 * c1)                        # bf16 already
            acc = acc + jnp.dot(taps_dy, w1[dy], preferred_element_type=jnp.float32)
        z2 = acc + b1
        if 2 in emit:
            feats[2] = z2
        # layer 3: ReLU
        if 3 in emit:
            feats[3] = jnp.maximum(z2, 0.0)
    return feats


# ----------------------------------------------------------------------------
# Pallas kernels
# ----------------------------------------------------------------------------

def _vgg_pair_mse_kernel(taps_a_ref, taps_b_ref, w0_ref, b0_ref, w1_ref, b1_ref,
                         *rest, emit, height, width):
    """Fused VGG prefix + MSE partial for ONE (y, y_) pair (review #1).

    Emits, per requested layer, the sum of squared feature differences for this
    batch element into a (1,1,1) f32 output block. Features never touch HBM.
    """
    n_out = len(emit)
    out_refs = rest[:n_out]
    hpad_ref = rest[n_out]

    if max(emit) >= 2:
        _zero_halo(hpad_ref, height, width)   # halo only; interior overwritten below

    w0 = w0_ref[...]
    b0 = b0_ref[...]
    w1 = w1_ref[...]
    b1 = b1_ref[...]

    fa = _features_from_taps(taps_a_ref[0], w0, b0, w1, b1, hpad_ref,
                             emit=emit, H=height, W=width)
    fb = _features_from_taps(taps_b_ref[0], w0, b0, w1, b1, hpad_ref,
                             emit=emit, H=height, W=width)

    for k, idx in enumerate(emit):
        d = fa[idx] - fb[idx]
        out_refs[k][...] = (jnp.zeros(out_refs[k].shape, out_refs[k].dtype)
                            + jnp.sum(d * d))


def _vgg_feat_kernel(taps_ref, w0_ref, b0_ref, w1_ref, b1_ref, *rest,
                     emit, height, width):
    """Feature-emitting fallback (only used for non-MSE loss functions)."""
    n_out = len(emit)
    out_refs = rest[:n_out]
    hpad_ref = rest[n_out]

    if max(emit) >= 2:
        _zero_halo(hpad_ref, height, width)

    feats = _features_from_taps(taps_ref[0], w0_ref[...], b0_ref[...],
                                w1_ref[...], b1_ref[...], hpad_ref,
                                emit=emit, H=height, W=width)
    for k, idx in enumerate(emit):
        out_refs[k][0] = feats[idx]


def _ssd_partial_kernel(a_ref, b_ref, o_ref):
    """Per-tile sum of squared differences (partial); cross-tile sum in JAX."""
    d = a_ref[...] - b_ref[...]
    o_ref[...] = jnp.zeros(o_ref.shape, o_ref.dtype) + jnp.sum(d * d)


# ----------------------------------------------------------------------------
# Wrappers (plain-JAX glue: transpose / pad / reshape / pallas_call plumbing)
# ----------------------------------------------------------------------------

def _vmem_limit(per_step_bytes):
    # Explicit scoped-VMEM budget with 2x headroom (review #11), clamped to
    # stay under v7x's 64 MiB physical VMEM.
    return int(min(max(2 * per_step_bytes, 32 << 20), 64 << 20))


def _im2col3x3_bf16(x_nhwc):
    """Lane-dense (B, H*W, 9*C) bf16 im2col of a zero-padded 3x3 neighborhood."""
    b, h, w, c = x_nhwc.shape
    xp = jnp.pad(x_nhwc.astype(jnp.float32), ((0, 0), (1, 1), (1, 1), (0, 0)))
    taps = jnp.concatenate(
        [xp[:, dy:dy + h, dx:dx + w, :] for dy in range(3) for dx in range(3)],
        axis=-1,
    ).reshape(b, h * w, 9 * c)
    return taps.astype(jnp.bfloat16)          # bf16 in HBM: halves DMA (review #6)


def _pack_weights(w0, b0, w1, b1):
    cin, c1 = w0.shape[2], w0.shape[3]
    c2 = w1.shape[3]
    w0m = w0.reshape(9 * cin, c1).astype(jnp.bfloat16)
    w1m = w1.reshape(3, 3 * c1, c2).astype(jnp.bfloat16)   # per-dy K=192 chunks
    b0v = b0.reshape(1, c1).astype(jnp.float32)
    b1v = b1.reshape(1, c2).astype(jnp.float32)
    return w0m, b0v, w1m, b1v


def init_vgg_params(key):
    params = []
    for layer in VGG_CFG:
        if layer[0] == "conv":
            _, cin, cout = layer
            key, kw, kb = jax.random.split(key, 3)
            # weight layout: (kH, kW, Cin, Cout)  (PyTorch stores (Cout, Cin, kH, kW))
            w = jax.random.normal(kw, (3, 3, cin, cout), jnp.float32) * 0.05
            b = jax.random.normal(kb, (cout,), jnp.float32) * 0.05
            params.append((w, b))
        else:
            params.append(None)
    return params


def perceptual_mse_fused(y_nhwc, y2_nhwc, params, layer_indexes):
    """Fused VGG-prefix + MSE: returns {layer_index: scalar MSE}."""
    indexes = tuple(sorted({int(i) for i in layer_indexes}))
    assert indexes and indexes[-1] < len(VGG_CFG), \
        "only VGG19 layer indexes < 4 are supported"

    b, h, w, cin = y_nhwc.shape
    (w0, b0), (w1, b1) = params[0], params[2]
    c1, c2 = w0.shape[-1], w1.shape[-1]
    chan = {0: c1, 1: c1, 2: c2, 3: c2}

    taps_a = _im2col3x3_bf16(y_nhwc)
    taps_b = _im2col3x3_bf16(y2_nhwc)
    w0m, b0v, w1m, b1v = _pack_weights(w0, b0, w1, b1)

    per_step = (2 * 2 * h * w * 9 * cin * 2                 # double-buffered bf16 taps x2
                + (h + 2) * (w + 2 * _PAD_L) * c1 * 2       # bf16 staging scratch
                + 10 * h * w * max(c1, c2) * 4              # f32 temporaries (both images)
                + 2 * h * w * 3 * c1 * 2)                   # chunked bf16 conv1 taps

    partials = pl.pallas_call(
        partial(_vgg_pair_mse_kernel, emit=indexes, height=h, width=w),
        out_shape=tuple(jax.ShapeDtypeStruct((b, 1, 1), jnp.float32)
                        for _ in indexes),
        grid=(b,),
        in_specs=[
            pl.BlockSpec((1, h * w, 9 * cin), lambda bi: (bi, 0, 0)),
            pl.BlockSpec((1, h * w, 9 * cin), lambda bi: (bi, 0, 0)),
            pl.BlockSpec((9 * cin, c1), lambda bi: (0, 0)),
            pl.BlockSpec((1, c1), lambda bi: (0, 0)),
            pl.BlockSpec((3, 3 * c1, c2), lambda bi: (0, 0, 0)),
            pl.BlockSpec((1, c2), lambda bi: (0, 0)),
        ],
        out_specs=tuple(pl.BlockSpec((1, 1, 1), lambda bi: (bi, 0, 0))
                        for _ in indexes),
        scratch_shapes=[pltpu.VMEM((h + 2, w + 2 * _PAD_L, c1), jnp.bfloat16)],
        compiler_params=pltpu.CompilerParams(
            dimension_semantics=("parallel",),
            vmem_limit_bytes=_vmem_limit(per_step)),
    )(taps_a, taps_b, w0m, b0v, w1m, b1v)

    return {idx: jnp.sum(partials[k]) / float(b * h * w * chan[idx])
            for k, idx in enumerate(indexes)}


def vgg_prefix_features(x_nhwc, params, layer_indexes):
    """Fallback: one fused VGG-prefix pass emitting the requested features."""
    indexes = tuple(sorted({int(i) for i in layer_indexes}))
    assert indexes and indexes[-1] < len(VGG_CFG), \
        "only VGG19 layer indexes < 4 are supported"

    b, h, w, cin = x_nhwc.shape
    (w0, b0), (w1, b1) = params[0], params[2]
    c1, c2 = w0.shape[-1], w1.shape[-1]
    chan = {0: c1, 1: c1, 2: c2, 3: c2}

    taps = _im2col3x3_bf16(x_nhwc)
    w0m, b0v, w1m, b1v = _pack_weights(w0, b0, w1, b1)

    # TODO(synk): if this path were hot, pack two 64-channel layers into a
    # lane-dense 128-wide bf16 slab to avoid masked vst.msk stores (review #8);
    # it is only the non-MSE fallback so features stay f32 here.
    out_shape = tuple(jax.ShapeDtypeStruct((b, h * w, chan[i]), jnp.float32)
                      for i in indexes)
    out_specs = tuple(pl.BlockSpec((1, h * w, chan[i]), lambda bi: (bi, 0, 0))
                      for i in indexes)

    per_step = (2 * h * w * 9 * cin * 2
                + (h + 2) * (w + 2 * _PAD_L) * c1 * 2
                + sum(2 * h * w * chan[i] * 4 for i in indexes)
                + 6 * h * w * max(c1, c2) * 4)

    feats = pl.pallas_call(
        partial(_vgg_feat_kernel, emit=indexes, height=h, width=w),
        out_shape=out_shape,
        grid=(b,),
        in_specs=[
            pl.BlockSpec((1, h * w, 9 * cin), lambda bi: (bi, 0, 0)),
            pl.BlockSpec((9 * cin, c1), lambda bi: (0, 0)),
            pl.BlockSpec((1, c1), lambda bi: (0, 0)),
            pl.BlockSpec((3, 3 * c1, c2), lambda bi: (0, 0, 0)),
            pl.BlockSpec((1, c2), lambda bi: (0, 0)),
        ],
        out_specs=out_specs,
        scratch_shapes=[pltpu.VMEM((h + 2, w + 2 * _PAD_L, c1), jnp.bfloat16)],
        compiler_params=pltpu.CompilerParams(
            dimension_semantics=("parallel",),
            vmem_limit_bytes=_vmem_limit(per_step)),
    )(taps, w0m, b0v, w1m, b1v)

    return {idx: feats[k].reshape(b, h, w, chan[idx])
            for k, idx in enumerate(indexes)}


def _row_tile(rows, max_rows=1024):
    """Largest row tile <= max_rows that divides `rows` (multiple of 8)."""
    if rows <= max_rows:
        return rows
    if rows % 8:
        return rows   # TODO(synk): ragged row counts fall back to a single block
    for t in range(max_rows - max_rows % 8, 7, -8):
        if rows % t == 0:
            return t
    return rows


def mse_loss(a, b):
    """nn.MSELoss() equivalent: mean over all elements of (a - b)**2."""
    assert a.shape == b.shape
    total = a.size
    # Wide lane-dense view so each grid step moves >= ~2 MiB per input (review #9).
    if total % 512 == 0:
        lane = 512
    elif total % 128 == 0:
        lane = 128
    else:
        lane = a.shape[-1]
    a2 = a.astype(jnp.float32).reshape(-1, lane)
    b2 = b.astype(jnp.float32).reshape(-1, lane)
    rows = a2.shape[0]
    tile = _row_tile(rows)
    grid = rows // tile

    # Per-tile partials on a 'parallel' grid (uses both TCs on v7x, review #10);
    # the tiny cross-tile sum + mean happens in plain JAX.
    parts = pl.pallas_call(
        _ssd_partial_kernel,
        out_shape=jax.ShapeDtypeStruct((grid, 1, 1), jnp.float32),
        grid=(grid,),
        in_specs=[pl.BlockSpec((tile, lane), lambda i: (i, 0)),
                  pl.BlockSpec((tile, lane), lambda i: (i, 0))],
        out_specs=pl.BlockSpec((1, 1, 1), lambda i: (i, 0, 0)),
        compiler_params=pltpu.CompilerParams(dimension_semantics=("parallel",)),
    )(a2, b2)
    return jnp.sum(parts) / float(total)


class PerceptualLoss:
    """Mirror of the PyTorch PerceptualLoss forward pass."""

    def __init__(self, loss_func, layer_indexes=None, params=None):
        self.creation = loss_func
        self.layer_indexes = layer_indexes
        self.params = params

    def __call__(self, y, y_):
        # y, y_ are NCHW (PyTorch convention); transpose to kernel layout NHWC.
        y = jnp.transpose(y, (0, 2, 3, 1)).astype(jnp.float32)
        y_ = jnp.transpose(y_, (0, 2, 3, 1)).astype(jnp.float32)

        if self.creation is mse_loss:
            # Fully fused path: features never round-trip HBM (review #1).
            per_layer = perceptual_mse_fused(y, y_, self.params, self.layer_indexes)
            loss = 0.0
            for index in self.layer_indexes:
                loss = loss + per_layer[int(index)]
            return loss

        # Generic loss_func fallback: compute features once (all layers cached),
        # present them NCHW like PyTorch, then apply the user's loss.
        n = y.shape[0]
        x = jnp.concatenate([y, y_], axis=0)
        feats = vgg_prefix_features(x, self.params, self.layer_indexes)
        loss = 0.0
        for index in self.layer_indexes:
            f = jnp.transpose(feats[int(index)], (0, 3, 1, 2))   # NHWC -> NCHW
            loss = loss + self.creation(f[:n], f[n:])
        return loss


# ----------------------------------------------------------------------------
# Demo
# ----------------------------------------------------------------------------

if __name__ == "__main__":
    key = jax.random.PRNGKey(0)
    kp, ky, ky2 = jax.random.split(key, 3)

    params = init_vgg_params(kp)

    # NCHW inputs, as the PyTorch module expects (batch=2, RGB, 16x16).
    y = jax.random.normal(ky, (2, 3, 16, 16), jnp.float32)
    y_ = jax.random.normal(ky2, (2, 3, 16, 16), jnp.float32)

    # Main fused path (MSE reduction inside the VGG kernel).
    perceptual = PerceptualLoss(mse_loss, layer_indexes=[1, 3], params=params)
    loss = perceptual(y, y_)
    jax.block_until_ready(loss)

    # Cross-check against the unfused fallback path (generic loss_func route).
    perceptual_ref = PerceptualLoss(lambda a, b: mse_loss(a, b),
                                    layer_indexes=[1, 3], params=params)
    loss_ref = perceptual_ref(y, y_)
    jax.block_until_ready(loss_ref)
    assert abs(float(loss) - float(loss_ref)) <= 1e-3 * max(1.0, abs(float(loss_ref))), \
        (float(loss), float(loss_ref))

    print("KERNEL_OK")
</pallas_src>

<mosaic_0001>
module attributes {stable_mosaic.version = 11 : i64} {
  func.func @_vgg_pair_mse_kernel(%arg0: i32, %arg1: memref<1x256x27xbf16, #tpu.memory_space<vmem>>, %arg2: memref<1x256x27xbf16, #tpu.memory_space<vmem>>, %arg3: memref<27x64xbf16, #tpu.memory_space<vmem>>, %arg4: memref<1x64xf32, #tpu.memory_space<vmem>>, %arg5: memref<3x192x64xbf16, #tpu.memory_space<vmem>>, %arg6: memref<1x64xf32, #tpu.memory_space<vmem>>, %arg7: memref<1x1x1xf32, #tpu.memory_space<vmem>>, %arg8: memref<1x1x1xf32, #tpu.memory_space<vmem>>, %arg9: memref<18x32x64xbf16, #tpu.memory_space<vmem>>) attributes {dimension_semantics = [#tpu.dimension_semantics<parallel>], iteration_bounds = array<i64: 2>, scalar_prefetch = 0 : i64, scratch_operands = 1 : i64, tpu.core_type = #tpu.core_type<tc>, window_params = [{transform_indices = @transform_0, window_bounds = array<i64: 1, 256, 27>}, {transform_indices = @transform_1, window_bounds = array<i64: 1, 256, 27>}, {pipeline_mode = #tpu.pipeline_mode<synchronous>, transform_indices = @transform_2, window_bounds = array<i64: 27, 64>}, {pipeline_mode = #tpu.pipeline_mode<synchronous>, transform_indices = @transform_3, window_bounds = array<i64: 1, 64>}, {pipeline_mode = #tpu.pipeline_mode<synchronous>, transform_indices = @transform_4, window_bounds = array<i64: 3, 192, 64>}, {pipeline_mode = #tpu.pipeline_mode<synchronous>, transform_indices = @transform_5, window_bounds = array<i64: 1, 64>}, {transform_indices = @transform_6, window_bounds = array<i64: 1, 1, 1>}, {transform_indices = @transform_7, window_bounds = array<i64: 1, 1, 1>}]} {
    %cst = arith.constant 0.000000e+00 : bf16
    %0 = vector.broadcast %cst : bf16 to vector<1x32x64xbf16>
    %c0 = arith.constant 0 : index
    %c0_0 = arith.constant 0 : index
    %c0_1 = arith.constant 0 : index
    %1 = vector.load %arg9[%c0, %c0_0, %c0_1] : memref<18x32x64xbf16, #tpu.memory_space<vmem>>, vector<1x32x64xbf16>
    tpu.vector_store %arg9[%c0, %c0_0, %c0_1], %0 {strides = array<i32>} : memref<18x32x64xbf16, #tpu.memory_space<vmem>>, vector<1x32x64xbf16>,
    %cst_2 = arith.constant 0.000000e+00 : bf16
    %2 = vector.broadcast %cst_2 : bf16 to vector<1x32x64xbf16>
    %c17 = arith.constant 17 : index
    %c0_3 = arith.constant 0 : index
    %c0_4 = arith.constant 0 : index
    %3 = vector.load %arg9[%c17, %c0_3, %c0_4] : memref<18x32x64xbf16, #tpu.memory_space<vmem>>, vector<1x32x64xbf16>
    tpu.vector_store %arg9[%c17, %c0_3, %c0_4], %2 {strides = array<i32>} : memref<18x32x64xbf16, #tpu.memory_space<vmem>>, vector<1x32x64xbf16>,
    %cst_5 = arith.constant 0.000000e+00 : bf16
    %4 = vector.broadcast %cst_5 : bf16 to vector<18x8x64xbf16>
    %c0_6 = arith.constant 0 : index
    %c0_7 = arith.constant 0 : index
    %c0_8 = arith.constant 0 : index
    %5 = vector.load %arg9[%c0_6, %c0_7, %c0_8] : memref<18x32x64xbf16, #tpu.memory_space<vmem>>, vector<18x8x64xbf16>
    tpu.vector_store %arg9[%c0_6, %c0_7, %c0_8], %4 {strides = array<i32>} : memref<18x32x64xbf16, #tpu.memory_space<vmem>>, vector<18x8x64xbf16>,
    %cst_9 = arith.constant 0.000000e+00 : bf16
    %6 = vector.broadcast %cst_9 : bf16 to vector<18x8x64xbf16>
    %c0_10 = arith.constant 0 : index
    %c24 = arith.constant 24 : index
    %c0_11 = arith.constant 0 : index
    %7 = vector.load %arg9[%c0_10, %c24, %c0_11] : memref<18x32x64xbf16, #tpu.memory_space<vmem>>, vector<18x8x64xbf16>
    tpu.vector_store %arg9[%c0_10, %c24, %c0_11], %6 {strides = array<i32>} : memref<18x32x64xbf16, #tpu.memory_space<vmem>>, vector<18x8x64xbf16>,
    %c0_12 = arith.constant 0 : index
    %c0_13 = arith.constant 0 : index
    %8 = vector.load %arg3[%c0_12, %c0_13] : memref<27x64xbf16, #tpu.memory_space<vmem>>, vector<27x64xbf16>
    %c0_14 = arith.constant 0 : index
    %c0_15 = arith.constant 0 : index
    %9 = vector.load %arg4[%c0_14, %c0_15] : memref<1x64xf32, #tpu.memory_space<vmem>>, vector<1x64xf32>
    %c0_16 = arith.constant 0 : index
    %c0_17 = arith.constant 0 : index
    %c0_18 = arith.constant 0 : index
    %10 = vector.load %arg5[%c0_16, %c0_17, %c0_18] : memref<3x192x64xbf16, #tpu.memory_space<vmem>>, vector<3x192x64xbf16>
    %c0_19 = arith.constant 0 : index
    %c0_20 = arith.constant 0 : index
    %11 = vector.load %arg6[%c0_19, %c0_20] : memref<1x64xf32, #tpu.memory_space<vmem>>, vector<1x64xf32>
    %c0_21 = arith.constant 0 : index
    %c0_22 = arith.constant 0 : index
    %c0_23 = arith.constant 0 : index
    %12 = vector.load %arg1[%c0_21, %c0_22, %c0_23] : memref<1x256x27xbf16, #tpu.memory_space<vmem>>, vector<1x256x27xbf16>
    %13 = vector.shape_cast %12 : vector<1x256x27xbf16> to vector<256x27xbf16>
    %cst_24 = arith.constant dense<0.000000e+00> : vector<256x64xf32>
    %14 = tpu.matmul %13, %8, %cst_24 {dimension_numbers = #tpu.dot_dimension_numbers<[1], [0], [0], [1], [0, 0, 1, 1], [], []>} : vector<256x27xbf16>, vector<27x64xbf16>, vector<256x64xf32> -> vector<256x64xf32>
    %15 = vector.broadcast %9 : vector<1x64xf32> to vector<256x64xf32>
    %16 = arith.addf %14, %15 : vector<256x64xf32>
    %cst_25 = arith.constant 0.000000e+00 : f32
    %17 = vector.broadcast %cst_25 : f32 to vector<256x64xf32>
    %18 = arith.maximumf %16, %17 : vector<256x64xf32>
    %19 = vector.shape_cast %18 : vector<256x64xf32> to vector<16x16x64xf32>
    %20 = arith.truncf %19 : vector<16x16x64xf32> to vector<16x16x64xbf16>
    %c1 = arith.constant 1 : index
    %c8 = arith.constant 8 : index
    %c0_26 = arith.constant 0 : index
    %21 = vector.load %arg9[%c1, %c8, %c0_26] : memref<18x32x64xbf16, #tpu.memory_space<vmem>>, vector<16x16x64xbf16>
    tpu.vector_store %arg9[%c1, %c8, %c0_26], %20 {strides = array<i32>} : memref<18x32x64xbf16, #tpu.memory_space<vmem>>, vector<16x16x64xbf16>,
    %c0_27 = arith.constant 0 : index
    %c0_28 = arith.constant 0 : index
    %c0_29 = arith.constant 0 : index
    %22 = vector.load %arg9[%c0_27, %c0_28, %c0_29] : memref<18x32x64xbf16, #tpu.memory_space<vmem>>, vector<18x32x64xbf16>
    %cst_30 = arith.constant 0.000000e+00 : f32
    %23 = vector.broadcast %cst_30 : f32 to vector<256x64xf32>
    %24 = vector.extract_strided_slice %22 {offsets = [0, 7, 0], sizes = [16, 16, 64], strides = [1, 1, 1]} : vector<18x32x64xbf16> to vector<16x16x64xbf16>
    %25 = vector.extract_strided_slice %22 {offsets = [0, 8, 0], sizes = [16, 16, 64], strides = [1, 1, 1]} : vector<18x32x64xbf16> to vector<16x16x64xbf16>
    %26 = vector.extract_strided_slice %22 {offsets = [0, 9, 0], sizes = [16, 16, 64], strides = [1, 1, 1]} : vector<18x32x64xbf16> to vector<16x16x64xbf16>
    %27 = tpu.concatenate %24, %25, %26 in 2 : vector<16x16x64xbf16>, vector<16x16x64xbf16>, vector<16x16x64xbf16> -> vector<16x16x192xbf16>
    %28 = vector.shape_cast %27 : vector<16x16x192xbf16> to vector<256x192xbf16>
    %29 = vector.extract_strided_slice %10 {offsets = [0, 0, 0], sizes = [1, 192, 64], strides = [1, 1, 1]} : vector<3x192x64xbf16> to vector<1x192x64xbf16>
    %30 = vector.shape_cast %29 : vector<1x192x64xbf16> to vector<192x64xbf16>
    %cst_31 = arith.constant dense<0.000000e+00> : vector<256x64xf32>
    %31 = tpu.matmul %28, %30, %cst_31 {dimension_numbers = #tpu.dot_dimension_numbers<[1], [0], [0], [1], [0, 0, 1, 1], [], []>} : vector<256x192xbf16>, vector<192x64xbf16>, vector<256x64xf32> -> vector<256x64xf32>
    %32 = arith.addf %23, %31 : vector<256x64xf32>
    %33 = vector.extract_strided_slice %22 {offsets = [1, 7, 0], sizes = [16, 16, 64], strides = [1, 1, 1]} : vector<18x32x64xbf16> to vector<16x16x64xbf16>
    %34 = vector.extract_strided_slice %22 {offsets = [1, 8, 0], sizes = [16, 16, 64], strides = [1, 1, 1]} : vector<18x32x64xbf16> to vector<16x16x64xbf16>
    %35 = vector.extract_strided_slice %22 {offsets = [1, 9, 0], sizes = [16, 16, 64], strides = [1, 1, 1]} : vector<18x32x64xbf16> to vector<16x16x64xbf16>
    %36 = tpu.concatenate %33, %34, %35 in 2 : vector<16x16x64xbf16>, vector<16x16x64xbf16>, vector<16x16x64xbf16> -> vector<16x16x192xbf16>
    %37 = vector.shape_cast %36 : vector<16x16x192xbf16> to vector<256x192xbf16>
    %38 = vector.extract_strided_slice %10 {offsets = [1, 0, 0], sizes = [1, 192, 64], strides = [1, 1, 1]} : vector<3x192x64xbf16> to vector<1x192x64xbf16>
    %39 = vector.shape_cast %38 : vector<1x192x64xbf16> to vector<192x64xbf16>
    %cst_32 = arith.constant dense<0.000000e+00> : vector<256x64xf32>
    %40 = tpu.matmul %37, %39, %cst_32 {dimension_numbers = #tpu.dot_dimension_numbers<[1], [0], [0], [1], [0, 0, 1, 1], [], []>} : vector<256x192xbf16>, vector<192x64xbf16>, vector<256x64xf32> -> vector<256x64xf32>
    %41 = arith.addf %32, %40 : vector<256x64xf32>
    %42 = vector.extract_strided_slice %22 {offsets = [2, 7, 0], sizes = [16, 16, 64], strides = [1, 1, 1]} : vector<18x32x64xbf16> to vector<16x16x64xbf16>
    %43 = vector.extract_strided_slice %22 {offsets = [2, 8, 0], sizes = [16, 16, 64], strides = [1, 1, 1]} : vector<18x32x64xbf16> to vector<16x16x64xbf16>
    %44 = vector.extract_strided_slice %22 {offsets = [2, 9, 0], sizes = [16, 16, 64], strides = [1, 1, 1]} : vector<18x32x64xbf16> to vector<16x16x64xbf16>
    %45 = tpu.concatenate %42, %43, %44 in 2 : vector<16x16x64xbf16>, vector<16x16x64xbf16>, vector<16x16x64xbf16> -> vector<16x16x192xbf16>
    %46 = vector.shape_cast %45 : vector<16x16x192xbf16> to vector<256x192xbf16>
    %47 = vector.extract_strided_slice %10 {offsets = [2, 0, 0], sizes = [1, 192, 64], strides = [1, 1, 1]} : vector<3x192x64xbf16> to vector<1x192x64xbf16>
    %48 = vector.shape_cast %47 : vector<1x192x64xbf16> to vector<192x64xbf16>
    %cst_33 = arith.constant dense<0.000000e+00> : vector<256x64xf32>
    %49 = tpu.matmul %46, %48, %cst_33 {dimension_numbers = #tpu.dot_dimension_numbers<[1], [0], [0], [1], [0, 0, 1, 1], [], []>} : vector<256x192xbf16>, vector<192x64xbf16>, vector<256x64xf32> -> vector<256x64xf32>
    %50 = arith.addf %41, %49 : vector<256x64xf32>
    %51 = vector.broadcast %11 : vector<1x64xf32> to vector<256x64xf32>
    %52 = arith.addf %50, %51 : vector<256x64xf32>
    %cst_34 = arith.constant 0.000000e+00 : f32
    %53 = vector.broadcast %cst_34 : f32 to vector<256x64xf32>
    %54 = arith.maximumf %52, %53 : vector<256x64xf32>
    %c0_35 = arith.constant 0 : index
    %c0_36 = arith.constant 0 : index
    %c0_37 = arith.constant 0 : index
    %55 = vector.load %arg2[%c0_35, %c0_36, %c0_37] : memref<1x256x27xbf16, #tpu.memory_space<vmem>>, vector<1x256x27xbf16>
    %56 = vector.shape_cast %55 : vector<1x256x27xbf16> to vector<256x27xbf16>
    %cst_38 = arith.constant dense<0.000000e+00> : vector<256x64xf32>
    %57 = tpu.matmul %56, %8, %cst_38 {dimension_numbers = #tpu.dot_dimension_numbers<[1], [0], [0], [1], [0, 0, 1, 1], [], []>} : vector<256x27xbf16>, vector<27x64xbf16>, vector<256x64xf32> -> vector<256x64xf32>
    %58 = vector.broadcast %9 : vector<1x64xf32> to vector<256x64xf32>
    %59 = arith.addf %57, %58 : vector<256x64xf32>
    %cst_39 = arith.constant 0.000000e+00 : f32
    %60 = vector.broadcast %cst_39 : f32 to vector<256x64xf32>
    %61 = arith.maximumf %59, %60 : vector<256x64xf32>
    %62 = vector.shape_cast %61 : vector<256x64xf32> to vector<16x16x64xf32>
    %63 = arith.truncf %62 : vector<16x16x64xf32> to vector<16x16x64xbf16>
    %c1_40 = arith.constant 1 : index
    %c8_41 = arith.constant 8 : index
    %c0_42 = arith.constant 0 : index
    %64 = vector.load %arg9[%c1_40, %c8_41, %c0_42] : memref<18x32x64xbf16, #tpu.memory_space<vmem>>, vector<16x16x64xbf16>
    tpu.vector_store %arg9[%c1_40, %c8_41, %c0_42], %63 {strides = array<i32>} : memref<18x32x64xbf16, #tpu.memory_space<vmem>>, vector<16x16x64xbf16>,
    %c0_43 = arith.constant 0 : index
    %c0_44 = arith.constant 0 : index
    %c0_45 = arith.constant 0 : index
    %65 = vector.load %arg9[%c0_43, %c0_44, %c0_45] : memref<18x32x64xbf16, #tpu.memory_space<vmem>>, vector<18x32x64xbf16>
    %cst_46 = arith.constant 0.000000e+00 : f32
    %66 = vector.broadcast %cst_46 : f32 to vector<256x64xf32>
    %67 = vector.extract_strided_slice %65 {offsets = [0, 7, 0], sizes = [16, 16, 64], strides = [1, 1, 1]} : vector<18x32x64xbf16> to vector<16x16x64xbf16>
    %68 = vector.extract_strided_slice %65 {offsets = [0, 8, 0], sizes = [16, 16, 64], strides = [1, 1, 1]} : vector<18x32x64xbf16> to vector<16x16x64xbf16>
    %69 = vector.extract_strided_slice %65 {offsets = [0, 9, 0], sizes = [16, 16, 64], strides = [1, 1, 1]} : vector<18x32x64xbf16> to vector<16x16x64xbf16>
    %70 = tpu.concatenate %67, %68, %69 in 2 : vector<16x16x64xbf16>, vector<16x16x64xbf16>, vector<16x16x64xbf16> -> vector<16x16x192xbf16>
    %71 = vector.shape_cast %70 : vector<16x16x192xbf16> to vector<256x192xbf16>
    %72 = vector.extract_strided_slice %10 {offsets = [0, 0, 0], sizes = [1, 192, 64], strides = [1, 1, 1]} : vector<3x192x64xbf16> to vector<1x192x64xbf16>
    %73 = vector.shape_cast %72 : vector<1x192x64xbf16> to vector<192x64xbf16>
    %cst_47 = arith.constant dense<0.000000e+00> : vector<256x64xf32>
    %74 = tpu.matmul %71, %73, %cst_47 {dimension_numbers = #tpu.dot_dimension_numbers<[1], [0], [0], [1], [0, 0, 1, 1], [], []>} : vector<256x192xbf16>, vector<192x64xbf16>, vector<256x64xf32> -> vector<256x64xf32>
    %75 = arith.addf %66, %74 : vector<256x64xf32>
    %76 = vector.extract_strided_slice %65 {offsets = [1, 7, 0], sizes = [16, 16, 64], strides = [1, 1, 1]} : vector<18x32x64xbf16> to vector<16x16x64xbf16>
    %77 = vector.extract_strided_slice %65 {offsets = [1, 8, 0], sizes = [16, 16, 64], strides = [1, 1, 1]} : vector<18x32x64xbf16> to vector<16x16x64xbf16>
    %78 = vector.extract_strided_slice %65 {offsets = [1, 9, 0], sizes = [16, 16, 64], strides = [1, 1, 1]} : vector<18x32x64xbf16> to vector<16x16x64xbf16>
    %79 = tpu.concatenate %76, %77, %78 in 2 : vector<16x16x64xbf16>, vector<16x16x64xbf16>, vector<16x16x64xbf16> -> vector<16x16x192xbf16>
    %80 = vector.shape_cast %79 : vector<16x16x192xbf16> to vector<256x192xbf16>
    %81 = vector.extract_strided_slice %10 {offsets = [1, 0, 0], sizes = [1, 192, 64], strides = [1, 1, 1]} : vector<3x192x64xbf16> to vector<1x192x64xbf16>
    %82 = vector.shape_cast %81 : vector<1x192x64xbf16> to vector<192x64xbf16>
    %cst_48 = arith.constant dense<0.000000e+00> : vector<256x64xf32>
    %83 = tpu.matmul %80, %82, %cst_48 {dimension_numbers = #tpu.dot_dimension_numbers<[1], [0], [0], [1], [0, 0, 1, 1], [], []>} : vector<256x192xbf16>, vector<192x64xbf16>, vector<256x64xf32> -> vector<256x64xf32>
    %84 = arith.addf %75, %83 : vector<256x64xf32>
    %85 = vector.extract_strided_slice %65 {offsets = [2, 7, 0], sizes = [16, 16, 64], strides = [1, 1, 1]} : vector<18x32x64xbf16> to vector<16x16x64xbf16>
    %86 = vector.extract_strided_slice %65 {offsets = [2, 8, 0], sizes = [16, 16, 64], strides = [1, 1, 1]} : vector<18x32x64xbf16> to vector<16x16x64xbf16>
    %87 = vector.extract_strided_slice %65 {offsets = [2, 9, 0], sizes = [16, 16, 64], strides = [1, 1, 1]} : vector<18x32x64xbf16> to vector<16x16x64xbf16>
    %88 = tpu.concatenate %85, %86, %87 in 2 : vector<16x16x64xbf16>, vector<16x16x64xbf16>, vector<16x16x64xbf16> -> vector<16x16x192xbf16>
    %89 = vector.shape_cast %88 : vector<16x16x192xbf16> to vector<256x192xbf16>
    %90 = vector.extract_strided_slice %10 {offsets = [2, 0, 0], sizes = [1, 192, 64], strides = [1, 1, 1]} : vector<3x192x64xbf16> to vector<1x192x64xbf16>
    %91 = vector.shape_cast %90 : vector<1x192x64xbf16> to vector<192x64xbf16>
    %cst_49 = arith.constant dense<0.000000e+00> : vector<256x64xf32>
    %92 = tpu.matmul %89, %91, %cst_49 {dimension_numbers = #tpu.dot_dimension_numbers<[1], [0], [0], [1], [0, 0, 1, 1], [], []>} : vector<256x192xbf16>, vector<192x64xbf16>, vector<256x64xf32> -> vector<256x64xf32>
    %93 = arith.addf %84, %92 : vector<256x64xf32>
    %94 = vector.broadcast %11 : vector<1x64xf32> to vector<256x64xf32>
    %95 = arith.addf %93, %94 : vector<256x64xf32>
    %cst_50 = arith.constant 0.000000e+00 : f32
    %96 = vector.broadcast %cst_50 : f32 to vector<256x64xf32>
    %97 = arith.maximumf %95, %96 : vector<256x64xf32>
    %98 = arith.subf %18, %61 : vector<256x64xf32>
    %cst_51 = arith.constant 0.000000e+00 : f32
    %99 = vector.broadcast %cst_51 : f32 to vector<1x1x1xf32>
    %100 = arith.mulf %98, %98 : vector<256x64xf32>
    %101 = vector.shape_cast %100 : vector<256x64xf32> to vector<1x256x64xf32>
    %cst_52 = arith.constant dense<0.000000e+00> : vector<1xf32>
    %102 = vector.multi_reduction <add>, %101, %cst_52 [1, 2] : vector<1x256x64xf32> to vector<1xf32>
    %103 = vector.shape_cast %102 : vector<1xf32> to vector<1x1x1xf32>
    %104 = vector.extract %103[0, 0, 0] : f32 from vector<1x1x1xf32>
    %105 = vector.broadcast %104 : f32 to vector<1x1x1xf32>
    %106 = arith.addf %99, %105 : vector<1x1x1xf32>
    %c0_53 = arith.constant 0 : index
    %c0_54 = arith.constant 0 : index
    %c0_55 = arith.constant 0 : index
    %107 = vector.load %arg7[%c0_53, %c0_54, %c0_55] : memref<1x1x1xf32, #tpu.memory_space<vmem>>, vector<1x1x1xf32>
    tpu.vector_store %arg7[%c0_53, %c0_54, %c0_55], %106 {strides = array<i32>} : memref<1x1x1xf32, #tpu.memory_space<vmem>>, vector<1x1x1xf32>,
    %108 = arith.subf %54, %97 : vector<256x64xf32>
    %cst_56 = arith.constant 0.000000e+00 : f32
    %109 = vector.broadcast %cst_56 : f32 to vector<1x1x1xf32>
    %110 = arith.mulf %108, %108 : vector<256x64xf32>
    %111 = vector.shape_cast %110 : vector<256x64xf32> to vector<1x256x64xf32>
    %cst_57 = arith.constant dense<0.000000e+00> : vector<1xf32>
    %112 = vector.multi_reduction <add>, %111, %cst_57 [1, 2] : vector<1x256x64xf32> to vector<1xf32>
    %113 = vector.shape_cast %112 : vector<1xf32> to vector<1x1x1xf32>
    %114 = vector.extract %113[0, 0, 0] : f32 from vector<1x1x1xf32>
    %115 = vector.broadcast %114 : f32 to vector<1x1x1xf32>
    %116 = arith.addf %109, %115 : vector<1x1x1xf32>
    %c0_58 = arith.constant 0 : index
    %c0_59 = arith.constant 0 : index
    %c0_60 = arith.constant 0 : index
    %117 = vector.load %arg8[%c0_58, %c0_59, %c0_60] : memref<1x1x1xf32, #tpu.memory_space<vmem>>, vector<1x1x1xf32>
    tpu.vector_store %arg8[%c0_58, %c0_59, %c0_60], %116 {strides = array<i32>} : memref<1x1x1xf32, #tpu.memory_space<vmem>>, vector<1x1x1xf32>,
    return
  }
  func.func @transform_0(%arg0: i32) -> (i32, i32, i32) {
    %c0_i32 = arith.constant 0 : i32
    %c0_i32_0 = arith.constant 0 : i32
    %c0_i32_1 = arith.constant 0 : i32
    return %arg0, %c0_i32, %c0_i32_0 : i32, i32, i32
  }
  func.func @transform_1(%arg0: i32) -> (i32, i32, i32) {
    %c0_i32 = arith.constant 0 : i32
    %c0_i32_0 = arith.constant 0 : i32
    %c0_i32_1 = arith.constant 0 : i32
    return %arg0, %c0_i32, %c0_i32_0 : i32, i32, i32
  }
  func.func @transform_2(%arg0: i32) -> (i32, i32) {
    %c0_i32 = arith.constant 0 : i32
    %c0_i32_0 = arith.constant 0 : i32
    %c0_i32_1 = arith.constant 0 : i32
    return %c0_i32, %c0_i32_0 : i32, i32
  }
  func.func @transform_3(%arg0: i32) -> (i32, i32) {
    %c0_i32 = arith.constant 0 : i32
    %c0_i32_0 = arith.constant 0 : i32
    %c0_i32_1 = arith.constant 0 : i32
    return %c0_i32, %c0_i32_0 : i32, i32
  }
  func.func @transform_4(%arg0: i32) -> (i32, i32, i32) {
    %c0_i32 = arith.constant 0 : i32
    %c0_i32_0 = arith.constant 0 : i32
    %c0_i32_1 = arith.constant 0 : i32
    %c0_i32_2 = arith.constant 0 : i32
    return %c0_i32, %c0_i32_0, %c0_i32_1 : i32, i32, i32
  }
  func.func @transform_5(%arg0: i32) -> (i32, i32) {
    %c0_i32 = arith.constant 0 : i32
    %c0_i32_0 = arith.constant 0 : i32
    %c0_i32_1 = arith.constant 0 : i32
    return %c0_i32, %c0_i32_0 : i32, i32
  }
  func.func @transform_6(%arg0: i32) -> (i32, i32, i32) {
    %c0_i32 = arith.constant 0 : i32
    %c0_i32_0 = arith.constant 0 : i32
    %c0_i32_1 = arith.constant 0 : i32
    return %arg0, %c0_i32, %c0_i32_0 : i32, i32, i32
  }
  func.func @transform_7(%arg0: i32) -> (i32, i32, i32) {
    %c0_i32 = arith.constant 0 : i32
    %c0_i32_0 = arith.constant 0 : i32
    %c0_i32_1 = arith.constant 0 : i32
    return %arg0, %c0_i32, %c0_i32_0 : i32, i32, i32
  }
}

</mosaic_0001>

<bundles_post_ra>
// kernel: tpu_custom_call.1
= control target key start
LH: loop header
LB: loop body
LE: loop exit
PB: predicated region body
PF: predicated region fallthrough
CT: control target
= control target key end

     0   :  { %s6020_s24 = smov 0   ;;  %s8793_s0 = inlined_call_operand.vmem [shape: bf16[2,256,27], index: 0, kind: input, shape index: {}]   ;;  %s8794_s1 = inlined_call_operand.vmem [shape: bf16[2,256,27], index: 1, kind: input, shape index: {}]   ;;  %s8795_s2 = inlined_call_operand.vmem [shape: bf16[27,64], index: 2, kind: input, shape index: {}]   ;;  %s8796_s3 = inlined_call_operand.vmem [shape: f32[1,64], index: 3, kind: input, shape index: {}]   ;;  %s8797_s4 = inlined_call_operand.vmem [shape: bf16[3,192,64], index: 4, kind: input, shape index: {}]   ;;  %s8798_s5 = inlined_call_operand.vmem [shape: f32[1,64], index: 5, kind: input, shape index: {}]   ;;  %s8799_s6 = inlined_call_operand.vmem [shape: f32[2,1,1], index: 6, kind: output, shape index: {0}]   ;;  %s8800_s7 = inlined_call_operand.vmem [shape: f32[2,1,1], index: 7, kind: output, shape index: {1}]  }
   0x1 LB: > { %s5473_s25 = sadd.s32 4294967295, %s5975_s24   ;;  %p5477_p0 = scmp.ge.s32.totalorder %s5975_s24, 1  ;;  %s5975_s24 = sphi %s6020_s24, %s18_s24  }
   0x2   : > { %p250_p1 = scmp.lt.s32.totalorder %s5975_s24, 3 }
   0x4   : > { %p251_p2 = pnand %p5477_p0, %p250_p1 }
   0x6   : > { %254 = sbr.rel (%p251_p2) target bundleno = 1553 (0x611), region = 44 }
   0xd   : > { %v6031_v0 = vld [vmem:[%s8795_s2] sm:$0xff]   ;;  %vm605_vm0 = vcmask 1044480   ;;  %v5834_v1 = vld [vmem:[%s8795_s2 + $0x8] sm:$0x3f]   ;;  %vm606_vm1 = vcmask 1045504   ;;  %p288_p3 = scmp.lt.s32.totalorder %s5473_s25, 1 }
   0xe   : > { %5722 = vmatprep.subr.bf16.mxu0 %v6031_v0  ;;  %vm305_vm2 = vcmask 523264   ;;  %v5977_v2 = vmov 65535   ;;  %vm311_vm3 = vcmask 519168   ;;  %vm330_vm4 = vcmask 523268   ;;  %v5851_v7 = vld [vmem:[%s8797_s4] sm:$0xff]   ;;  %v5852_v11 = vld [vmem:[%s8797_s4 + $0x8] sm:$0xff]  }
   0xf   : > { %5723 = vmatpush3.bf16.msra.mxu0 %v6031_v0  ;;  %v607_v3 = vsel %vm605_vm0, 4294967295, %v5977_v2  ;;  %s9110_s25 = smov (!%p288_p3, %s5473_s25), 1  ;;  %v8823_v5 = vmov 0   ;;  %vm556_vm5 = vcmask 220160   ;;  %v5853_v12 = vld [vmem:[%s8797_s4 + $0x10] sm:$0xff]   ;;  %v5854_v19 = vld [vmem:[%s8797_s4 + $0x18] sm:$0xff]  }
  0x10   : > { %v608_v4 = vsel %vm606_vm1, %v607_v3, 0  ;;  %306 = vst.msk [vmem:[#allocation2] sm:$0xff] %vm305_vm2, %v8823_v5  ;;  %307 = vst.msk [vmem:[#allocation2 + $0x8] sm:$0xff] %vm305_vm2, %v8823_v5  ;;  %2098 = vmatprep.subr.bf16.mxu1 %v8823_v5  ;;  %s5684_s30 = sshll.u32 %s9110_s25, 7  ;;  %vm938_vm6 = vsmask.f32 7424  ;;  %s300_s8 = scalar_lea.vmem %s8799_s6, %s9110_s25 }
  0x11   : > { %309 = vst.msk [vmem:[#allocation2 + $0x110] sm:$0xff] %vm305_vm2, %v8823_v5  ;;  %310 = vst.msk [vmem:[#allocation2 + $0x118] sm:$0xff] %vm305_vm2, %v8823_v5  ;;  %v6113_v6 = vand.u32 %v5834_v1, %v608_v4  ;;  %s6130_s10 = scalar_lea.vmem %s8793_s0, %s5684_s30  ;;  %v5855_v24 = vld [vmem:[%s8797_s4 + $0x20] sm:$0xff]   ;;  %s5979_s21 = smov 64   ;;  %v5856_v39 = vld [vmem:[%s8797_s4 + $0x28] sm:$0xff]   ;;  %vm1275_vm7 = vcmask 1046528  }
  0x12   : > { %313 = vst.msk [vmem:[#allocation2 + $0x10] sm:$0xf] %vm311_vm3, %v8823_v5  ;;  %314 = vst.msk [vmem:[#allocation2 + $0x20] sm:$0xf] %vm311_vm3, %v8823_v5  ;;  %v5835_v8 = vld [vmem:[%s6130_s10] sm:$0xff]   ;;  %v5836_v9 = vld [vmem:[%s6130_s10 + $0x8] sm:$0xff]   ;;  %s6192_s26 = scalar_lea.vmem %s8794_s1, %s5684_s30  ;;  %s303_s13 = scalar_lea.vmem %s8800_s7, %s9110_s25 }
  0x13   : > { %315 = vst.msk [vmem:[#allocation2 + $0x30] sm:$0xf] %vm311_vm3, %v8823_v5  ;;  %316 = vst.msk [vmem:[#allocation2 + $0x40] sm:$0xf] %vm311_vm3, %v8823_v5  ;;  %5724 = vmatprep.subr.bf16.mxu0 %v6113_v6  ;;  %5726 = vmatprep.mubr.msk.bf16.mxu0 %vm556_vm5, %v5835_v8  ;;  %v5837_v10 = vld [vmem:[%s6130_s10 + $0x10] sm:$0xff]   ;;  %v5838_v13 = vld [vmem:[%s6130_s10 + $0x18] sm:$0xff]  }
  0x14   : > { %317 = vst.msk [vmem:[#allocation2 + $0x50] sm:$0xf] %vm311_vm3, %v8823_v5  ;;  %318 = vst.msk [vmem:[#allocation2 + $0x60] sm:$0xf] %vm311_vm3, %v8823_v5  ;;  %5725 = vmatpush3.bf16.msra.mxu0 %v6113_v6  ;;  %v5839_v14 = vld [vmem:[%s6130_s10 + $0x20] sm:$0xff]   ;;  %v5840_v15 = vld [vmem:[%s6130_s10 + $0x28] sm:$0xff]  }
  0x15   : > { %319 = vst.msk [vmem:[#allocation2 + $0x70] sm:$0xf] %vm311_vm3, %v8823_v5  ;;  %320 = vst.msk [vmem:[#allocation2 + $0x80] sm:$0xf] %vm311_vm3, %v8823_v5  ;;  %2334 = vmatprep.subr.bf16.mxu0 %v8823_v5  ;;  %v5841_v16 = vld [vmem:[%s6130_s10 + $0x30] sm:$0xff]   ;;  %v5842_v27 = vld [vmem:[%s6130_s10 + $0x38] sm:$0xff]  }
  0x16   : > { %321 = vst.msk [vmem:[#allocation2 + $0x90] sm:$0xf] %vm311_vm3, %v8823_v5  ;;  %322 = vst.msk [vmem:[#allocation2 + $0xa0] sm:$0xf] %vm311_vm3, %v8823_v5  ;;  %v5843_v29 = vld [vmem:[%s6130_s10 + $0x40] sm:$0xff]   ;;  %v5844_v32 = vld [vmem:[%s6130_s10 + $0x48] sm:$0xff]  }
  0x17   : > { %323 = vst.msk [vmem:[#allocation2 + $0xb0] sm:$0xf] %vm311_vm3, %v8823_v5  ;;  %324 = vst.msk [vmem:[#allocation2 + $0xc0] sm:$0xf] %vm311_vm3, %v8823_v5  ;;  %5727 = vmatmul.mubr.msk.bf16.vlgmr.msra.gmra.mrb[0].mxu0 %vm556_vm5, %v5836_v9  ;;  %v5845_v33 = vld [vmem:[%s6130_s10 + $0x50] sm:$0xff]   ;;  %v5846_v34 = vld [vmem:[%s6130_s10 + $0x58] sm:$0xff]  }
  0x18   : > { %325 = vst.msk [vmem:[#allocation2 + $0xd0] sm:$0xf] %vm311_vm3, %v8823_v5  ;;  %326 = vst.msk [vmem:[#allocation2 + $0xe0] sm:$0xf] %vm311_vm3, %v8823_v5  ;;  %5730 = vmatprep.mubr.msk.bf16.mxu0 %vm556_vm5, %v5837_v10  ;;  %2335 = vmatpush1.bf16.msra.mxu0 %v5851_v7  ;;  %v5847_v35 = vld [vmem:[%s6130_s10 + $0x60] sm:$0xff]   ;;  %v5848_v36 = vld [vmem:[%s6130_s10 + $0x68] sm:$0xff]  }
  0x19   : > { %327 = vst.msk [vmem:[#allocation2 + $0xf0] sm:$0xf] %vm311_vm3, %v8823_v5  ;;  %328 = vst.msk [vmem:[#allocation2 + $0x100] sm:$0xf] %vm311_vm3, %v8823_v5  ;;  %2336 = vmatprep.subr.bf16.mxu0 %v8823_v5  ;;  %v5849_v37 = vld [vmem:[%s6130_s10 + $0x70] sm:$0xff]   ;;  %v5850_v38 = vld [vmem:[%s6130_s10 + $0x78] sm:$0xff]  }
  0x1a   : > { %332 = vst.msk [vmem:[#allocation2 + $0x18] sm:$0xf0] %vm330_vm4, %v8823_v5  ;;  %333 = vst.msk [vmem:[#allocation2 + $0x28] sm:$0xf0] %vm330_vm4, %v8823_v5  ;;  %v5857_v40 = vld [vmem:[%s8797_s4 + $0x30] sm:$0xff]   ;;  %v5858_v41 = vld [vmem:[%s8797_s4 + $0x38] sm:$0xff]  }
  0x1b   : > { %334 = vst.msk [vmem:[#allocation2 + $0x38] sm:$0xf0] %vm330_vm4, %v8823_v5  ;;  %335 = vst.msk [vmem:[#allocation2 + $0x48] sm:$0xf0] %vm330_vm4, %v8823_v5  ;;  %v5859_v42 = vld [vmem:[%s8797_s4 + $0x40] sm:$0xff]   ;;  %v5860_v43 = vld [vmem:[%s8797_s4 + $0x48] sm:$0xff]  }
  0x1c   : > { %336 = vst.msk [vmem:[#allocation2 + $0x58] sm:$0xf0] %vm330_vm4, %v8823_v5  ;;  %337 = vst.msk [vmem:[#allocation2 + $0x68] sm:$0xf0] %vm330_vm4, %v8823_v5  ;;  %2337 = vmatpush1.bf16.msra.mxu0 %v5852_v11  ;;  %v5861_v46 = vld [vmem:[%s8797_s4 + $0x50] sm:$0xff]   ;;  %v5862_v52 = vld [vmem:[%s8797_s4 + $0x58] sm:$0xff]  }
  0x1d   : > { %338 = vst.msk [vmem:[#allocation2 + $0x78] sm:$0xf0] %vm330_vm4, %v8823_v5  ;;  %339 = vst.msk [vmem:[#allocation2 + $0x88] sm:$0xf0] %vm330_vm4, %v8823_v5  ;;  %2338 = vmatprep.subr.bf16.mxu0 %v8823_v5  ;;  %vm1388_vm8 = vsmask.f32 4352 }
  0x1e   : > { %340 = vst.msk [vmem:[#allocation2 + $0x98] sm:$0xf0] %vm330_vm4, %v8823_v5  ;;  %341 = vst.msk [vmem:[#allocation2 + $0xa8] sm:$0xf0] %vm330_vm4, %v8823_v5  ;;  %vm5248_vm9 = vcmask 0  }
  0x1f   : > { %342 = vst.msk [vmem:[#allocation2 + $0xb8] sm:$0xf0] %vm330_vm4, %v8823_v5  ;;  %343 = vst.msk [vmem:[#allocation2 + $0xc8] sm:$0xf0] %vm330_vm4, %v8823_v5  ;;  %5731 = vmatmul.mubr.msk.bf16.gmra.mrb[4].mxu0 %vm556_vm5, %v5838_v13 }
  0x20   : > { %344 = vst.msk [vmem:[#allocation2 + $0xd8] sm:$0xf0] %vm330_vm4, %v8823_v5  ;;  %345 = vst.msk [vmem:[#allocation2 + $0xe8] sm:$0xf0] %vm330_vm4, %v8823_v5  ;;  %5734 = vmatprep.mubr.msk.bf16.mxu0 %vm556_vm5, %v5839_v14  ;;  %2339 = vmatpush1.bf16.msra.mxu0 %v5853_v12  ;;  %v5863_v14 = vld [vmem:[%s8797_s4 + $0x60] sm:$0xff]  }
  0x21   : > { %346 = vst.msk [vmem:[#allocation2 + $0xf8] sm:$0xf0] %vm330_vm4, %v8823_v5  ;;  %347 = vst.msk [vmem:[#allocation2 + $0x108] sm:$0xf0] %vm330_vm4, %v8823_v5  ;;  %2340 = vmatprep.subr.bf16.mxu0 %v8823_v5  ;;  %2099 = vmatpush1.bf16.msra.mxu1 %v5863_v14 }
  0x22   : > { %312 = vst.msk [vmem:[#allocation2] sm:$0xf] %vm311_vm3, %v8823_v5  ;;  %329 = vst.msk [vmem:[#allocation2 + $0x110] sm:$0xf] %vm311_vm3, %v8823_v5  ;;  %2100 = vmatprep.subr.bf16.mxu1 %v8823_v5 }
  0x23   : > { %331 = vst.msk [vmem:[#allocation2 + $0x8] sm:$0xf0] %vm330_vm4, %v8823_v5  ;;  %348 = vst.msk [vmem:[#allocation2 + $0x118] sm:$0xf0] %vm330_vm4, %v8823_v5 }
  0x24   : > { %2341 = vmatpush1.bf16.msra.mxu0 %v5854_v19  ;;  %v5870_v19 = vld [vmem:[%s8797_s4 + $0x98] sm:$0xff]  }
  0x25   : > { %2342 = vmatprep.subr.bf16.mxu0 %v8823_v5 }
  0x27   : > { %5735 = vmatmul.mubr.msk.bf16.gmra.mrb[8].mxu0 %vm556_vm5, %v5840_v15  ;;  %v5864_v15 = vld [vmem:[%s8797_s4 + $0x68] sm:$0xff]  }
  0x28   : > { %5738 = vmatprep.mubr.msk.bf16.mxu0 %vm556_vm5, %v5841_v16  ;;  %2343 = vmatpush1.bf16.msra.mxu0 %v5855_v24  ;;  %v5867_v16 = vld [vmem:[%s8797_s4 + $0x80] sm:$0xff]  }
  0x29   : > { %v6158_v17 = vld [vmem:[#allocation2] sm:$0xff]  ;;  %2344 = vmatprep.subr.bf16.mxu0 %v8823_v5  ;;  %2101 = vmatpush1.bf16.msra.mxu1 %v5864_v15 }
  0x2a   : > { %v6160_v18 = vld [vmem:[#allocation2 + $0x8] sm:$0xff]  ;;  %v940_v20 = vshrl.u32 %v6158_v17, 16  ;;  %v942_v21 = vshll.u32 %v6158_v17, 16  ;;  %v1276_v44 = vrot.slane %v6158_v17, 1  ;;  %2102 = vmatprep.subr.bf16.mxu1 %v8823_v5 }
  0x2b   : > { %v947_v22 = vshll.u32 %v6160_v18, 16  ;;  %v951_v23 = vshrl.u32 %v6160_v18, 16  ;;  %v1277_v45 = vrot.slane %v6160_v18, 1 }
  0x2c   : > { %v944_v25 = vrot.slane %v942_v21, 1  ;;  %2345 = vmatpush1.bf16.msra.mxu0 %v5856_v39  ;;  %v6284_v21 = vld [vmem:[%s8796_s3] ss:$0 sm:$0xff] }
  0x2d   : > { %v949_v26 = vrot.slane %v947_v22, 1  ;;  %2346 = vmatprep.subr.bf16.mxu0 %v8823_v5  ;;  %v1278_v47 = vsel %vm1275_vm7, %v1276_v44, %v1277_v45  ;;  %v1413_v50 = vshrl.u32 %v1277_v45, 16  ;;  %v1416_v51 = vshll.u32 %v1277_v45, 16 }
  0x2e   : > { %v945_v28 = vor.u32 %v944_v25, %v940_v20  ;;  %v1405_v48 = vshrl.u32 %v1278_v47, 16  ;;  %v1408_v49 = vshll.u32 %v1278_v47, 16  ;;  %v5871_v20 = vld [vmem:[%s8797_s4 + $0xa0] sm:$0xff]  }
  0x2f   : > { %v953_v31 = vor.u32 %v951_v23, %v949_v26  ;;  %5739 = vmatmul.mubr.msk.bf16.gmra.mrb[12].mxu0 %vm556_vm5, %v5842_v27  ;;  %v1415_v55 = vrot.slane %v1413_v50, 3  ;;  %v1418_v56 = vrot.slane %v1416_v51, 4 }
  0x30   : > { %v950_v30 = vsel %vm938_vm6, %v945_v28, %v949_v26  ;;  %5742 = vmatprep.mubr.msk.bf16.mxu0 %vm556_vm5, %v5843_v29  ;;  %2347 = vmatpush1.bf16.msra.mxu0 %v5857_v40  ;;  %v1407_v53 = vrot.slane %v1405_v48, 3  ;;  %v1410_v54 = vrot.slane %v1408_v49, 4 }
  0x31   : > { %1179 = vrot.lane.b32.xlu0 %v950_v30, %s5979_s21  ;;  %2348 = vmatprep.subr.bf16.mxu0 %v8823_v5  ;;  %v1419_v58 = vor.u32 %v1418_v56, %v1415_v55 }
  0x32   : > { %v1411_v57 = vor.u32 %v1410_v54, %v1407_v53 }
  0x34   : > { %2349 = vmatpush1.bf16.msra.mxu0 %v5858_v41  ;;  %v1420_v59 = vsel %vm1388_vm8, %v1411_v57, %v1419_v58 }
  0x35   : > { %1181 = vrot.lane.b32.xlu0 %v953_v31, %s5979_s21  ;;  %2350 = vmatprep.subr.bf16.mxu0 %v8823_v5 }
  0x37   : > { %5743 = vmatmul.mubr.msk.bf16.gmra.mrb[16].mxu0 %vm556_vm5, %v5844_v32 }
  0x38   : > { %5746 = vmatprep.mubr.msk.bf16.mxu0 %vm556_vm5, %v5845_v33  ;;  %2351 = vmatpush1.bf16.msra.mxu0 %v5859_v42 }
  0x39   : > { %2352 = vmatprep.subr.bf16.mxu0 %v8823_v5 }
  0x3c   : > { %2353 = vmatpush1.bf16.msra.mxu0 %v5860_v43 }
  0x3d   : > { %2354 = vmatprep.subr.bf16.mxu0 %v8823_v5 }
  0x3f   : > { %5747 = vmatmul.mubr.msk.bf16.gmra.mrb[20].mxu0 %vm556_vm5, %v5846_v34 }
  0x40   : > { %5750 = vmatprep.mubr.msk.bf16.mxu0 %vm556_vm5, %v5847_v35  ;;  %2355 = vmatpush1.bf16.msra.mxu0 %v5861_v46 }
  0x41   : > { %2356 = vmatprep.subr.bf16.mxu0 %v8823_v5 }
  0x44   : > { %2357 = vmatpush1.bf16.msra.mxu0 %v5862_v52 }
  0x45   : > { %5758 = vmatprep.subr.bf16.mxu0 %v6031_v0 }
  0x47   : > { %5751 = vmatmul.mubr.msk.bf16.gmra.mrb[24].mxu0 %vm556_vm5, %v5848_v36 }
  0x48   : > { %5754 = vmatprep.mubr.msk.bf16.mxu0 %vm556_vm5, %v5849_v37 }
  0x4f   : > { %5755 = vmatmul.mubr.msk.bf16.gmra.mrb[28].mxu0 %vm556_vm5, %v5850_v38 }
  0x50   : > { %5557 = vmatprep.mubr.msk.bf16.mxu0 %vm305_vm2, %v1420_v59 }
  0xa3   : > { %v1180_v60 = vpop.permute.xlu0 %1179 }
  0xa4   : > { %v1325_v61 = vsel %vm305_vm2, %v6158_v17, %v1180_v60  ;;  %v5868_v17 = vld [vmem:[%s8797_s4 + $0x88] sm:$0xff]  }
  0xa5   : > { %v1389_v62 = vshrl.u32 %v1325_v61, 16  ;;  %v1392_v63 = vshll.u32 %v1325_v61, 16 }
  0xa7   : > { %v1391_v1 = vrot.slane %v1389_v62, 3  ;;  %v1394_v2 = vrot.slane %v1392_v63, 4  ;;  %v1182_v3 = vpop.permute.xlu0 %1181 }
  0xa8   : > { %v1327_v4 = vsel %vm305_vm2, %v6160_v18, %v1182_v3  ;;  %v5869_v18 = vld [vmem:[%s8797_s4 + $0x90] sm:$0xff]  }
  0xa9   : > { %v1396_v7 = vshrl.u32 %v1327_v4, 16  ;;  %v1399_v8 = vshll.u32 %v1327_v4, 16  ;;  %v1395_v9 = vor.u32 %v1394_v2, %v1391_v1 }
  0xab   : > { %v1398_v10 = vrot.slane %v1396_v7, 3  ;;  %v1401_v11 = vrot.slane %v1399_v8, 4 }
  0xad   : > { %v1402_v12 = vor.u32 %v1401_v11, %v1398_v10  ;;  %v5872_v11 = vld [vmem:[%s8797_s4 + $0xa8] sm:$0xff]  }
  0xaf   : > { %v1403_v13 = vsel %vm1388_vm8, %v1395_v9, %v1402_v12 }
  0xb0   : > { %2367 = vmatmul.mubr.bf16.vlgmr.msra.gmra.mrb[32].mxu0 %v1403_v13 }
  0xb1   : > { %5759 = vmatpush3.bf16.msra.mxu0 %v6031_v0  ;;  %v5865_v0 = vld [vmem:[%s8797_s4 + $0x70] sm:$0xff]  }
  0xb2   : > { %5760 = vmatprep.subr.bf16.mxu0 %v6113_v6  ;;  %2103 = vmatpush1.bf16.msra.mxu1 %v5865_v0 }
  0xb3   : > { %2104 = vmatprep.subr.bf16.mxu1 %v8823_v5 }
  0xb5   : > { %5761 = vmatpush3.bf16.msra.mxu0 %v6113_v6  ;;  %v5866_v6 = vld [vmem:[%s8797_s4 + $0x78] sm:$0xff]  }
  0xb6   : > { %4464 = vmatprep.subr.bf16.mxu0 %v8823_v5  ;;  %2105 = vmatpush1.bf16.msra.mxu1 %v5866_v6 }
  0xb7   : > { %2106 = vmatprep.subr.bf16.mxu1 %v8823_v5 }
  0xba   : > { %2107 = vmatpush1.bf16.msra.mxu1 %v5867_v16 }
  0xbb   : > { %2108 = vmatprep.subr.bf16.mxu1 %v8823_v5 }
  0xbe   : > { %2109 = vmatpush1.bf16.msra.mxu1 %v5868_v17 }
  0xbf   : > { %2110 = vmatprep.subr.bf16.mxu1 %v8823_v5 }
  0xc2   : > { %2111 = vmatpush1.bf16.msra.mxu1 %v5869_v18 }
  0xc3   : > { %2112 = vmatprep.subr.bf16.mxu1 %v8823_v5 }
  0xc6   : > { %2113 = vmatpush1.bf16.msra.mxu1 %v5870_v19 }
  0xc7   : > { %2114 = vmatprep.subr.bf16.mxu1 %v8823_v5 }
  0xca   : > { %2115 = vmatpush1.bf16.msra.mxu1 %v5871_v20 }
  0xcb   : > { %2116 = vmatprep.subr.bf16.mxu1 %v8823_v5 }
  0xce   : > { %2117 = vmatpush1.bf16.msra.mxu1 %v5872_v11 }
  0xcf   : > { %2118 = vmatprep.subr.bf16.mxu1 %v8823_v5 }
  0xea   : > { %v5728_v22 = vpop.f32.mrb[0].mxu0 }
  0xeb   : > { %v6288_v23 = vadd.f32 %v5728_v22, %v6284_v21  ;;  %v646_v24 = vpop.f32.mrb[1].mxu0 }
  0xec   : > { %v6291_v25 = vadd.f32 %v6284_v21, %v646_v24  ;;  %v5729_v26 = vpop.f32.mrb[2].mxu0 }
  0xed   : > { %v6294_v27 = vadd.f32 %v5729_v26, %v6284_v21  ;;  %v649_v28 = vpop.f32.mrb[3].mxu0  ;;  %v8822_v30 = vmax.f32 %v6288_v23, 0.0 }
  0xee   : > { %v6297_v29 = vadd.f32 %v6284_v21, %v649_v28  ;;  %v8819_v32 = vmax.f32 %v6291_v25, 0.0 }
  0xef   : > { %v8818_v31 = vmax.f32 %v6294_v27, 0.0 }
  0xf0   : > { %8899 = vst [vmem:[#allocation3_spill] sm:$0xff] %v6297_v29  ;;  %v8817_v33 = vmax.f32 %v6297_v29, 0.0 }
  0xf1   : > { %v806_v34 = vpack.c.bf16 %v8818_v31, %v8822_v30 }
  0xf2   : > { %v805_v35 = vpack.c.bf16 %v8817_v33, %v8819_v32  ;;  %v5732_v36 = vpop.f32.mrb[4].mxu0 }
  0xf3   : > { %v838_v37 = vrot.slane %v806_v34, 4  ;;  %v6312_v38 = vadd.f32 %v5732_v36, %v6284_v21  ;;  %v662_v39 = vpop.f32.mrb[5].mxu0 }
  0xf4   : > { %v837_v40 = vrot.slane %v805_v35, 4  ;;  %v6315_v41 = vadd.f32 %v6284_v21, %v662_v39  ;;  %v5733_v42 = vpop.f32.mrb[6].mxu0 }
  0xf5   : > { %8900 = vst [vmem:[#allocation4_spill] sm:$0xff] %v6312_v38  ;;  %872 = vst.msk [vmem:[#allocation2 + $0x20] sm:$0xf0] %vm330_vm4, %v838_v37  ;;  %v8816_v43 = vmax.f32 %v6312_v38, 0.0  ;;  %v6321_v44 = vadd.f32 %v5733_v42, %v6284_v21  ;;  %v665_v45 = vpop.f32.mrb[7].mxu0 }
  0xf6   : > { %8901 = vst [vmem:[#allocation5_spill] sm:$0xff] %v6315_v41  ;;  %873 = vst.msk [vmem:[#allocation2 + $0x28] sm:$0xf] %vm311_vm3, %v838_v37  ;;  %v8815_v46 = vmax.f32 %v6315_v41, 0.0  ;;  %v6327_v47 = vadd.f32 %v6284_v21, %v665_v45  ;;  %v5873_v45 = vld [vmem:[%s8797_s4 + $0xb0] sm:$0xff]  }
  0xf7   : > { %8902 = vst [vmem:[#allocation6_spill] sm:$0xff] %v6321_v44  ;;  %870 = vst.msk [vmem:[#allocation2 + $0x10] sm:$0xf0] %vm330_vm4, %v837_v40  ;;  %v8812_v48 = vmax.f32 %v6321_v44, 0.0  ;;  %2119 = vmatpush1.bf16.msra.mxu1 %v5873_v45 }
  0xf8   : > { %871 = vst.msk [vmem:[#allocation2 + $0x18] sm:$0xf] %vm311_vm3, %v837_v40  ;;  %8903 = vst [vmem:[#allocation7_spill] sm:$0xff] %v6327_v47  ;;  %v8811_v49 = vmax.f32 %v6327_v47, 0.0  ;;  %2120 = vmatprep.subr.bf16.mxu1 %v8823_v5 }
  0xf9   : > { %v808_v50 = vpack.c.bf16 %v8812_v48, %v8816_v43 }
  0xfa   : > { %v807_v51 = vpack.c.bf16 %v8811_v49, %v8815_v46  ;;  %v5736_v52 = vpop.f32.mrb[8].mxu0 }
  0xfb   : > { %v840_v53 = vrot.slane %v808_v50, 4  ;;  %v6340_v54 = vadd.f32 %v5736_v52, %v6284_v21  ;;  %v678_v55 = vpop.f32.mrb[9].mxu0 }
  0xfc   : > { %v839_v56 = vrot.slane %v807_v51, 4  ;;  %v6343_v57 = vadd.f32 %v6284_v21, %v678_v55  ;;  %v5737_v58 = vpop.f32.mrb[10].mxu0  ;;  %v6345_v59 = vld [vmem:[#allocation2 + $0x20] sm:$0xff] }
  0xfd   : > { %8904 = vst [vmem:[#allocation8_spill] sm:$0xff] %v6340_v54  ;;  %v6347_v60 = vld [vmem:[#allocation2 + $0x28] sm:$0xff]  ;;  %876 = vst.msk [vmem:[#allocation2 + $0x40] sm:$0xf0] %vm330_vm4, %v840_v53  ;;  %v8810_v61 = vmax.f32 %v6340_v54, 0.0  ;;  %v6353_v62 = vadd.f32 %v5737_v58, %v6284_v21  ;;  %v681_v63 = vpop.f32.mrb[11].mxu0 }
  0xfe   : > { %8905 = vst [vmem:[#allocation9_spill] sm:$0xff] %v6343_v57  ;;  %877 = vst.msk [vmem:[#allocation2 + $0x48] sm:$0xf] %vm311_vm3, %v840_v53  ;;  %v970_v1 = vshrl.u32 %v6345_v59, 16  ;;  %v972_v2 = vshll.u32 %v6345_v59, 16  ;;  %v6357_v3 = vld [vmem:[#allocation2 + $0x10] sm:$0xff]  ;;  %v6365_v8 = vadd.f32 %v6284_v21, %v681_v63 }
  0xff   : > { %8906 = vst [vmem:[#allocation10_spill] sm:$0xff] %v6353_v62  ;;  %v6359_v4 = vld [vmem:[#allocation2 + $0x18] sm:$0xff]  ;;  %874 = vst.msk [vmem:[#allocation2 + $0x30] sm:$0xf0] %vm330_vm4, %v839_v56  ;;  %v8809_v7 = vmax.f32 %v6343_v57, 0.0  ;;  %v977_v9 = vshll.u32 %v6347_v60, 16 }
 0x100   : > { %875 = vst.msk [vmem:[#allocation2 + $0x38] sm:$0xf] %vm311_vm3, %v839_v56  ;;  %8907 = vst [vmem:[#allocation11_spill] sm:$0xff] %v6365_v8  ;;  %v955_v10 = vshrl.u32 %v6357_v3, 16  ;;  %v8806_v12 = vmax.f32 %v6353_v62, 0.0  ;;  %v974_v13 = vrot.slane %v972_v2, 1 }
 0x101   : > { %v957_v14 = vshll.u32 %v6357_v3, 16  ;;  %v962_v15 = vshll.u32 %v6359_v4, 16  ;;  %v8805_v0 = vmax.f32 %v6365_v8, 0.0  ;;  %v6376_v6 = vrot.slane %v977_v9, 1 }
 0x102   : > { %v1279_v16 = vrot.slane %v6357_v3, 1  ;;  %v1280_v17 = vrot.slane %v6359_v4, 1  ;;  %v810_v18 = vpack.c.bf16 %v8806_v12, %v8810_v61  ;;  %v975_v19 = vor.u32 %v974_v13, %v970_v1  ;;  %v5740_v26 = vpop.f32.mrb[12].mxu0 }
 0x103   : > { %v959_v20 = vrot.slane %v957_v14, 1  ;;  %v964_v22 = vrot.slane %v962_v15, 1  ;;  %v809_v24 = vpack.c.bf16 %v8805_v0, %v8809_v7  ;;  %v6391_v37 = vadd.f32 %v5740_v26, %v6284_v21  ;;  %v694_v39 = vpop.f32.mrb[13].mxu0 }
 0x104   : > { %v1281_v28 = vsel %vm1275_vm7, %v1279_v16, %v1280_v17  ;;  %v1445_v34 = vshrl.u32 %v1280_v17, 16  ;;  %v1448_v35 = vshll.u32 %v1280_v17, 16  ;;  %v842_v36 = vrot.slane %v810_v18, 4  ;;  %v5741_v52 = vpop.f32.mrb[14].mxu0 }
 0x105   : > { %8908 = vst [vmem:[#allocation12_spill] sm:$0xff] %v6391_v37  ;;  %v980_v40 = vsel %vm938_vm6, %v975_v19, %v6376_v6  ;;  %v960_v42 = vor.u32 %v959_v20, %v955_v10  ;;  %v841_v50 = vrot.slane %v809_v24, 4  ;;  %v6399_v51 = vadd.f32 %v6284_v21, %v694_v39  ;;  %v697_v63 = vpop.f32.mrb[15].mxu0 }
 0x106   : > { %1187 = vrot.lane.b32.xlu0 %v980_v40, %s5979_s21  ;;  %v1437_v53 = vshrl.u32 %v1281_v28, 16  ;;  %v1440_v55 = vshll.u32 %v1281_v28, 16  ;;  %880 = vst.msk [vmem:[#allocation2 + $0x60] sm:$0xf0] %vm330_vm4, %v842_v36  ;;  %v8804_v56 = vmax.f32 %v6391_v37, 0.0  ;;  %v6406_v58 = vadd.f32 %v5741_v52, %v6284_v21  ;;  %v6409_v9 = vld [vmem:[#allocation2 + $0x30] sm:$0xff] }
 0x107   : > { %8909 = vst [vmem:[#allocation13_spill] sm:$0xff] %v6399_v51  ;;  %881 = vst.msk [vmem:[#allocation2 + $0x68] sm:$0xf] %vm311_vm3, %v842_v36  ;;  %v965_v1 = vsel %vm938_vm6, %v960_v42, %v964_v22  ;;  %v1447_v2 = vrot.slane %v1445_v34, 3  ;;  %v6411_v10 = vld [vmem:[#allocation2 + $0x38] sm:$0xff]  ;;  %v8803_v11 = vmax.f32 %v6399_v51, 0.0  ;;  %v6417_v13 = vadd.f32 %v6284_v21, %v697_v63 }
 0x108   : > { %8910 = vst [vmem:[#allocation14_spill] sm:$0xff] %v6406_v58  ;;  %878 = vst.msk [vmem:[#allocation2 + $0x50] sm:$0xf0] %vm330_vm4, %v841_v50  ;;  %1183 = vrot.lane.b32.xlu1 %v965_v1, %s5979_s21  ;;  %v1439_v14 = vrot.slane %v1437_v53, 3  ;;  %v1442_v15 = vrot.slane %v1440_v55, 4  ;;  %v8802_v16 = vmax.f32 %v6406_v58, 0.0 }
 0x109   : > { %879 = vst.msk [vmem:[#allocation2 + $0x58] sm:$0xf] %vm311_vm3, %v841_v50  ;;  %8911 = vst [vmem:[#allocation15_spill] sm:$0xff] %v6417_v13  ;;  %v1450_v17 = vrot.slane %v1448_v35, 4  ;;  %v966_v18 = vshrl.u32 %v6359_v4, 16  ;;  %v985_v19 = vshrl.u32 %v6409_v9, 16 }
 0x10a   : > { %v8801_v20 = vmax.f32 %v6417_v13, 0.0  ;;  %v1443_v24 = vor.u32 %v1442_v15, %v1439_v14  ;;  %v987_v26 = vshll.u32 %v6409_v9, 16  ;;  %v992_v28 = vshll.u32 %v6411_v10, 16  ;;  %v5874_v34 = vld [vmem:[%s8797_s4 + $0xb8] sm:$0xff]   ;;  %v6435_v42 = vld [vmem:[#allocation2 + $0x40] sm:$0xff]  ;;  %v5744_v50 = vpop.f32.mrb[16].mxu0 }
 0x10b   : > { %v812_v35 = vpack.c.bf16 %v8802_v16, %v8804_v56  ;;  %v1451_v36 = vor.u32 %v1450_v17, %v1447_v2  ;;  %v968_v39 = vor.u32 %v966_v18, %v964_v22  ;;  %v981_v40 = vshrl.u32 %v6347_v60, 16  ;;  %v6441_v55 = vld [vmem:[#allocation2 + $0x48] sm:$0xff]  ;;  %2121 = vmatpush1.bf16.msra.mxu1 %v5874_v34  ;;  %v710_v14 = vpop.f32.mrb[17].mxu0 }
 0x10c   : > { %v811_v45 = vpack.c.bf16 %v8801_v20, %v8803_v11  ;;  %v989_v52 = vrot.slane %v987_v26, 1  ;;  %v994_v53 = vrot.slane %v992_v28, 1  ;;  %v1000_v63 = vshrl.u32 %v6435_v42, 16  ;;  %2631 = vmatprep.subr.bf16.mxu1 %v8823_v5  ;;  %v5745_v26 = vpop.f32.mrb[18].mxu0 }
 0x10d   : > { %v844_v1 = vrot.slane %v812_v35, 4  ;;  %v1452_v22 = vsel %vm1388_vm8, %v1443_v24, %v1451_v36  ;;  %1185 = vrot.lane.b32.xlu1 %v968_v39, %s5979_s21  ;;  %v6447_v2 = vadd.f32 %v5744_v50, %v6284_v21  ;;  %v983_v15 = vor.u32 %v981_v40, %v6376_v6  ;;  %v713_v35 = vpop.f32.mrb[19].mxu0 }
 0x10e   : > { %v843_v17 = vrot.slane %v811_v45, 4  ;;  %5529 = vmatprep.mubr.msk.bf16.mxu1 %vm305_vm2, %v1452_v22  ;;  %5558 = vmatprep.mubr.msk.bf16.mxu0 %vm305_vm2, %v1452_v22  ;;  %v6454_v18 = vadd.f32 %v6284_v21, %v710_v14  ;;  %v990_v24 = vor.u32 %v989_v52, %v985_v19  ;;  %v1002_v28 = vshll.u32 %v6435_v42, 16  ;;  %v6476_v22 = vld [vmem:[#allocation2 + $0x60] sm:$0xff]  ;;  %v6490_v56 = vld [vmem:[#allocation2 + $0x68] sm:$0xff] }
 0x10f   : > { %8912 = vst [vmem:[#allocation16_spill] sm:$0xff] %v6447_v2  ;;  %884 = vst.msk [vmem:[#allocation2 + $0x80] sm:$0xf0] %vm330_vm4, %v844_v1  ;;  %v8808_v6 = vmax.f32 %v6447_v2, 0.0  ;;  %v6461_v34 = vadd.f32 %v5745_v26, %v6284_v21  ;;  %v1007_v36 = vshll.u32 %v6441_v55, 16  ;;  %v996_v39 = vshrl.u32 %v6411_v10, 16 }
 0x110   : > { %8913 = vst [vmem:[#allocation17_spill] sm:$0xff] %v6454_v18  ;;  %885 = vst.msk [vmem:[#allocation2 + $0x88] sm:$0xf] %vm311_vm3, %v844_v1  ;;  %v6465_v40 = vld [vmem:[#allocation2 + $0x50] sm:$0xff]  ;;  %v6467_v45 = vld [vmem:[#allocation2 + $0x58] sm:$0xff]  ;;  %v8814_v19 = vmax.f32 %v6454_v18, 0.0  ;;  %v6473_v50 = vadd.f32 %v6284_v21, %v713_v35  ;;  %v995_v52 = vsel %vm938_vm6, %v990_v24, %v994_v53 }
 0x111   : > { %8914 = vst [vmem:[#allocation18_spill] sm:$0xff] %v6461_v34  ;;  %882 = vst.msk [vmem:[#allocation2 + $0x70] sm:$0xf0] %vm330_vm4, %v843_v17  ;;  %v1004_v1 = vrot.slane %v1002_v28, 1  ;;  %v8807_v14 = vmax.f32 %v6461_v34, 0.0  ;;  %1191 = vrot.lane.b32.xlu0 %v995_v52, %s5979_s21  ;;  %1189 = vrot.lane.b32.xlu1 %v983_v15, %s5979_s21  ;;  %v1009_v26 = vrot.slane %v1007_v36, 1  ;;  %v998_v20 = vor.u32 %v996_v39, %v994_v53 }
 0x112   : > { %883 = vst.msk [vmem:[#allocation2 + $0x78] sm:$0xf] %vm311_vm3, %v843_v17  ;;  %8915 = vst [vmem:[#allocation19_spill] sm:$0xff] %v6473_v50  ;;  %v1015_v17 = vshrl.u32 %v6465_v40, 16  ;;  %v8813_v16 = vmax.f32 %v6473_v50, 0.0  ;;  %v1017_v35 = vshll.u32 %v6465_v40, 16 }
 0x113   : > { %v1005_v11 = vor.u32 %v1004_v1, %v1000_v63  ;;  %v1022_v24 = vshll.u32 %v6467_v45, 16  ;;  %v814_v28 = vpack.c.bf16 %v8807_v14, %v8808_v6  ;;  %v1011_v52 = vshrl.u32 %v6441_v55, 16  ;;  %v5748_v39 = vpop.f32.mrb[20].mxu0 }
 0x114   : > { %v1030_v53 = vshrl.u32 %v6476_v22, 16  ;;  %v1032_v15 = vshll.u32 %v6476_v22, 16  ;;  %v813_v63 = vpack.c.bf16 %v8813_v16, %v8814_v19  ;;  %v1019_v1 = vrot.slane %v1017_v35, 1  ;;  %v726_v6 = vpop.f32.mrb[21].mxu0 }
 0x115   : > { %v1010_v36 = vsel %vm938_vm6, %v1005_v11, %v1009_v26  ;;  %v1024_v0 = vrot.slane %v1022_v24, 1  ;;  %v846_v12 = vrot.slane %v814_v28, 4  ;;  %1193 = vrot.lane.b32.xlu1 %v998_v20, %s5979_s21  ;;  %v6502_v14 = vadd.f32 %v5748_v39, %v6284_v21  ;;  %v5749_v16 = vpop.f32.mrb[22].mxu0 }
 0x116   : > { %1195 = vrot.lane.b32.xlu0 %v1010_v36, %s5979_s21  ;;  %v1013_v7 = vor.u32 %v1011_v52, %v1009_v26  ;;  %v1034_v61 = vrot.slane %v1032_v15, 1  ;;  %v845_v49 = vrot.slane %v813_v63, 4  ;;  %v6505_v48 = vadd.f32 %v6284_v21, %v726_v6  ;;  %v729_v28 = vpop.f32.mrb[23].mxu0  ;;  %v6526_v36 = vld [vmem:[#allocation2 + $0x80] sm:$0xff] }
 0x117   : > { %8916 = vst [vmem:[#allocation20_spill] sm:$0xff] %v6502_v14  ;;  %v1020_v11 = vor.u32 %v1019_v1, %v1015_v17  ;;  %v1037_v35 = vshll.u32 %v6490_v56, 16  ;;  %888 = vst.msk [vmem:[#allocation2 + $0xa0] sm:$0xf0] %vm330_vm4, %v846_v12  ;;  %v8821_v20 = vmax.f32 %v6502_v14, 0.0  ;;  %v6512_v24 = vadd.f32 %v5749_v16, %v6284_v21  ;;  %v6533_v1 = vld [vmem:[#allocation2 + $0x88] sm:$0xff] }
 0x118   : > { %8917 = vst [vmem:[#allocation21_spill] sm:$0xff] %v6505_v48  ;;  %889 = vst.msk [vmem:[#allocation2 + $0xa8] sm:$0xf] %vm311_vm3, %v846_v12  ;;  %v1035_v26 = vor.u32 %v1034_v61, %v1030_v53  ;;  %v1026_v52 = vshrl.u32 %v6467_v45, 16  ;;  %v6515_v15 = vld [vmem:[#allocation2 + $0x70] sm:$0xff]  ;;  %v8827_v17 = vmax.f32 %v6505_v48, 0.0  ;;  %v6523_v12 = vadd.f32 %v6284_v21, %v729_v28 }
 0x119   : > { %8918 = vst [vmem:[#allocation22_spill] sm:$0xff] %v6512_v24  ;;  %v6517_v6 = vld [vmem:[#allocation2 + $0x78] sm:$0xff]  ;;  %886 = vst.msk [vmem:[#allocation2 + $0x90] sm:$0xf0] %vm330_vm4, %v845_v49  ;;  %v1025_v16 = vsel %vm938_vm6, %v1020_v11, %v1024_v0  ;;  %v1039_v63 = vrot.slane %v1037_v35, 1  ;;  %v8820_v61 = vmax.f32 %v6512_v24, 0.0  ;;  %1197 = vrot.lane.b32.xlu1 %v1013_v7, %s5979_s21 }
 0x11a   : > { %887 = vst.msk [vmem:[#allocation2 + $0x98] sm:$0xf] %vm311_vm3, %v845_v49  ;;  %8919 = vst [vmem:[#allocation23_spill] sm:$0xff] %v6523_v12  ;;  %1199 = vrot.lane.b32.xlu0 %v1025_v16, %s5979_s21  ;;  %v1028_v53 = vor.u32 %v1026_v52, %v1024_v0  ;;  %v1045_v39 = vshrl.u32 %v6515_v15, 16  ;;  %v1047_v49 = vshll.u32 %v6515_v15, 16  ;;  %v8826_v28 = vmax.f32 %v6523_v12, 0.0 }
 0x11b   : > { %v1040_v11 = vsel %vm938_vm6, %v1035_v26, %v1039_v63  ;;  %v1052_v35 = vshll.u32 %v6517_v6, 16  ;;  %v1041_v19 = vshrl.u32 %v6490_v56, 16  ;;  %v816_v7 = vpack.c.bf16 %v8820_v61, %v8821_v20  ;;  %v5752_v26 = vpop.f32.mrb[24].mxu0 }
 0x11c   : > { %v1049_v0 = vrot.slane %v1047_v49, 1  ;;  %v1060_v52 = vshrl.u32 %v6526_v36, 16  ;;  %v1062_v16 = vshll.u32 %v6526_v36, 16  ;;  %v815_v46 = vpack.c.bf16 %v8826_v28, %v8827_v17  ;;  %v742_v61 = vpop.f32.mrb[25].mxu0 }
 0x11d   : > { %v1054_v43 = vrot.slane %v1052_v35, 1  ;;  %v1043_v33 = vor.u32 %v1041_v19, %v1039_v63  ;;  %v1067_v31 = vshll.u32 %v6533_v1, 16  ;;  %v848_v32 = vrot.slane %v816_v7, 4  ;;  %1201 = vrot.lane.b32.xlu1 %v1028_v53, %s5979_s21  ;;  %v5753_v28 = vpop.f32.mrb[26].mxu0 }
 0x11e   : > { %1203 = vrot.lane.b32.xlu0 %v1040_v11, %s5979_s21  ;;  %v6553_v49 = vadd.f32 %v5752_v26, %v6284_v21  ;;  %v1050_v20 = vor.u32 %v1049_v0, %v1045_v39  ;;  %v1064_v30 = vrot.slane %v1062_v16, 1  ;;  %v847_v5 = vrot.slane %v815_v46, 4  ;;  %v745_v11 = vpop.f32.mrb[27].mxu0 }
 0x11f   : > { %v6556_v12 = vadd.f32 %v6284_v21, %v742_v61  ;;  %v1069_v35 = vrot.slane %v1067_v31, 1  ;;  %v1056_v19 = vshrl.u32 %v6517_v6, 16  ;;  %892 = vst.msk [vmem:[#allocation2 + $0xc0] sm:$0xf0] %vm330_vm4, %v848_v32  ;;  %v6563_v53 = vadd.f32 %v5753_v28, %v6284_v21  ;;  %v6570_v31 = vld [vmem:[#allocation2 + $0xa0] sm:$0xff] }
 0x120   : > { %8920 = vst [vmem:[#allocation24_spill] sm:$0xff] %v6553_v49  ;;  %893 = vst.msk [vmem:[#allocation2 + $0xc8] sm:$0xf] %vm311_vm3, %v848_v32  ;;  %v8836_v63 = vmax.f32 %v6553_v49, 0.0  ;;  %v1055_v39 = vsel %vm938_vm6, %v1050_v20, %v1054_v43  ;;  %v1065_v46 = vor.u32 %v1064_v30, %v1060_v52  ;;  %v6566_v7 = vld [vmem:[#allocation2 + $0x90] sm:$0xff]  ;;  %v6576_v0 = vadd.f32 %v6284_v21, %v745_v11  ;;  %v6579_v20 = vld [vmem:[#allocation2 + $0xa8] sm:$0xff] }
 0x121   : > { %8921 = vst [vmem:[#allocation25_spill] sm:$0xff] %v6556_v12  ;;  %8922 = vst [vmem:[#allocation26_spill] sm:$0xff] %v6563_v53  ;;  %v6568_v61 = vld [vmem:[#allocation2 + $0x98] sm:$0xff]  ;;  %v1058_v28 = vor.u32 %v1056_v19, %v1054_v43  ;;  %v1075_v16 = vshrl.u32 %v6566_v7, 16  ;;  %v8835_v30 = vmax.f32 %v6563_v53, 0.0  ;;  %1205 = vrot.lane.b32.xlu1 %v1043_v33, %s5979_s21  ;;  %v1071_v43 = vshrl.u32 %v6533_v1, 16 }
 0x122   : > { %890 = vst.msk [vmem:[#allocation2 + $0xb0] sm:$0xf0] %vm330_vm4, %v847_v5  ;;  %8923 = vst [vmem:[#allocation27_spill] sm:$0xff] %v6576_v0  ;;  %1207 = vrot.lane.b32.xlu0 %v1055_v39, %s5979_s21  ;;  %v1070_v52 = vsel %vm938_vm6, %v1065_v46, %v1069_v35  ;;  %v1082_v26 = vshll.u32 %v6568_v61, 16  ;;  %v8839_v11 = vmax.f32 %v6576_v0, 0.0  ;;  %v1090_v19 = vshrl.u32 %v6570_v31, 16 }
 0x123   : > { %891 = vst.msk [vmem:[#allocation2 + $0xb8] sm:$0xf] %vm311_vm3, %v847_v5  ;;  %v1077_v5 = vshll.u32 %v6566_v7, 16  ;;  %v1092_v17 = vshll.u32 %v6570_v31, 16  ;;  %v818_v39 = vpack.c.bf16 %v8835_v30, %v8836_v63  ;;  %v1097_v46 = vshll.u32 %v6579_v20, 16  ;;  %v5756_v48 = vpop.f32.mrb[28].mxu0 }
 0x124   : > { %v1084_v32 = vrot.slane %v1082_v26, 1  ;;  %v8924_v24 = vmax.f32 %v6556_v12, 0.0  ;;  %v1073_v50 = vor.u32 %v1071_v43, %v1069_v35  ;;  %v1086_v2 = vshrl.u32 %v6568_v61, 16  ;;  %v758_v26 = vpop.f32.mrb[29].mxu0 }
 0x125   : > { %v1079_v33 = vrot.slane %v1077_v5, 1  ;;  %v1094_v34 = vrot.slane %v1092_v17, 1  ;;  %v850_v18 = vrot.slane %v818_v39, 4  ;;  %1209 = vrot.lane.b32.xlu1 %v1058_v28, %s5979_s21  ;;  %v6604_v5 = vadd.f32 %v5756_v48, %v6284_v21 }
 0x126   : > { %v817_v14 = vpack.c.bf16 %v8839_v11, %v8924_v24  ;;  %1211 = vrot.lane.b32.xlu0 %v1070_v52, %s5979_s21  ;;  %v1099_v63 = vrot.slane %v1097_v46, 1  ;;  %v6607_v0 = vadd.f32 %v6284_v21, %v758_v26  ;;  %v5757_v24 = vpop.f32.mrb[30].mxu0  ;;  %v6609_v17 = vld [vmem:[#allocation2 + $0xc0] sm:$0xff] }
 0x127   : > { %8925 = vst [vmem:[#allocation28_spill] sm:$0xff] %v6604_v5  ;;  %v1080_v30 = vor.u32 %v1079_v33, %v1075_v16  ;;  %v1095_v35 = vor.u32 %v1094_v34, %v1090_v19  ;;  %896 = vst.msk [vmem:[#allocation2 + $0xe0] sm:$0xf0] %vm330_vm4, %v850_v18  ;;  %v8848_v28 = vmax.f32 %v6604_v5, 0.0  ;;  %v6615_v48 = vadd.f32 %v5757_v24, %v6284_v21  ;;  %v761_v52 = vpop.f32.mrb[31].mxu0  ;;  %v6622_v34 = vld [vmem:[#allocation2 + $0xc8] sm:$0xff] }
 0x128   : > { %v849_v53 = vrot.slane %v817_v14, 4  ;;  %8926 = vst [vmem:[#allocation29_spill] sm:$0xff] %v6607_v0  ;;  %897 = vst.msk [vmem:[#allocation2 + $0xe8] sm:$0xf] %vm311_vm3, %v850_v18  ;;  %v1088_v14 = vor.u32 %v1086_v2, %v1084_v32  ;;  %v8850_v18 = vmax.f32 %v6607_v0, 0.0  ;;  %v6628_v19 = vadd.f32 %v6284_v21, %v761_v52 }
 0x129   : > { %8927 = vst [vmem:[#allocation30_spill] sm:$0xff] %v6615_v48  ;;  %v1085_v16 = vsel %vm938_vm6, %v1080_v30, %v1084_v32  ;;  %v6618_v43 = vld [vmem:[#allocation2 + $0xb0] sm:$0xff]  ;;  %v1100_v33 = vsel %vm938_vm6, %v1095_v35, %v1099_v63  ;;  %v1101_v30 = vshrl.u32 %v6579_v20, 16  ;;  %v8847_v2 = vmax.f32 %v6615_v48, 0.0  ;;  %1213 = vrot.lane.b32.xlu1 %v1073_v50, %s5979_s21 }
 0x12a   : > { %v6620_v39 = vld [vmem:[#allocation2 + $0xb8] sm:$0xff]  ;;  %894 = vst.msk [vmem:[#allocation2 + $0xd0] sm:$0xf0] %vm330_vm4, %v849_v53  ;;  %8928 = vst [vmem:[#allocation31_spill] sm:$0xff] %v6628_v19  ;;  %1215 = vrot.lane.b32.xlu0 %v1085_v16, %s5979_s21  ;;  %v1105_v32 = vshrl.u32 %v6618_v43, 16  ;;  %v1107_v46 = vshll.u32 %v6618_v43, 16 }
 0x12b   : > { %895 = vst.msk [vmem:[#allocation2 + $0xd8] sm:$0xf] %vm311_vm3, %v849_v53  ;;  %v1112_v53 = vshll.u32 %v6620_v39, 16  ;;  %v8849_v26 = vmax.f32 %v6628_v19, 0.0  ;;  %v1120_v21 = vshrl.u32 %v6609_v17, 16  ;;  %v1122_v24 = vshll.u32 %v6609_v17, 16 }
 0x12c   : > { %v1127_v35 = vshll.u32 %v6622_v34, 16  ;;  %v820_v52 = vpack.c.bf16 %v8847_v2, %v8848_v28  ;;  %v1109_v50 = vrot.slane %v1107_v46, 1  ;;  %v1103_v58 = vor.u32 %v1101_v30, %v1099_v63 }
 0x12d   : > { %v1114_v16 = vrot.slane %v1112_v53, 1  ;;  %v819_v11 = vpack.c.bf16 %v8849_v26, %v8850_v18  ;;  %v1124_v49 = vrot.slane %v1122_v24, 1  ;;  %1217 = vrot.lane.b32.xlu1 %v1088_v14, %s5979_s21  ;;  %v1116_v5 = vshrl.u32 %v6620_v39, 16 }
 0x12e   : > { %v852_v12 = vrot.slane %v820_v52, 4  ;;  %1219 = vrot.lane.b32.xlu0 %v1100_v33, %s5979_s21  ;;  %v1110_v13 = vor.u32 %v1109_v50, %v1105_v32  ;;  %v1129_v2 = vrot.slane %v1127_v35, 1  ;;  %v6653_v46 = vld [vmem:[#allocation2 + $0xe0] sm:$0xff] }
 0x12f   : > { %v851_v51 = vrot.slane %v819_v11, 4  ;;  %v1125_v48 = vor.u32 %v1124_v49, %v1120_v21  ;;  %v6655_v53 = vld [vmem:[#allocation2 + $0xe8] sm:$0xff]  ;;  %v1152_v63 = vshll.u32 %v6653_v46, 16  ;;  %v1150_v32 = vshrl.u32 %v6653_v46, 16 }
 0x130   : > { %900 = vst.msk [vmem:[#allocation2 + $0x100] sm:$0xf0] %vm330_vm4, %v852_v12  ;;  %v1115_v24 = vsel %vm938_vm6, %v1110_v13, %v1114_v16  ;;  %v1118_v13 = vor.u32 %v1116_v5, %v1114_v16  ;;  %v1157_v35 = vshll.u32 %v6655_v53, 16 }
 0x131   : > { %901 = vst.msk [vmem:[#allocation2 + $0x108] sm:$0xf] %vm311_vm3, %v852_v12  ;;  %v6660_v33 = vld [vmem:[#allocation2 + $0xd0] sm:$0xff]  ;;  %899 = vst.msk [vmem:[#allocation2 + $0xf8] sm:$0xf] %vm311_vm3, %v851_v51  ;;  %v1131_v12 = vshrl.u32 %v6622_v34, 16  ;;  %1221 = vrot.lane.b32.xlu1 %v1103_v58, %s5979_s21 }
 0x132   : > { %v6662_v14 = vld [vmem:[#allocation2 + $0xd8] sm:$0xff]  ;;  %898 = vst.msk [vmem:[#allocation2 + $0xf0] sm:$0xf0] %vm330_vm4, %v851_v51  ;;  %v1135_v49 = vshrl.u32 %v6660_v33, 16  ;;  %v1137_v11 = vshll.u32 %v6660_v33, 16  ;;  %1223 = vrot.lane.b32.xlu0 %v1115_v24, %s5979_s21  ;;  %v1154_v21 = vrot.slane %v1152_v63, 1  ;;  %v1130_v51 = vsel %vm938_vm6, %v1125_v48, %v1129_v2 }
 0x133   : > { %v1142_v30 = vshll.u32 %v6662_v14, 16  ;;  %v1133_v26 = vor.u32 %v1131_v12, %v1129_v2  ;;  %v1159_v24 = vrot.slane %v1157_v35, 1  ;;  %v1146_v58 = vshrl.u32 %v6662_v14, 16 }
 0x134   : > { %v1139_v52 = vrot.slane %v1137_v11, 1  ;;  %v1155_v18 = vor.u32 %v1154_v21, %v1150_v32 }
 0x135   : > { %v1144_v50 = vrot.slane %v1142_v30, 1  ;;  %1225 = vrot.lane.b32.xlu1 %v1118_v13, %s5979_s21  ;;  %v1161_v13 = vshrl.u32 %v6655_v53, 16 }
 0x136   : > { %v1140_v28 = vor.u32 %v1139_v52, %v1135_v49  ;;  %1227 = vrot.lane.b32.xlu0 %v1130_v51, %s5979_s21 }
 0x137   : > { %v6680_v16 = vld [vmem:[#allocation2 + $0x100] sm:$0xff]  ;;  %v1148_v12 = vor.u32 %v1146_v58, %v1144_v50  ;;  %v1163_v37 = vor.u32 %v1161_v13, %v1159_v24 }
 0x138   : > { %v1145_v5 = vsel %vm938_vm6, %v1140_v28, %v1144_v50  ;;  %v6684_v19 = vld [vmem:[#allocation2 + $0xf8] sm:$0xff]  ;;  %v935_v48 = vld [vmem:[#allocation2 + $0x108] sm:$0xff]  ;;  %v1920_v49 = vshll.u32 %v6680_v16, 16  ;;  %v1160_v28 = vsel %vm938_vm6, %v1155_v18, %v1159_v24  ;;  %v1918_v32 = vshrl.u32 %v6680_v16, 16 }
 0x139   : > { %v6682_v63 = vld [vmem:[#allocation2 + $0xf0] sm:$0xff]  ;;  %v1172_v2 = vshll.u32 %v6684_v19, 16  ;;  %1229 = vrot.lane.b32.xlu1 %v1133_v26, %s5979_s21  ;;  %v1925_v52 = vshll.u32 %v935_v48, 16  ;;  %v1282_v24 = vrot.slane %v6345_v59, 1 }
 0x13a   : > { %v1165_v11 = vshrl.u32 %v6682_v63, 16  ;;  %v1167_v30 = vshll.u32 %v6682_v63, 16  ;;  %1231 = vrot.lane.b32.xlu0 %v1145_v5, %s5979_s21  ;;  %v1922_v51 = vrot.slane %v1920_v49, 1  ;;  %v1176_v5 = vshrl.u32 %v6684_v19, 16 }
 0x13b   : > { %v1174_v35 = vrot.slane %v1172_v2, 1  ;;  %v1927_v50 = vrot.slane %v1925_v52, 1 }
 0x13c   : > { %v1169_v21 = vrot.slane %v1167_v30, 1  ;;  %v1923_v18 = vor.u32 %v1922_v51, %v1918_v32  ;;  %v1929_v30 = vshrl.u32 %v935_v48, 16 }
 0x13d   : > { %1233 = vrot.lane.b32.xlu1 %v1148_v12, %s5979_s21  ;;  %v1178_v58 = vor.u32 %v1176_v5, %v1174_v35 }
 0x13e   : > { %v1170_v0 = vor.u32 %v1169_v21, %v1165_v11  ;;  %1235 = vrot.lane.b32.xlu0 %v1160_v28, %s5979_s21  ;;  %v1928_v49 = vsel %vm938_vm6, %v1923_v18, %v1927_v50  ;;  %v1931_v11 = vor.u32 %v1929_v30, %v1927_v50  ;;  %v1285_v21 = vrot.slane %v6409_v9, 1 }
 0x140   : > { %v1175_v26 = vsel %vm938_vm6, %v1170_v0, %v1174_v35  ;;  %v1283_v0 = vrot.slane %v6347_v60, 1  ;;  %v1286_v35 = vrot.slane %v6411_v10, 1 }
 0x141   : > { %1237 = vrot.lane.b32.xlu1 %v1163_v37, %s5979_s21 }
 0x142   : > { %1239 = vrot.lane.b32.xlu0 %v1175_v26, %s5979_s21  ;;  %v1284_v2 = vsel %vm1275_vm7, %v1282_v24, %v1283_v0  ;;  %v1477_v13 = vshrl.u32 %v1283_v0, 16  ;;  %v1480_v48 = vshll.u32 %v1283_v0, 16 }
 0x143   : > { %v1469_v12 = vshrl.u32 %v1284_v2, 16  ;;  %v1472_v37 = vshll.u32 %v1284_v2, 16 }
 0x144   : > { %v1479_v50 = vrot.slane %v1477_v13, 3 }
 0x145   : > { %1241 = vrot.lane.b32.xlu1 %v1178_v58, %s5979_s21  ;;  %v1471_v26 = vrot.slane %v1469_v12, 3  ;;  %v1474_v18 = vrot.slane %v1472_v37, 4  ;;  %v1482_v58 = vrot.slane %v1480_v48, 4  ;;  %v1288_v12 = vrot.slane %v6435_v42, 1 }
 0x146   : > { %1932 = vrot.lane.b32.xlu0 %v1928_v49, %s5979_s21 }
 0x147   : > { %v1475_v8 = vor.u32 %v1474_v18, %v1471_v26  ;;  %v1483_v62 = vor.u32 %v1482_v58, %v1479_v50  ;;  %v5875_v58 = vld [vmem:[%s8797_s4 + $0xc0] sm:$0xff]  }
 0x149   : > { %1934 = vrot.lane.b32.xlu1 %v1931_v11, %s5979_s21  ;;  %v6722_v50 = vsel %vm1388_vm8, %v1475_v8, %v1483_v62 }
 0x178   : > { %v1188_v51 = vpop.permute.xlu0 %1187 }
 0x179   : > { %v1333_v49 = vsel %vm305_vm2, %v6345_v59, %v1188_v51  ;;  %v1512_v51 = vshll.u32 %v1286_v35, 16 }
 0x17a   : > { %v1184_v28 = vpop.permute.xlu1 %1183  ;;  %v1453_v59 = vshrl.u32 %v1333_v49, 16 }
 0x17b   : > { %v1329_v32 = vsel %vm305_vm2, %v6357_v3, %v1184_v28  ;;  %v1287_v3 = vsel %vm1275_vm7, %v1285_v21, %v1286_v35  ;;  %v1289_v21 = vrot.slane %v6441_v55, 1  ;;  %v1514_v62 = vrot.slane %v1512_v51, 4 }
 0x17c   : > { %v1421_v52 = vshrl.u32 %v1329_v32, 16  ;;  %v1424_v5 = vshll.u32 %v1329_v32, 16  ;;  %v1509_v32 = vshrl.u32 %v1286_v35, 16  ;;  %v1501_v57 = vshrl.u32 %v1287_v3, 16 }
 0x17d   : > { %v1504_v54 = vshll.u32 %v1287_v3, 16  ;;  %v1455_v8 = vrot.slane %v1453_v59, 3 }
 0x17e   : > { %v1423_v24 = vrot.slane %v1421_v52, 3  ;;  %v1426_v0 = vrot.slane %v1424_v5, 4  ;;  %v1456_v52 = vshll.u32 %v1333_v49, 16  ;;  %v1503_v35 = vrot.slane %v1501_v57, 3 }
 0x17f   : > { %v1186_v30 = vpop.permute.xlu1 %1185 }
 0x180   : > { %v1331_v11 = vsel %vm305_vm2, %v6359_v4, %v1186_v30  ;;  %v1427_v5 = vor.u32 %v1426_v0, %v1423_v24  ;;  %v1506_v24 = vrot.slane %v1504_v54, 4  ;;  %v1458_v0 = vrot.slane %v1456_v52, 4  ;;  %v5876_v54 = vld [vmem:[%s8797_s4 + $0xc8] sm:$0xff]  }
 0x181   : > { %v1428_v2 = vshrl.u32 %v1331_v11, 16  ;;  %v1431_v28 = vshll.u32 %v1331_v11, 16  ;;  %v1544_v52 = vshll.u32 %v1289_v21, 16 }
 0x183   : > { %v1430_v37 = vrot.slane %v1428_v2, 3  ;;  %v1433_v13 = vrot.slane %v1431_v28, 4  ;;  %v1190_v48 = vpop.permute.xlu1 %1189  ;;  %v1192_v11 = vpop.permute.xlu0 %1191  ;;  %v1511_v28 = vrot.slane %v1509_v32, 3  ;;  %v1541_v32 = vshrl.u32 %v1289_v21, 16 }
 0x184   : > { %v1335_v4 = vsel %vm305_vm2, %v6347_v60, %v1190_v48  ;;  %v1337_v57 = vsel %vm305_vm2, %v6409_v9, %v1192_v11 }
 0x185   : > { %v1434_v30 = vor.u32 %v1433_v13, %v1430_v37  ;;  %v1460_v26 = vshrl.u32 %v1335_v4, 16  ;;  %v1463_v18 = vshll.u32 %v1335_v4, 16  ;;  %v1290_v37 = vsel %vm1275_vm7, %v1288_v12, %v1289_v21 }
 0x186   : > { %v1292_v13 = vrot.slane %v6467_v45, 1  ;;  %v1507_v12 = vor.u32 %v1506_v24, %v1503_v35  ;;  %v1536_v9 = vshll.u32 %v1290_v37, 16  ;;  %v1485_v11 = vshrl.u32 %v1337_v57, 16 }
 0x187   : > { %v1462_v3 = vrot.slane %v1460_v26, 3  ;;  %v1194_v2 = vpop.permute.xlu1 %1193  ;;  %v1435_v60 = vsel %vm1388_vm8, %v1427_v5, %v1434_v30  ;;  %v1465_v48 = vrot.slane %v1463_v18, 4  ;;  %v8929_v5 = vmov 0  }
 0x188   : > { %v1339_v49 = vsel %vm305_vm2, %v6411_v10, %v1194_v2  ;;  %2131 = vmatmul.mubr.bf16.vlgmr.msra.gmra.mrb[0].mxu1 %v1435_v60  ;;  %2375 = vmatmul.mubr.bf16.gmra.mrb[36].mxu0 %v1435_v60  ;;  %v1291_v10 = vrot.slane %v6465_v40, 1  ;;  %v1515_v30 = vor.u32 %v1514_v62, %v1511_v28  ;;  %v1533_v26 = vshrl.u32 %v1290_v37, 16 }
 0x189   : > { %5530 = vmatprep.mubr.msk.bf16.mxu1 %vm305_vm2, %v6722_v50  ;;  %5559 = vmatprep.mubr.msk.bf16.mxu0 %vm305_vm2, %v6722_v50  ;;  %v1466_v59 = vor.u32 %v1465_v48, %v1462_v3  ;;  %v1492_v4 = vshrl.u32 %v1339_v49, 16  ;;  %v1495_v51 = vshll.u32 %v1339_v49, 16  ;;  %v1459_v18 = vor.u32 %v1458_v0, %v1455_v8  ;;  %v5877_v3 = vld [vmem:[%s8797_s4 + $0xd0] sm:$0xff]   ;;  %v1196_v48 = vpop.permute.xlu0 %1195 }
 0x18a   : > { %2632 = vmatpush1.bf16.msra.mxu1 %v5875_v58  ;;  %v1488_v2 = vshll.u32 %v1337_v57, 16  ;;  %v1543_v47 = vrot.slane %v1541_v32, 3  ;;  %v1293_v58 = vsel %vm1275_vm7, %v1291_v10, %v1292_v13  ;;  %v1546_v28 = vrot.slane %v1544_v52, 4 }
 0x18b   : > { %2633 = vmatprep.subr.bf16.mxu1 %v8929_v5  ;;  %v1198_v60 = vpop.permute.xlu1 %1197  ;;  %v1494_v21 = vrot.slane %v1492_v4, 3  ;;  %v1497_v49 = vrot.slane %v1495_v51, 4  ;;  %v6748_v35 = vsel %vm1388_vm8, %v1459_v18, %v1466_v59  ;;  %v6756_v62 = vsel %vm1388_vm8, %v1507_v12, %v1515_v30  ;;  %v5878_v4 = vld [vmem:[%s8797_s4 + $0xd8] sm:$0xff]  }
 0x18c   : > { %v1343_v24 = vsel %vm305_vm2, %v6441_v55, %v1198_v60  ;;  %v1535_v8 = vrot.slane %v1533_v26, 3  ;;  %v1538_v0 = vrot.slane %v1536_v9, 4  ;;  %v1487_v37 = vrot.slane %v1485_v11, 3 }
 0x18d   : > { %v1490_v57 = vrot.slane %v1488_v2, 4  ;;  %v1565_v32 = vshrl.u32 %v1293_v58, 16  ;;  %v1341_v55 = vsel %vm305_vm2, %v6435_v42, %v1196_v48  ;;  %v1568_v10 = vshll.u32 %v1293_v58, 16 }
 0x18e   : > { %2634 = vmatpush1.bf16.msra.mxu1 %v5876_v54  ;;  %v1573_v54 = vshrl.u32 %v1292_v13, 16  ;;  %v1576_v59 = vshll.u32 %v1292_v13, 16  ;;  %v1498_v51 = vor.u32 %v1497_v49, %v1494_v21  ;;  %v1524_v52 = vshrl.u32 %v1343_v24, 16  ;;  %v5879_v21 = vld [vmem:[%s8797_s4 + $0xe0] sm:$0xff]   ;;  %v1200_v49 = vpop.permute.xlu0 %1199 }
 0x18f   : > { %2635 = vmatprep.subr.bf16.mxu1 %v8929_v5  ;;  %v1527_v12 = vshll.u32 %v1343_v24, 16  ;;  %v1539_v30 = vor.u32 %v1538_v0, %v1535_v8  ;;  %v1547_v26 = vor.u32 %v1546_v28, %v1543_v47  ;;  %v1294_v9 = vrot.slane %v6476_v22, 1  ;;  %v1202_v2 = vpop.permute.xlu1 %1201 }
 0x190   : > { %2139 = vmatmul.mubr.bf16.gmra.mrb[4].mxu1 %v6748_v35  ;;  %2383 = vmatmul.mubr.bf16.gmra.mrb[40].mxu0 %v6748_v35  ;;  %v1491_v18 = vor.u32 %v1490_v57, %v1487_v37  ;;  %v1517_v11 = vshrl.u32 %v1341_v55, 16  ;;  %v1520_v42 = vshll.u32 %v1341_v55, 16  ;;  %v1295_v13 = vrot.slane %v6490_v56, 1 }
 0x191   : > { %5531 = vmatprep.mubr.msk.bf16.mxu1 %vm305_vm2, %v6756_v62  ;;  %5560 = vmatprep.mubr.msk.bf16.mxu0 %vm305_vm2, %v6756_v62  ;;  %v1567_v60 = vrot.slane %v1565_v32, 3  ;;  %v1570_v58 = vrot.slane %v1568_v10, 4  ;;  %v1578_v48 = vrot.slane %v1576_v59, 4  ;;  %v1526_v24 = vrot.slane %v1524_v52, 3 }
 0x192   : > { %2636 = vmatpush1.bf16.msra.mxu1 %v5877_v3  ;;  %v1575_v3 = vrot.slane %v1573_v54, 3  ;;  %v1529_v47 = vrot.slane %v1527_v12, 4  ;;  %v6774_v28 = vsel %vm1388_vm8, %v1491_v18, %v1498_v51  ;;  %v1347_v8 = vsel %vm305_vm2, %v6467_v45, %v1202_v2 }
 0x193   : > { %2637 = vmatprep.subr.bf16.mxu1 %v8929_v5  ;;  %v6782_v0 = vsel %vm1388_vm8, %v1539_v30, %v1547_v26  ;;  %v1519_v37 = vrot.slane %v1517_v11, 3  ;;  %v1522_v57 = vrot.slane %v1520_v42, 4  ;;  %v1296_v32 = vsel %vm1275_vm7, %v1294_v9, %v1295_v13  ;;  %v1206_v2 = vpop.permute.xlu1 %1205 }
 0x194   : > { %v1297_v55 = vrot.slane %v6515_v15, 1  ;;  %v1345_v45 = vsel %vm305_vm2, %v6465_v40, %v1200_v49  ;;  %v1571_v10 = vor.u32 %v1570_v58, %v1567_v60  ;;  %v1579_v54 = vor.u32 %v1578_v48, %v1575_v3 }
 0x195   : > { %v6793_v59 = vrot.slane %v6517_v6, 1  ;;  %v1530_v51 = vor.u32 %v1529_v47, %v1526_v24  ;;  %v1556_v52 = vshrl.u32 %v1347_v8, 16  ;;  %v1559_v12 = vshll.u32 %v1347_v8, 16 }
 0x196   : > { %2638 = vmatpush1.bf16.msra.mxu1 %v5878_v4  ;;  %v5880_v4 = vld [vmem:[%s8797_s4 + $0xe8] sm:$0xff]   ;;  %v1605_v30 = vshrl.u32 %v1295_v13, 16  ;;  %v1597_v26 = vshrl.u32 %v1296_v32, 16  ;;  %v1600_v9 = vshll.u32 %v1296_v32, 16  ;;  %v1608_v18 = vshll.u32 %v1295_v13, 16  ;;  %v5881_v13 = vld [vmem:[%s8797_s4 + $0xf0] sm:$0xff]  }
 0x197   : > { %2639 = vmatprep.subr.bf16.mxu1 %v8929_v5  ;;  %v1523_v40 = vor.u32 %v1522_v57, %v1519_v37  ;;  %v1549_v11 = vshrl.u32 %v1345_v45, 16  ;;  %v1552_v42 = vshll.u32 %v1345_v45, 16  ;;  %v6800_v60 = vsel %vm1388_vm8, %v1571_v10, %v1579_v54 }
 0x198   : > { %2147 = vmatmul.mubr.bf16.gmra.mrb[8].mxu1 %v6774_v28  ;;  %2391 = vmatmul.mubr.bf16.gmra.mrb[44].mxu0 %v6774_v28  ;;  %v1299_v58 = vsel %vm1275_vm7, %v1297_v55, %v6793_v59  ;;  %v1300_v3 = vrot.slane %v6526_v36, 1  ;;  %v6806_v48 = vrot.slane %v6533_v1, 1  ;;  %v1558_v49 = vrot.slane %v1556_v52, 3  ;;  %v5882_v52 = vld [vmem:[%s8797_s4 + $0xf8] sm:$0xff]  }
 0x199   : > { %5532 = vmatprep.mubr.msk.bf16.mxu1 %vm305_vm2, %v6782_v0  ;;  %5561 = vmatprep.mubr.msk.bf16.mxu0 %vm305_vm2, %v6782_v0  ;;  %v1561_v24 = vrot.slane %v1559_v12, 4  ;;  %v6812_v47 = vsel %vm1388_vm8, %v1523_v40, %v1530_v51  ;;  %v1607_v8 = vrot.slane %v1605_v30, 3  ;;  %v1351_v37 = vsel %vm305_vm2, %v6490_v56, %v1206_v2 }
 0x19a   : > { %2640 = vmatpush1.bf16.msra.mxu1 %v5879_v21  ;;  %v1204_v21 = vpop.permute.xlu0 %1203  ;;  %v1599_v57 = vrot.slane %v1597_v26, 3  ;;  %v1602_v32 = vrot.slane %v1600_v9, 4  ;;  %v1610_v55 = vrot.slane %v1608_v18, 4  ;;  %v1551_v45 = vrot.slane %v1549_v11, 3 }
 0x19b   : > { %2641 = vmatprep.subr.bf16.mxu1 %v8929_v5  ;;  %v1554_v10 = vrot.slane %v1552_v42, 4  ;;  %v1349_v54 = vsel %vm305_vm2, %v6476_v22, %v1204_v21  ;;  %v1632_v56 = vshll.u32 %v1299_v58, 16  ;;  %v1637_v51 = vshrl.u32 %v6793_v59, 16 }
 0x19c   : > { %v1562_v12 = vor.u32 %v1561_v24, %v1558_v49  ;;  %v1588_v30 = vshrl.u32 %v1351_v37, 16  ;;  %v1591_v26 = vshll.u32 %v1351_v37, 16  ;;  %v1603_v9 = vor.u32 %v1602_v32, %v1599_v57  ;;  %v5883_v49 = vld [vmem:[%s8797_s4 + $0x100] sm:$0xff]  }
 0x19d   : > { %v1611_v18 = vor.u32 %v1610_v55, %v1607_v8  ;;  %v1640_v40 = vshll.u32 %v6793_v59, 16  ;;  %v1302_v22 = vsel %vm1275_vm7, %v1300_v3, %v6806_v48  ;;  %v1555_v11 = vor.u32 %v1554_v10, %v1551_v45 }
 0x19e   : > { %2642 = vmatpush1.bf16.msra.mxu1 %v5880_v4  ;;  %v1629_v4 = vshrl.u32 %v1299_v58, 16  ;;  %v1581_v42 = vshrl.u32 %v1349_v54, 16  ;;  %v1584_v2 = vshll.u32 %v1349_v54, 16  ;;  %v1210_v58 = vpop.permute.xlu1 %1209  ;;  %v1634_v21 = vrot.slane %v1632_v56, 4  ;;  %v1208_v24 = vpop.permute.xlu0 %1207 }
 0x19f   : > { %2643 = vmatprep.subr.bf16.mxu1 %v8929_v5  ;;  %v1639_v44 = vrot.slane %v1637_v51, 3  ;;  %v1590_v37 = vrot.slane %v1588_v30, 3  ;;  %v1593_v8 = vrot.slane %v1591_v26, 4  ;;  %v6837_v59 = vsel %vm1388_vm8, %v1555_v11, %v1562_v12  ;;  %v5884_v51 = vld [vmem:[%s8797_s4 + $0x108] sm:$0xff]  }
 0x1a0   : > { %2155 = vmatmul.mubr.bf16.gmra.mrb[12].mxu1 %v6812_v47  ;;  %2399 = vmatmul.mubr.bf16.gmra.mrb[48].mxu0 %v6812_v47  ;;  %v1661_v57 = vshrl.u32 %v1302_v22, 16  ;;  %v1355_v3 = vsel %vm305_vm2, %v6517_v6, %v1210_v58  ;;  %v6845_v32 = vsel %vm1388_vm8, %v1603_v9, %v1611_v18  ;;  %v1642_v55 = vrot.slane %v1640_v40, 4 }
 0x1a1   : > { %5533 = vmatprep.mubr.msk.bf16.mxu1 %vm305_vm2, %v6800_v60  ;;  %5562 = vmatprep.mubr.msk.bf16.mxu0 %vm305_vm2, %v6800_v60  ;;  %v1664_v45 = vshll.u32 %v1302_v22, 16  ;;  %v1583_v10 = vrot.slane %v1581_v42, 3  ;;  %v1586_v54 = vrot.slane %v1584_v2, 4  ;;  %v1353_v6 = vsel %vm305_vm2, %v6515_v15, %v1208_v24  ;;  %v5887_v24 = vld [vmem:[%s8797_s4 + $0x110] sm:$0xff]  }
 0x1a2   : > { %2644 = vmatpush1.bf16.msra.mxu1 %v5881_v13  ;;  %v1631_v13 = vrot.slane %v1629_v4, 3  ;;  %v1669_v4 = vshrl.u32 %v6806_v48, 16  ;;  %v1672_v56 = vshll.u32 %v6806_v48, 16  ;;  %v1620_v12 = vshrl.u32 %v1355_v3, 16  ;;  %v1214_v48 = vpop.permute.xlu1 %1213 }
 0x1a3   : > { %2645 = vmatprep.subr.bf16.mxu1 %v8929_v5  ;;  %v1623_v30 = vshll.u32 %v1355_v3, 16  ;;  %v1303_v26 = vrot.slane %v6566_v7, 1  ;;  %v1643_v18 = vor.u32 %v1642_v55, %v1639_v44  ;;  %v1663_v40 = vrot.slane %v1661_v57, 3 }
 0x1a4   : > { %v1635_v9 = vor.u32 %v1634_v21, %v1631_v13  ;;  %v1666_v15 = vrot.slane %v1664_v45, 4  ;;  %v1587_v22 = vor.u32 %v1586_v54, %v1583_v10  ;;  %v1613_v11 = vshrl.u32 %v1353_v6, 16 }
 0x1a5   : > { %v1616_v42 = vshll.u32 %v1353_v6, 16  ;;  %v1304_v2 = vrot.slane %v6568_v61, 1  ;;  %v1671_v58 = vrot.slane %v1669_v4, 3  ;;  %v1625_v3 = vrot.slane %v1623_v30, 4 }
 0x1a6   : > { %2646 = vmatpush1.bf16.msra.mxu1 %v5882_v52  ;;  %v1594_v52 = vor.u32 %v1593_v8, %v1590_v37  ;;  %v1212_v37 = vpop.permute.xlu0 %1211  ;;  %v1622_v8 = vrot.slane %v1620_v12, 3  ;;  %v1359_v13 = vsel %vm305_vm2, %v6533_v1, %v1214_v48  ;;  %v6873_v21 = vsel %vm1388_vm8, %v1635_v9, %v1643_v18 }
 0x1a7   : > { %2647 = vmatprep.subr.bf16.mxu1 %v8929_v5  ;;  %v1615_v57 = vrot.slane %v1613_v11, 3  ;;  %v1618_v55 = vrot.slane %v1616_v42, 4  ;;  %v1667_v45 = vor.u32 %v1666_v15, %v1663_v40  ;;  %v1305_v10 = vsel %vm1275_vm7, %v1303_v26, %v1304_v2 }
 0x1a8   : > { %2163 = vmatmul.mubr.bf16.gmra.mrb[16].mxu1 %v6837_v59  ;;  %2407 = vmatmul.mubr.bf16.gmra.mrb[52].mxu0 %v6837_v59  ;;  %v6865_v44 = vsel %vm1388_vm8, %v1587_v22, %v1594_v52  ;;  %v1357_v1 = vsel %vm305_vm2, %v6526_v36, %v1212_v37  ;;  %v1306_v6 = vrot.slane %v6570_v31, 1  ;;  %v1307_v4 = vrot.slane %v6579_v20, 1  ;;  %v1218_v22 = vpop.permute.xlu1 %1217 }
 0x1a9   : > { %5534 = vmatprep.mubr.msk.bf16.mxu1 %vm305_vm2, %v6845_v32  ;;  %5563 = vmatprep.mubr.msk.bf16.mxu0 %vm305_vm2, %v6845_v32  ;;  %v1652_v52 = vshrl.u32 %v1359_v13, 16  ;;  %v1655_v12 = vshll.u32 %v1359_v13, 16  ;;  %v1701_v30 = vshrl.u32 %v1304_v2, 16  ;;  %v1693_v26 = vshrl.u32 %v1305_v10, 16 }
 0x1aa   : > { %2648 = vmatpush1.bf16.msra.mxu1 %v5883_v49  ;;  %v1674_v49 = vrot.slane %v1672_v56, 4  ;;  %v5888_v56 = vld [vmem:[%s8797_s4 + $0x118] sm:$0xff]   ;;  %v1696_v9 = vshll.u32 %v1305_v10, 16  ;;  %v1704_v18 = vshll.u32 %v1304_v2, 16  ;;  %v1619_v36 = vor.u32 %v1618_v55, %v1615_v57  ;;  %v1216_v48 = vpop.permute.xlu0 %1215 }
 0x1ab   : > { %2649 = vmatprep.subr.bf16.mxu1 %v8929_v5  ;;  %v1645_v40 = vshrl.u32 %v1357_v1, 16  ;;  %v1648_v15 = vshll.u32 %v1357_v1, 16  ;;  %v1308_v42 = vsel %vm1275_vm7, %v1306_v6, %v1307_v4  ;;  %v1703_v37 = vrot.slane %v1701_v30, 3 }
 0x1ac   : > { %v1675_v54 = vor.u32 %v1674_v49, %v1671_v58  ;;  %v1654_v58 = vrot.slane %v1652_v52, 3  ;;  %v1657_v49 = vrot.slane %v1655_v12, 4  ;;  %v1363_v2 = vsel %vm305_vm2, %v6568_v61, %v1218_v22 }
 0x1ad   : > { %v1706_v13 = vrot.slane %v1704_v18, 4  ;;  %v1647_v57 = vrot.slane %v1645_v40, 3  ;;  %v1650_v55 = vrot.slane %v1648_v15, 4  ;;  %v1725_v10 = vshrl.u32 %v1308_v42, 16  ;;  %v1222_v40 = vpop.permute.xlu1 %1221 }
 0x1ae   : > { %2650 = vmatpush1.bf16.msra.mxu1 %v5884_v51  ;;  %v1626_v51 = vor.u32 %v1625_v3, %v1622_v8  ;;  %v6889_v11 = vsel %vm1388_vm8, %v1667_v45, %v1675_v54  ;;  %v1695_v8 = vrot.slane %v1693_v26, 3  ;;  %v1698_v3 = vrot.slane %v1696_v9, 4 }
 0x1af   : > { %2651 = vmatprep.subr.bf16.mxu1 %v8929_v5  ;;  %v1361_v45 = vsel %vm305_vm2, %v6566_v7, %v1216_v48  ;;  %v1728_v61 = vshll.u32 %v1308_v42, 16  ;;  %v1309_v1 = vrot.slane %v6618_v43, 1  ;;  %v1658_v54 = vor.u32 %v1657_v49, %v1654_v58  ;;  %v1220_v7 = vpop.permute.xlu0 %1219 }
 0x1b0   : > { %2171 = vmatmul.mubr.bf16.gmra.mrb[20].mxu1 %v6865_v44  ;;  %2415 = vmatmul.mubr.bf16.gmra.mrb[56].mxu0 %v6865_v44  ;;  %v1684_v6 = vshrl.u32 %v1363_v2, 16  ;;  %v1699_v52 = vor.u32 %v1698_v3, %v1695_v8  ;;  %v1707_v12 = vor.u32 %v1706_v13, %v1703_v37  ;;  %v1736_v30 = vshll.u32 %v1307_v4, 16 }
 0x1b1   : > { %5535 = vmatprep.mubr.msk.bf16.mxu1 %vm305_vm2, %v6873_v21  ;;  %5564 = vmatprep.mubr.msk.bf16.mxu0 %vm305_vm2, %v6873_v21  ;;  %v1310_v26 = vrot.slane %v6620_v39, 1  ;;  %v1651_v9 = vor.u32 %v1650_v55, %v1647_v57  ;;  %v1677_v18 = vshrl.u32 %v1361_v45, 16  ;;  %v1727_v15 = vrot.slane %v1725_v10, 3 }
 0x1b2   : > { %2652 = vmatpush1.bf16.msra.mxu1 %v5887_v24  ;;  %v6893_v24 = vsel %vm1388_vm8, %v1619_v36, %v1626_v51  ;;  %v1733_v51 = vshrl.u32 %v1307_v4, 16  ;;  %v1680_v36 = vshll.u32 %v1361_v45, 16  ;;  %v1730_v22 = vrot.slane %v1728_v61, 4 }
 0x1b3   : > { %2653 = vmatprep.subr.bf16.mxu1 %v8929_v5  ;;  %v1686_v48 = vrot.slane %v1684_v6, 3  ;;  %v6909_v41 = vsel %vm1388_vm8, %v1651_v9, %v1658_v54  ;;  %v1367_v49 = vsel %vm305_vm2, %v6579_v20, %v1222_v40  ;;  %v6916_v4 = vsel %vm1388_vm8, %v1699_v52, %v1707_v12 }
 0x1b4   : > { %v1735_v58 = vrot.slane %v1733_v51, 3  ;;  %v1738_v37 = vrot.slane %v1736_v30, 4  ;;  %v1679_v8 = vrot.slane %v1677_v18, 3  ;;  %v1682_v3 = vrot.slane %v1680_v36, 4  ;;  %v1226_v30 = vpop.permute.xlu1 %1225  ;;  %v1224_v36 = vpop.permute.xlu0 %1223 }
 0x1b5   : > { %v1365_v20 = vsel %vm305_vm2, %v6570_v31, %v1220_v7  ;;  %v1765_v13 = vshrl.u32 %v1310_v26, 16  ;;  %v1312_v57 = vrot.slane %v6609_v17, 1  ;;  %v1716_v45 = vshrl.u32 %v1367_v49, 16 }
 0x1b6   : > { %2654 = vmatpush1.bf16.msra.mxu1 %v5888_v56  ;;  %v1687_v56 = vshll.u32 %v1363_v2, 16  ;;  %v1311_v2 = vsel %vm1275_vm7, %v1309_v1, %v1310_v26  ;;  %v1719_v10 = vshll.u32 %v1367_v49, 16  ;;  %v1731_v54 = vor.u32 %v1730_v22, %v1727_v15 }
 0x1b7   : > { %4628 = vmatprep.subr.bf16.mxu1 %v8929_v5  ;;  %v1757_v61 = vshrl.u32 %v1311_v2, 16  ;;  %v1739_v1 = vor.u32 %v1738_v37, %v1735_v58  ;;  %v1760_v6 = vshll.u32 %v1311_v2, 16  ;;  %v1683_v51 = vor.u32 %v1682_v3, %v1679_v8 }
 0x1b8   : > { %2179 = vmatmul.mubr.bf16.gmra.mrb[24].mxu1 %v6893_v24  ;;  %2423 = vmatmul.mubr.bf16.gmra.mrb[60].mxu0 %v6893_v24  ;;  %v1689_v42 = vrot.slane %v1687_v56, 4  ;;  %v1768_v56 = vshll.u32 %v1310_v26, 16  ;;  %v1709_v52 = vshrl.u32 %v1365_v20, 16  ;;  %v1712_v12 = vshll.u32 %v1365_v20, 16  ;;  %v1228_v38 = vpop.permute.xlu0 %1227 }
 0x1b9   : > { %5536 = vmatprep.mubr.msk.bf16.mxu1 %vm305_vm2, %v6889_v11  ;;  %5565 = vmatprep.mubr.msk.bf16.mxu0 %vm305_vm2, %v6889_v11  ;;  %v1313_v9 = vrot.slane %v6622_v34, 1  ;;  %v1767_v18 = vrot.slane %v1765_v13, 3  ;;  %v1718_v31 = vrot.slane %v1716_v45, 3  ;;  %v1721_v40 = vrot.slane %v1719_v10, 4 }
 0x1ba   : > { %v1690_v55 = vor.u32 %v1689_v42, %v1686_v48  ;;  %v1759_v48 = vrot.slane %v1757_v61, 3  ;;  %v1371_v15 = vsel %vm305_vm2, %v6620_v39, %v1226_v30  ;;  %v6935_v26 = vsel %vm1388_vm8, %v1731_v54, %v1739_v1  ;;  %v6942_v39 = vpop.f32.mrb[32].mxu0  ;;  %v1230_v30 = vpop.permute.xlu1 %1229 }
 0x1bb   : > { %v1762_v22 = vrot.slane %v1760_v6, 4  ;;  %v1770_v42 = vrot.slane %v1768_v56, 4  ;;  %v1711_v58 = vrot.slane %v1709_v52, 3  ;;  %v1714_v49 = vrot.slane %v1712_v12, 4  ;;  %v2370_v13 = vpop.f32.mrb[33].mxu0 }
 0x1bc   : > { %v6928_v7 = vsel %vm1388_vm8, %v1683_v51, %v1690_v55  ;;  %v1314_v37 = vsel %vm1275_vm7, %v1312_v57, %v1313_v9  ;;  %v1369_v2 = vsel %vm305_vm2, %v6618_v43, %v1224_v36  ;;  %v1797_v8 = vshrl.u32 %v1313_v9, 16  ;;  %v6948_v54 = vpop.f32.mrb[34].mxu0 }
 0x1bd   : > { %v1800_v3 = vshll.u32 %v1313_v9, 16  ;;  %v1315_v20 = vrot.slane %v6660_v33, 1  ;;  %v1722_v55 = vor.u32 %v1721_v40, %v1718_v31  ;;  %v1748_v45 = vshrl.u32 %v1371_v15, 16  ;;  %v2373_v51 = vpop.f32.mrb[35].mxu0 }
 0x1be   : > { %v1751_v10 = vshll.u32 %v1371_v15, 16  ;;  %v1316_v61 = vrot.slane %v6662_v14, 1  ;;  %v1763_v1 = vor.u32 %v1762_v22, %v1759_v48  ;;  %v1771_v6 = vor.u32 %v1770_v42, %v1767_v18 }
 0x1bf   : > { %v1789_v57 = vshrl.u32 %v1314_v37, 16  ;;  %v1792_v56 = vshll.u32 %v1314_v37, 16  ;;  %v1715_v52 = vor.u32 %v1714_v49, %v1711_v58  ;;  %v1741_v12 = vshrl.u32 %v1369_v2, 16 }
 0x1c0   : > { %2187 = vmatmul.mubr.bf16.gmra.mrb[28].mxu1 %v6909_v41  ;;  %2431 = vmatmul.mubr.bf16.gmra.mrb[64].mxu0 %v6909_v41  ;;  %v1744_v43 = vshll.u32 %v1369_v2, 16  ;;  %v1799_v9 = vrot.slane %v1797_v8, 3  ;;  %v1802_v36 = vrot.slane %v1800_v3, 4  ;;  %v1750_v13 = vrot.slane %v1748_v45, 3 }
 0x1c1   : > { %5537 = vmatprep.mubr.msk.bf16.mxu1 %vm305_vm2, %v6916_v4  ;;  %5566 = vmatprep.mubr.msk.bf16.mxu0 %vm305_vm2, %v6916_v4  ;;  %v1753_v31 = vrot.slane %v1751_v10, 4  ;;  %v6951_v40 = vsel %vm1388_vm8, %v1715_v52, %v1722_v55  ;;  %v1317_v15 = vsel %vm1275_vm7, %v1315_v20, %v1316_v61  ;;  %v1375_v18 = vsel %vm305_vm2, %v6622_v34, %v1230_v30  ;;  %v1234_v52 = vpop.permute.xlu1 %1233  ;;  %v1232_v30 = vpop.permute.xlu0 %1231 }
 0x1c2   : > { %v6959_v48 = vsel %vm1388_vm8, %v1763_v1, %v1771_v6  ;;  %v1791_v22 = vrot.slane %v1789_v57, 3  ;;  %v1794_v42 = vrot.slane %v1792_v56, 4  ;;  %v1743_v58 = vrot.slane %v1741_v12, 3 }
 0x1c3   : > { %v1746_v49 = vrot.slane %v1744_v43, 4  ;;  %v1373_v34 = vsel %vm305_vm2, %v6609_v17, %v1228_v38  ;;  %v1821_v37 = vshrl.u32 %v1317_v15, 16  ;;  %v1829_v2 = vshrl.u32 %v1316_v61, 16 }
 0x1c4   : > { %v1754_v8 = vor.u32 %v1753_v31, %v1750_v13  ;;  %v1780_v3 = vshrl.u32 %v1375_v18, 16  ;;  %v1783_v20 = vshll.u32 %v1375_v18, 16  ;;  %v1803_v55 = vor.u32 %v1802_v36, %v1799_v9 }
 0x1c5   : > { %v1795_v45 = vor.u32 %v1794_v42, %v1791_v22  ;;  %v1824_v10 = vshll.u32 %v1317_v15, 16  ;;  %v1832_v1 = vshll.u32 %v1316_v61, 16  ;;  %v1318_v6 = vrot.slane %v6653_v46, 1 }
 0x1c6   : > { %v1747_v57 = vor.u32 %v1746_v49, %v1743_v58  ;;  %v1773_v56 = vshrl.u32 %v1373_v34, 16  ;;  %v1776_v51 = vshll.u32 %v1373_v34, 16  ;;  %v1319_v12 = vrot.slane %v6655_v53, 1 }
 0x1c7   : > { %v1831_v43 = vrot.slane %v1829_v2, 3  ;;  %v1782_v38 = vrot.slane %v1780_v3, 3  ;;  %v1785_v17 = vrot.slane %v1783_v20, 4  ;;  %v1823_v31 = vrot.slane %v1821_v37, 3 }
 0x1c8   : > { %2195 = vmatmul.mubr.bf16.gmra.mrb[32].mxu1 %v6928_v7  ;;  %2439 = vmatmul.mubr.bf16.gmra.mrb[68].mxu0 %v6928_v7  ;;  %v6970_v13 = vsel %vm1388_vm8, %v1747_v57, %v1754_v8  ;;  %v1379_v9 = vsel %vm305_vm2, %v6662_v14, %v1234_v52  ;;  %v6977_v46 = vsel %vm1388_vm8, %v1795_v45, %v1803_v55  ;;  %v1826_v61 = vrot.slane %v1824_v10, 4 }
 0x1c9   : > { %5538 = vmatprep.mubr.msk.bf16.mxu1 %vm305_vm2, %v6935_v26  ;;  %5567 = vmatprep.mubr.msk.bf16.mxu0 %vm305_vm2, %v6935_v26  ;;  %v1834_v53 = vrot.slane %v1832_v1, 4  ;;  %v1775_v36 = vrot.slane %v1773_v56, 3  ;;  %v1778_v15 = vrot.slane %v1776_v51, 4  ;;  %v1320_v18 = vsel %vm1275_vm7, %v1318_v6, %v1319_v12  ;;  %v1238_v6 = vpop.permute.xlu1 %1237 }
 0x1ca   : > { %v1377_v14 = vsel %vm305_vm2, %v6660_v33, %v1232_v30  ;;  %v1861_v22 = vshrl.u32 %v1319_v12, 16  ;;  %v1864_v42 = vshll.u32 %v1319_v12, 16  ;;  %v1321_v58 = vrot.slane %v6682_v63, 1  ;;  %v1236_v33 = vpop.permute.xlu0 %1235  ;;  %v5903_v30 = vld [vmem:[#allocation2 + $0xe8] sm:$0xff] }
 0x1cb   : > { %v1786_v49 = vor.u32 %v1785_v17, %v1782_v38  ;;  %v1812_v34 = vshrl.u32 %v1379_v9, 16  ;;  %v1815_v37 = vshll.u32 %v1379_v9, 16  ;;  %v1322_v2 = vrot.slane %v6684_v19, 1 }
 0x1cc   : > { %v1827_v8 = vor.u32 %v1826_v61, %v1823_v31  ;;  %v1835_v3 = vor.u32 %v1834_v53, %v1831_v43  ;;  %v1853_v20 = vshrl.u32 %v1320_v18, 16  ;;  %v1856_v55 = vshll.u32 %v1320_v18, 16  ;;  %v5904_v61 = vld [vmem:[#allocation2 + $0xe0] sm:$0xff] }
 0x1cd   : > { %v1779_v45 = vor.u32 %v1778_v15, %v1775_v36  ;;  %v1805_v10 = vshrl.u32 %v1377_v14, 16  ;;  %v1808_v1 = vshll.u32 %v1377_v14, 16  ;;  %v1863_v57 = vrot.slane %v1861_v22, 3 }
 0x1ce   : > { %v1866_v56 = vrot.slane %v1864_v42, 4  ;;  %v1814_v51 = vrot.slane %v1812_v34, 3  ;;  %v1817_v52 = vrot.slane %v1815_v37, 4  ;;  %v1323_v12 = vsel %vm1275_vm7, %v1321_v58, %v1322_v2 }
 0x1cf   : > { %v6989_v63 = vsel %vm1388_vm8, %v1779_v45, %v1786_v49  ;;  %v1383_v19 = vsel %vm305_vm2, %v5903_v30, %v1238_v6  ;;  %v6996_v43 = vsel %vm1388_vm8, %v1827_v8, %v1835_v3  ;;  %v1855_v38 = vrot.slane %v1853_v20, 3  ;;  %v5905_v45 = vld [vmem:[#allocation2 + $0x108] sm:$0xff]  ;;  %v1240_v6 = vpop.permute.xlu0 %1239 }
 0x1d0   : > { %2203 = vmatmul.mubr.bf16.gmra.mrb[36].mxu1 %v6951_v40  ;;  %2447 = vmatmul.mubr.bf16.gmra.mrb[72].mxu0 %v6951_v40  ;;  %v1858_v17 = vrot.slane %v1856_v55, 4  ;;  %v1807_v31 = vrot.slane %v1805_v10, 3  ;;  %v1810_v9 = vrot.slane %v1808_v1, 4  ;;  %v1381_v53 = vsel %vm305_vm2, %v5904_v61, %v1236_v33  ;;  %v1242_v55 = vpop.permute.xlu1 %1241 }
 0x1d1   : > { %5539 = vmatprep.mubr.msk.bf16.mxu1 %vm305_vm2, %v6959_v48  ;;  %5568 = vmatprep.mubr.msk.bf16.mxu0 %vm305_vm2, %v6959_v48  ;;  %v1885_v36 = vshrl.u32 %v1323_v12, 16  ;;  %v1893_v15 = vshrl.u32 %v1322_v2, 16  ;;  %v1818_v18 = vor.u32 %v1817_v52, %v1814_v51  ;;  %v1844_v14 = vshrl.u32 %v1383_v19, 16 }
 0x1d2   : > { %v1847_v22 = vshll.u32 %v1383_v19, 16  ;;  %v1867_v42 = vor.u32 %v1866_v56, %v1863_v57  ;;  %v1859_v58 = vor.u32 %v1858_v17, %v1855_v38  ;;  %v1888_v49 = vshll.u32 %v1323_v12, 16  ;;  %v5906_v57 = vld [vmem:[#allocation2 + $0xf8] sm:$0xff] }
 0x1d3   : > { %v1896_v34 = vshll.u32 %v1322_v2, 16  ;;  %v1938_v37 = vrot.slane %v6680_v16, 1  ;;  %v1811_v8 = vor.u32 %v1810_v9, %v1807_v31  ;;  %v1837_v3 = vshrl.u32 %v1381_v53, 16  ;;  %v5907_v31 = vld [vmem:[#allocation2 + $0xf0] sm:$0xff] }
 0x1d4   : > { %v1840_v20 = vshll.u32 %v1381_v53, 16  ;;  %v1939_v10 = vrot.slane %v5905_v45, 1  ;;  %v1895_v1 = vrot.slane %v1893_v15, 3  ;;  %v1846_v33 = vrot.slane %v1844_v14, 3 }
 0x1d5   : > { %v1849_v30 = vrot.slane %v1847_v22, 4  ;;  %v7005_v51 = vsel %vm1388_vm8, %v1811_v8, %v1818_v18  ;;  %v1887_v52 = vrot.slane %v1885_v36, 3  ;;  %v1387_v56 = vsel %vm305_vm2, %v5906_v57, %v1242_v55  ;;  %v1933_v55 = vpop.permute.xlu0 %1932 }
 0x1d6   : > { %v7011_v16 = vsel %vm1388_vm8, %v1859_v58, %v1867_v42  ;;  %v1890_v2 = vrot.slane %v1888_v49, 4  ;;  %v1898_v12 = vrot.slane %v1896_v34, 4  ;;  %v1839_v19 = vrot.slane %v1837_v3, 3  ;;  %v1935_v3 = vpop.permute.xlu1 %1934 }
 0x1d7   : > { %v1842_v38 = vrot.slane %v1840_v20, 4  ;;  %v1940_v17 = vsel %vm1275_vm7, %v1938_v37, %v1939_v10  ;;  %v1385_v9 = vsel %vm305_vm2, %v5907_v31, %v1240_v6  ;;  %v1969_v61 = vshrl.u32 %v1939_v10, 16 }
 0x1d8   : > { %2211 = vmatmul.mubr.bf16.gmra.mrb[40].mxu1 %v6970_v13  ;;  %2455 = vmatmul.mubr.bf16.gmra.mrb[76].mxu0 %v6970_v13  ;;  %v1850_v53 = vor.u32 %v1849_v30, %v1846_v33  ;;  %v1876_v36 = vshrl.u32 %v1387_v56, 16  ;;  %v1879_v15 = vshll.u32 %v1387_v56, 16  ;;  %v1972_v18 = vshll.u32 %v1939_v10, 16 }
 0x1d9   : > { %5540 = vmatprep.mubr.msk.bf16.mxu1 %vm305_vm2, %v6977_v46  ;;  %5569 = vmatprep.mubr.msk.bf16.mxu0 %vm305_vm2, %v6977_v46  ;;  %v1891_v14 = vor.u32 %v1890_v2, %v1887_v52  ;;  %v1899_v22 = vor.u32 %v1898_v12, %v1895_v1  ;;  %v1961_v42 = vshrl.u32 %v1940_v17, 16  ;;  %v1964_v58 = vshll.u32 %v1940_v17, 16  ;;  %v5908_v2 = vld [vmem:[#allocation2 + $0x100] sm:$0xff] }
 0x1da   : > { %v1843_v49 = vor.u32 %v1842_v38, %v1839_v19  ;;  %v1869_v34 = vshrl.u32 %v1385_v9, 16  ;;  %v1872_v8 = vshll.u32 %v1385_v9, 16  ;;  %v1971_v20 = vrot.slane %v1969_v61, 3 }
 0x1db   : > { %v1878_v57 = vrot.slane %v1876_v36, 3  ;;  %v1881_v37 = vrot.slane %v1879_v15, 4  ;;  %v1974_v6 = vrot.slane %v1972_v18, 4  ;;  %v1944_v33 = vsel %vm305_vm2, %v5905_v45, %v1935_v3  ;;  %v5885_v36 = vld [vmem:[%s6192_s26] sm:$0xff]   ;;  %v5889_v3 = vld [vmem:[%s6192_s26 + $0x10] sm:$0xff]  }
 0x1dc   : > { %v7020_v29 = vsel %vm1388_vm8, %v1843_v49, %v1850_v53  ;;  %v7026_v10 = vsel %vm1388_vm8, %v1891_v14, %v1899_v22  ;;  %v1963_v1 = vrot.slane %v1961_v42, 3  ;;  %v1966_v30 = vrot.slane %v1964_v58, 4 }
 0x1dd   : > { %v1871_v52 = vrot.slane %v1869_v34, 3  ;;  %v1874_v56 = vrot.slane %v1872_v8, 4  ;;  %v1942_v45 = vsel %vm305_vm2, %v5908_v2, %v1933_v55  ;;  %v1882_v12 = vor.u32 %v1881_v37, %v1878_v57  ;;  %v5886_v34 = vld [vmem:[%s6192_s26 + $0x8] sm:$0xff]   ;;  %v5909_v55 = vld [vmem:[%s8797_s4 + $0x60] sm:$0xff]   ;;  %v5890_v57 = vld [vmem:[%s6192_s26 + $0x18] sm:$0xff]  }
 0x1de   : > { %v1952_v19 = vshrl.u32 %v1944_v33, 16  ;;  %v1955_v38 = vshll.u32 %v1944_v33, 16  ;;  %v1967_v17 = vor.u32 %v1966_v30, %v1963_v1  ;;  %v1975_v31 = vor.u32 %v1974_v6, %v1971_v20  ;;  %v5891_v37 = vld [vmem:[%s6192_s26 + $0x20] sm:$0xff]   ;;  %v5910_v6 = vld [vmem:[%s8797_s4 + $0x68] sm:$0xff]   ;;  %v5912_v33 = vld [vmem:[%s8797_s4 + $0x70] sm:$0xff]  }
 0x1df   : > { %v1875_v9 = vor.u32 %v1874_v56, %v1871_v52  ;;  %v1945_v61 = vshrl.u32 %v1942_v45, 16  ;;  %v1948_v53 = vshll.u32 %v1942_v45, 16  ;;  %v5893_v1 = vld [vmem:[%s6192_s26 + $0x30] sm:$0xff]   ;;  %v5914_v30 = vld [vmem:[%s8797_s4 + $0x78] sm:$0xff]   ;;  %v5915_v52 = vld [vmem:[%s8797_s4 + $0x80] sm:$0xff]  }
 0x1e0   : > { %2219 = vmatmul.mubr.bf16.gmra.mrb[44].mxu1 %v6989_v63  ;;  %2463 = vmatmul.mubr.bf16.gmra.mrb[80].mxu0 %v6989_v63  ;;  %v1954_v15 = vrot.slane %v1952_v19, 3  ;;  %v1957_v18 = vrot.slane %v1955_v38, 4  ;;  %v7040_v22 = vsel %vm1388_vm8, %v1967_v17, %v1975_v31  ;;  %v5916_v56 = vld [vmem:[%s8797_s4 + $0x10] sm:$0xff]   ;;  %v5895_v2 = vld [vmem:[%s6192_s26 + $0x40] sm:$0xff]   ;;  %v5918_v45 = vld [vmem:[%s8797_s4 + $0x18] sm:$0xff]  }
 0x1e1   : > { %5541 = vmatprep.mubr.msk.bf16.mxu1 %vm305_vm2, %v6996_v43  ;;  %5570 = vmatprep.mubr.msk.bf16.mxu0 %vm305_vm2, %v6996_v43  ;;  %v7035_v14 = vsel %vm1388_vm8, %v1875_v9, %v1882_v12  ;;  %v1947_v42 = vrot.slane %v1945_v61, 3  ;;  %v1950_v58 = vrot.slane %v1948_v53, 4  ;;  %v5919_v12 = vld [vmem:[%s8797_s4 + $0x90] sm:$0xff]   ;;  %v5920_v19 = vld [vmem:[%s8797_s4 + $0x20] sm:$0xff]   ;;  %v5922_v17 = vld [vmem:[%s8797_s4 + $0x28] sm:$0xff]  }
 0x1e2   : > { %v1958_v49 = vor.u32 %v1957_v18, %v1954_v15  ;;  %v5897_v38 = vld [vmem:[%s6192_s26 + $0x50] sm:$0xff]   ;;  %v5923_v31 = vld [vmem:[%s8797_s4 + $0xa0] sm:$0xff]   ;;  %v5926_v53 = vld [vmem:[%s8797_s4 + $0x38] sm:$0xff]  }
 0x1e3   : > { %v1951_v8 = vor.u32 %v1950_v58, %v1947_v42  ;;  %v5924_v9 = vld [vmem:[%s8797_s4 + $0x30] sm:$0xff]   ;;  %v5899_v61 = vld [vmem:[%s6192_s26 + $0x60] sm:$0xff]   ;;  %v5930_v42 = vld [vmem:[%s8797_s4 + $0x48] sm:$0xff]  }
 0x1e4   : > { %v5928_v15 = vld [vmem:[%s8797_s4 + $0x40] sm:$0xff]   ;;  %v5901_v18 = vld [vmem:[%s6192_s26 + $0x70] sm:$0xff]  }
 0x1e5   : > { %v7048_v20 = vsel %vm1388_vm8, %v1951_v8, %v1958_v49  ;;  %v5931_v58 = vld [vmem:[%s8797_s4 + $0x50] sm:$0xff]   ;;  %v5902_v49 = vld [vmem:[%s6192_s26 + $0x78] sm:$0xff]  }
 0x1e8   : > { %2227 = vmatmul.mubr.bf16.gmra.mrb[48].mxu1 %v7005_v51  ;;  %2471 = vmatmul.mubr.bf16.gmra.mrb[84].mxu0 %v7005_v51 }
 0x1e9   : > { %5542 = vmatprep.mubr.msk.bf16.mxu1 %vm305_vm2, %v7011_v16  ;;  %5571 = vmatprep.mubr.msk.bf16.mxu0 %vm305_vm2, %v7011_v16 }
 0x1f0   : > { %2235 = vmatmul.mubr.bf16.gmra.mrb[52].mxu1 %v7020_v29  ;;  %2479 = vmatmul.mubr.bf16.gmra.mrb[88].mxu0 %v7020_v29 }
 0x1f1   : > { %5543 = vmatprep.mubr.msk.bf16.mxu1 %vm305_vm2, %v7026_v10  ;;  %5572 = vmatprep.mubr.msk.bf16.mxu0 %vm305_vm2, %v7026_v10 }
 0x1f8   : > { %2243 = vmatmul.mubr.bf16.gmra.mrb[56].mxu1 %v7035_v14  ;;  %2487 = vmatmul.mubr.bf16.gmra.mrb[92].mxu0 %v7035_v14 }
 0x1f9   : > { %5544 = vmatprep.mubr.msk.bf16.mxu1 %vm305_vm2, %v7040_v22  ;;  %5762 = vmatprep.mubr.msk.bf16.mxu0 %vm556_vm5, %v5885_v36  ;;  %v5927_v36 = vld [vmem:[%s8797_s4 + $0xb0] sm:$0xff]  }
 0x200   : > { %2251 = vmatmul.mubr.bf16.gmra.mrb[60].mxu1 %v7048_v20  ;;  %5763 = vmatmul.mubr.msk.bf16.vlgmr.msra.gmra.mrb[96].mxu0 %vm556_vm5, %v5886_v34  ;;  %v5932_v34 = vld [vmem:[%s8797_s4 + $0x58] sm:$0xff]  }
 0x201   : > { %5585 = vmatprep.mubr.msk.bf16.mxu1 %vm305_vm2, %v6722_v50  ;;  %5766 = vmatprep.mubr.msk.bf16.mxu0 %vm556_vm5, %v5889_v3  ;;  %v5911_v50 = vld [vmem:[%s8797_s4] sm:$0xff]  }
 0x202   : > { %4465 = vmatpush1.bf16.msra.mxu0 %v5909_v55 }
 0x203   : > { %4466 = vmatprep.subr.bf16.mxu0 %v8929_v5 }
 0x206   : > { %4467 = vmatpush1.bf16.msra.mxu0 %v5910_v6 }
 0x207   : > { %4468 = vmatprep.subr.bf16.mxu0 %v8929_v5 }
 0x208   : > { %2664 = vmatmul.mubr.bf16.vlgmr.msra.gmra.mrb[64].mxu1 %v6748_v35  ;;  %5767 = vmatmul.mubr.msk.bf16.gmra.mrb[100].mxu0 %vm556_vm5, %v5890_v57  ;;  %v5892_v35 = vld [vmem:[%s6192_s26 + $0x28] sm:$0xff]  }
 0x209   : > { %5586 = vmatprep.mubr.msk.bf16.mxu1 %vm305_vm2, %v6756_v62  ;;  %5770 = vmatprep.mubr.msk.bf16.mxu0 %vm556_vm5, %v5891_v37  ;;  %v5913_v62 = vld [vmem:[%s8797_s4 + $0x8] sm:$0xff]  }
 0x20a   : > { %4629 = vmatpush1.bf16.msra.mxu1 %v5911_v50  ;;  %4469 = vmatpush1.bf16.msra.mxu0 %v5912_v33 }
 0x20b   : > { %4630 = vmatprep.subr.bf16.mxu1 %v8929_v5  ;;  %4470 = vmatprep.subr.bf16.mxu0 %v8929_v5 }
 0x20e   : > { %4631 = vmatpush1.bf16.msra.mxu1 %v5913_v62  ;;  %4471 = vmatpush1.bf16.msra.mxu0 %v5914_v30 }
 0x20f   : > { %4472 = vmatprep.subr.bf16.mxu0 %v8929_v5  ;;  %4632 = vmatprep.subr.bf16.mxu1 %v8929_v5 }
 0x210   : > { %2672 = vmatmul.mubr.bf16.gmra.mrb[68].mxu1 %v6774_v28  ;;  %5771 = vmatmul.mubr.msk.bf16.gmra.mrb[104].mxu0 %vm556_vm5, %v5892_v35  ;;  %v5894_v28 = vld [vmem:[%s6192_s26 + $0x38] sm:$0xff]  }
 0x211   : > { %5587 = vmatprep.mubr.msk.bf16.mxu1 %vm305_vm2, %v6782_v0  ;;  %5774 = vmatprep.mubr.msk.bf16.mxu0 %vm556_vm5, %v5893_v1  ;;  %v5917_v0 = vld [vmem:[%s8797_s4 + $0x88] sm:$0xff]  }
 0x212   : > { %4473 = vmatpush1.bf16.msra.mxu0 %v5915_v52  ;;  %4633 = vmatpush1.bf16.msra.mxu1 %v5916_v56 }
 0x213   : > { %4474 = vmatprep.subr.bf16.mxu0 %v8929_v5  ;;  %4634 = vmatprep.subr.bf16.mxu1 %v8929_v5 }
 0x216   : > { %4475 = vmatpush1.bf16.msra.mxu0 %v5917_v0  ;;  %4635 = vmatpush1.bf16.msra.mxu1 %v5918_v45 }
 0x217   : > { %4476 = vmatprep.subr.bf16.mxu0 %v8929_v5  ;;  %4636 = vmatprep.subr.bf16.mxu1 %v8929_v5 }
 0x218   : > { %2680 = vmatmul.mubr.bf16.gmra.mrb[72].mxu1 %v6812_v47  ;;  %5775 = vmatmul.mubr.msk.bf16.gmra.mrb[108].mxu0 %vm556_vm5, %v5894_v28  ;;  %v5896_v47 = vld [vmem:[%s6192_s26 + $0x48] sm:$0xff]  }
 0x219   : > { %5588 = vmatprep.mubr.msk.bf16.mxu1 %vm305_vm2, %v6800_v60  ;;  %5778 = vmatprep.mubr.msk.bf16.mxu0 %vm556_vm5, %v5895_v2  ;;  %v5921_v60 = vld [vmem:[%s8797_s4 + $0x98] sm:$0xff]  }
 0x21a   : > { %4477 = vmatpush1.bf16.msra.mxu0 %v5919_v12  ;;  %4637 = vmatpush1.bf16.msra.mxu1 %v5920_v19 }
 0x21b   : > { %4478 = vmatprep.subr.bf16.mxu0 %v8929_v5  ;;  %4638 = vmatprep.subr.bf16.mxu1 %v8929_v5 }
 0x21e   : > { %4479 = vmatpush1.bf16.msra.mxu0 %v5921_v60  ;;  %4639 = vmatpush1.bf16.msra.mxu1 %v5922_v17 }
 0x21f   : > { %4480 = vmatprep.subr.bf16.mxu0 %v8929_v5  ;;  %4640 = vmatprep.subr.bf16.mxu1 %v8929_v5 }
 0x220   : > { %2688 = vmatmul.mubr.bf16.gmra.mrb[76].mxu1 %v6837_v59  ;;  %5779 = vmatmul.mubr.msk.bf16.gmra.mrb[112].mxu0 %vm556_vm5, %v5896_v47  ;;  %v5898_v59 = vld [vmem:[%s6192_s26 + $0x58] sm:$0xff]  }
 0x221   : > { %5589 = vmatprep.mubr.msk.bf16.mxu1 %vm305_vm2, %v6845_v32  ;;  %5782 = vmatprep.mubr.msk.bf16.mxu0 %vm556_vm5, %v5897_v38  ;;  %v5925_v32 = vld [vmem:[%s8797_s4 + $0xa8] sm:$0xff]  }
 0x222   : > { %4481 = vmatpush1.bf16.msra.mxu0 %v5923_v31  ;;  %4641 = vmatpush1.bf16.msra.mxu1 %v5924_v9 }
 0x223   : > { %4482 = vmatprep.subr.bf16.mxu0 %v8929_v5  ;;  %4642 = vmatprep.subr.bf16.mxu1 %v8929_v5 }
 0x226   : > { %4483 = vmatpush1.bf16.msra.mxu0 %v5925_v32  ;;  %4643 = vmatpush1.bf16.msra.mxu1 %v5926_v53 }
 0x227   : > { %4484 = vmatprep.subr.bf16.mxu0 %v8929_v5  ;;  %4644 = vmatprep.subr.bf16.mxu1 %v8929_v5 }
 0x228   : > { %2696 = vmatmul.mubr.bf16.gmra.mrb[80].mxu1 %v6865_v44  ;;  %5783 = vmatmul.mubr.msk.bf16.gmra.mrb[116].mxu0 %vm556_vm5, %v5898_v59  ;;  %v5900_v44 = vld [vmem:[%s6192_s26 + $0x68] sm:$0xff]  }
 0x229   : > { %5590 = vmatprep.mubr.msk.bf16.mxu1 %vm305_vm2, %v6873_v21  ;;  %5786 = vmatprep.mubr.msk.bf16.mxu0 %vm556_vm5, %v5899_v61  ;;  %v5929_v21 = vld [vmem:[%s8797_s4 + $0xb8] sm:$0xff]  }
 0x22a   : > { %4485 = vmatpush1.bf16.msra.mxu0 %v5927_v36  ;;  %4645 = vmatpush1.bf16.msra.mxu1 %v5928_v15 }
 0x22b   : > { %4486 = vmatprep.subr.bf16.mxu0 %v8929_v5  ;;  %4646 = vmatprep.subr.bf16.mxu1 %v8929_v5 }
 0x22e   : > { %4487 = vmatpush1.bf16.msra.mxu0 %v5929_v21  ;;  %4647 = vmatpush1.bf16.msra.mxu1 %v5930_v42 }
 0x22f   : > { %4853 = vmatprep.subr.bf16.mxu0 %v8929_v5  ;;  %4648 = vmatprep.subr.bf16.mxu1 %v8929_v5 }
 0x230   : > { %2704 = vmatmul.mubr.bf16.gmra.mrb[84].mxu1 %v6893_v24  ;;  %5787 = vmatmul.mubr.msk.bf16.gmra.mrb[120].mxu0 %vm556_vm5, %v5900_v44 }
 0x231   : > { %5591 = vmatprep.mubr.msk.bf16.mxu1 %vm305_vm2, %v6889_v11  ;;  %5790 = vmatprep.mubr.msk.bf16.mxu0 %vm556_vm5, %v5901_v18 }
 0x232   : > { %4649 = vmatpush1.bf16.msra.mxu1 %v5931_v58 }
 0x233   : > { %4650 = vmatprep.subr.bf16.mxu1 %v8929_v5 }
 0x236   : > { %4651 = vmatpush1.bf16.msra.mxu1 %v5932_v34 }
 0x237   : > { %5794 = vmatprep.subr.bf16.mxu1 %v8929_v5 }
 0x238   : > { %2712 = vmatmul.mubr.bf16.gmra.mrb[88].mxu1 %v6909_v41  ;;  %5791 = vmatmul.mubr.msk.bf16.gmra.mrb[124].mxu0 %vm556_vm5, %v5902_v49 }
 0x239   : > { %5592 = vmatprep.mubr.msk.bf16.mxu1 %vm305_vm2, %v6916_v4 }
 0x240   : > { %2720 = vmatmul.mubr.bf16.gmra.mrb[92].mxu1 %v6928_v7 }
 0x241   : > { %5593 = vmatprep.mubr.msk.bf16.mxu1 %vm305_vm2, %v6935_v26 }
 0x248   : > { %2728 = vmatmul.mubr.bf16.gmra.mrb[96].mxu1 %v6951_v40 }
 0x249   : > { %5594 = vmatprep.mubr.msk.bf16.mxu1 %vm305_vm2, %v6959_v48 }
 0x250   : > { %2736 = vmatmul.mubr.bf16.gmra.mrb[100].mxu1 %v6970_v13 }
 0x251   : > { %5595 = vmatprep.mubr.msk.bf16.mxu1 %vm305_vm2, %v6977_v46 }
 0x258   : > { %2744 = vmatmul.mubr.bf16.gmra.mrb[104].mxu1 %v6989_v63 }
 0x259   : > { %5596 = vmatprep.mubr.msk.bf16.mxu1 %vm305_vm2, %v6996_v43 }
 0x25b   : > { %v2132_v41 = vpop.f32.mrb[0].mxu1  ;;  %v2376_v11 = vpop.f32.mrb[36].mxu0 }
 0x25c   : > { %v7211_v24 = vadd.f32 %v6942_v39, %v2132_v41  ;;  %v2134_v4 = vpop.f32.mrb[1].mxu1  ;;  %v2378_v7 = vpop.f32.mrb[37].mxu0 }
 0x25d   : > { %v2135_v26 = vpop.f32.mrb[2].mxu1  ;;  %v2379_v40 = vpop.f32.mrb[38].mxu0 }
 0x25e   : > { %v7214_v48 = vadd.f32 %v6948_v54, %v2135_v26  ;;  %v2137_v13 = vpop.f32.mrb[3].mxu1  ;;  %v2381_v8 = vpop.f32.mrb[39].mxu0 }
 0x260   : > { %2752 = vmatmul.mubr.bf16.gmra.mrb[108].mxu1 %v7005_v51 }
 0x261   : > { %5597 = vmatprep.mubr.msk.bf16.mxu1 %vm305_vm2, %v7011_v16 }
 0x263   : > { %v2140_v46 = vpop.f32.mrb[4].mxu1  ;;  %v2384_v63 = vpop.f32.mrb[40].mxu0 }
 0x264   : > { %v7219_v43 = vadd.f32 %v2376_v11, %v2140_v46  ;;  %v2142_v39 = vpop.f32.mrb[5].mxu1  ;;  %v2386_v3 = vpop.f32.mrb[41].mxu0 }
 0x265   : > { %v2143_v55 = vpop.f32.mrb[6].mxu1  ;;  %v2387_v57 = vpop.f32.mrb[42].mxu0 }
 0x266   : > { %v7221_v37 = vadd.f32 %v2379_v40, %v2143_v55  ;;  %v2145_v6 = vpop.f32.mrb[7].mxu1  ;;  %v2389_v54 = vpop.f32.mrb[43].mxu0 }
 0x268   : > { %2760 = vmatmul.mubr.bf16.gmra.mrb[112].mxu1 %v7020_v29 }
 0x269   : > { %5598 = vmatprep.mubr.msk.bf16.mxu1 %vm305_vm2, %v7026_v10 }
 0x26b   : > { %v2148_v51 = vpop.f32.mrb[8].mxu1  ;;  %v2392_v50 = vpop.f32.mrb[44].mxu0 }
 0x26c   : > { %v7226_v16 = vadd.f32 %v2384_v63, %v2148_v51  ;;  %v2150_v33 = vpop.f32.mrb[9].mxu1  ;;  %v2394_v35 = vpop.f32.mrb[45].mxu0 }
 0x26d   : > { %v2151_v1 = vpop.f32.mrb[10].mxu1  ;;  %v2395_v62 = vpop.f32.mrb[46].mxu0 }
 0x26e   : > { %v7228_v30 = vadd.f32 %v2387_v57, %v2151_v1  ;;  %v2153_v52 = vpop.f32.mrb[11].mxu1  ;;  %v2397_v56 = vpop.f32.mrb[47].mxu0 }
 0x270   : > { %2768 = vmatmul.mubr.bf16.gmra.mrb[116].mxu1 %v7035_v14 }
 0x271   : > { %5599 = vmatprep.mubr.msk.bf16.mxu1 %vm305_vm2, %v7040_v22 }
 0x273   : > { %v2156_v29 = vpop.f32.mrb[12].mxu1  ;;  %v2400_v28 = vpop.f32.mrb[48].mxu0 }
 0x274   : > { %v7233_v10 = vadd.f32 %v2392_v50, %v2156_v29  ;;  %v2158_v2 = vpop.f32.mrb[13].mxu1  ;;  %v2402_v0 = vpop.f32.mrb[49].mxu0 }
 0x275   : > { %v2159_v45 = vpop.f32.mrb[14].mxu1  ;;  %v2403_v12 = vpop.f32.mrb[50].mxu0 }
 0x276   : > { %v7235_v19 = vadd.f32 %v2395_v62, %v2159_v45  ;;  %v2161_v47 = vpop.f32.mrb[15].mxu1  ;;  %v2405_v38 = vpop.f32.mrb[51].mxu0 }
 0x278   : > { %2776 = vmatmul.mubr.bf16.gmra.mrb[120].mxu1 %v7048_v20 }
 0x27b   : > { %v2164_v60 = vpop.f32.mrb[16].mxu1  ;;  %v2408_v17 = vpop.f32.mrb[52].mxu0 }
 0x27c   : > { %v7238_v14 = vadd.f32 %v2400_v28, %v2164_v60  ;;  %v2166_v31 = vpop.f32.mrb[17].mxu1  ;;  %v2410_v22 = vpop.f32.mrb[53].mxu0 }
 0x27d   : > { %v2167_v9 = vpop.f32.mrb[18].mxu1  ;;  %v2411_v59 = vpop.f32.mrb[54].mxu0 }
 0x27e   : > { %v7240_v61 = vadd.f32 %v2403_v12, %v2167_v9  ;;  %v2169_v32 = vpop.f32.mrb[19].mxu1  ;;  %v2413_v53 = vpop.f32.mrb[55].mxu0 }
 0x283   : > { %v2172_v36 = vpop.f32.mrb[20].mxu1  ;;  %v2416_v15 = vpop.f32.mrb[56].mxu0 }
 0x284   : > { %v7242_v44 = vadd.f32 %v2408_v17, %v2172_v36  ;;  %v2174_v18 = vpop.f32.mrb[21].mxu1  ;;  %v2418_v21 = vpop.f32.mrb[57].mxu0 }
 0x285   : > { %v2175_v42 = vpop.f32.mrb[22].mxu1  ;;  %v2419_v20 = vpop.f32.mrb[58].mxu0 }
 0x286   : > { %v7244_v58 = vadd.f32 %v2411_v59, %v2175_v42  ;;  %v2177_v49 = vpop.f32.mrb[23].mxu1  ;;  %v2421_v34 = vpop.f32.mrb[59].mxu0 }
 0x28b   : > { %v2180_v41 = vpop.f32.mrb[24].mxu1  ;;  %v2424_v11 = vpop.f32.mrb[60].mxu0 }
 0x28c   : > { %v7246_v4 = vadd.f32 %v2416_v15, %v2180_v41  ;;  %v2182_v7 = vpop.f32.mrb[25].mxu1  ;;  %v2426_v26 = vpop.f32.mrb[61].mxu0 }
 0x28d   : > { %v2183_v40 = vpop.f32.mrb[26].mxu1  ;;  %v2427_v13 = vpop.f32.mrb[62].mxu0 }
 0x28e   : > { %v7248_v8 = vadd.f32 %v2419_v20, %v2183_v40  ;;  %v2185_v46 = vpop.f32.mrb[27].mxu1  ;;  %v2429_v63 = vpop.f32.mrb[63].mxu0 }
 0x293   : > { %v2188_v39 = vpop.f32.mrb[28].mxu1  ;;  %v2432_v3 = vpop.f32.mrb[64].mxu0 }
 0x294   : > { %v7250_v55 = vadd.f32 %v2424_v11, %v2188_v39  ;;  %v2190_v57 = vpop.f32.mrb[29].mxu1  ;;  %v2434_v6 = vpop.f32.mrb[65].mxu0 }
 0x295   : > { %v2191_v54 = vpop.f32.mrb[30].mxu1  ;;  %v2435_v51 = vpop.f32.mrb[66].mxu0 }
 0x296   : > { %v7252_v50 = vadd.f32 %v2427_v13, %v2191_v54  ;;  %v2193_v33 = vpop.f32.mrb[31].mxu1  ;;  %v2437_v35 = vpop.f32.mrb[67].mxu0 }
 0x29b   : > { %v2196_v1 = vpop.f32.mrb[32].mxu1  ;;  %v2440_v62 = vpop.f32.mrb[68].mxu0 }
 0x29c   : > { %v7254_v52 = vadd.f32 %v2432_v3, %v2196_v1  ;;  %v2198_v56 = vpop.f32.mrb[33].mxu1  ;;  %v2442_v29 = vpop.f32.mrb[69].mxu0 }
 0x29d   : > { %v2199_v28 = vpop.f32.mrb[34].mxu1  ;;  %v2443_v2 = vpop.f32.mrb[70].mxu0 }
 0x29e   : > { %v7256_v0 = vadd.f32 %v2435_v51, %v2199_v28  ;;  %v2201_v45 = vpop.f32.mrb[35].mxu1  ;;  %v2445_v12 = vpop.f32.mrb[71].mxu0 }
 0x2a3   : > { %v2204_v47 = vpop.f32.mrb[36].mxu1  ;;  %v2448_v38 = vpop.f32.mrb[72].mxu0 }
 0x2a4   : > { %v7258_v60 = vadd.f32 %v2440_v62, %v2204_v47  ;;  %v2206_v17 = vpop.f32.mrb[37].mxu1  ;;  %v2450_v31 = vpop.f32.mrb[73].mxu0 }
 0x2a5   : > { %v2207_v22 = vpop.f32.mrb[38].mxu1  ;;  %v2451_v9 = vpop.f32.mrb[74].mxu0 }
 0x2a6   : > { %v7260_v59 = vadd.f32 %v2443_v2, %v2207_v22  ;;  %v2209_v32 = vpop.f32.mrb[39].mxu1  ;;  %v2453_v53 = vpop.f32.mrb[75].mxu0 }
 0x2ab   : > { %v2212_v36 = vpop.f32.mrb[40].mxu1  ;;  %v2456_v15 = vpop.f32.mrb[76].mxu0 }
 0x2ac   : > { %v7262_v18 = vadd.f32 %v2448_v38, %v2212_v36  ;;  %v2214_v21 = vpop.f32.mrb[41].mxu1  ;;  %v2458_v42 = vpop.f32.mrb[77].mxu0 }
 0x2ad   : > { %v2215_v20 = vpop.f32.mrb[42].mxu1  ;;  %v2459_v49 = vpop.f32.mrb[78].mxu0 }
 0x2ae   : > { %v7264_v34 = vadd.f32 %v2451_v9, %v2215_v20  ;;  %v2217_v41 = vpop.f32.mrb[43].mxu1  ;;  %v2461_v11 = vpop.f32.mrb[79].mxu0 }
 0x2b3   : > { %v2220_v7 = vpop.f32.mrb[44].mxu1  ;;  %v2464_v26 = vpop.f32.mrb[80].mxu0 }
 0x2b4   : > { %v7266_v40 = vadd.f32 %v2456_v15, %v2220_v7  ;;  %v2222_v13 = vpop.f32.mrb[45].mxu1  ;;  %v2466_v46 = vpop.f32.mrb[81].mxu0 }
 0x2b5   : > { %v2223_v63 = vpop.f32.mrb[46].mxu1  ;;  %v2467_v39 = vpop.f32.mrb[82].mxu0 }
 0x2b6   : > { %v7268_v3 = vadd.f32 %v2459_v49, %v2223_v63  ;;  %v2225_v57 = vpop.f32.mrb[47].mxu1  ;;  %v2469_v6 = vpop.f32.mrb[83].mxu0 }
 0x2bb   : > { %v2228_v54 = vpop.f32.mrb[48].mxu1  ;;  %v2472_v51 = vpop.f32.mrb[84].mxu0 }
 0x2bc   : > { %v7270_v33 = vadd.f32 %v2464_v26, %v2228_v54  ;;  %v2230_v35 = vpop.f32.mrb[49].mxu1  ;;  %v2474_v1 = vpop.f32.mrb[85].mxu0 }
 0x2bd   : > { %v2231_v62 = vpop.f32.mrb[50].mxu1  ;;  %v2475_v56 = vpop.f32.mrb[86].mxu0 }
 0x2be   : > { %v7272_v29 = vadd.f32 %v2467_v39, %v2231_v62  ;;  %v2233_v28 = vpop.f32.mrb[51].mxu1  ;;  %v2477_v2 = vpop.f32.mrb[87].mxu0  ;;  %v7287_v39 = vld [vmem:[%s8796_s3] ss:$0 sm:$0xff] }
 0x2c3   : > { %v2236_v45 = vpop.f32.mrb[52].mxu1  ;;  %v2480_v12 = vpop.f32.mrb[88].mxu0 }
 0x2c4   : > { %v7274_v47 = vadd.f32 %v2472_v51, %v2236_v45  ;;  %v2238_v38 = vpop.f32.mrb[53].mxu1  ;;  %v2482_v17 = vpop.f32.mrb[89].mxu0 }
 0x2c5   : > { %v2239_v31 = vpop.f32.mrb[54].mxu1  ;;  %v2483_v22 = vpop.f32.mrb[90].mxu0 }
 0x2c6   : > { %v7276_v9 = vadd.f32 %v2475_v56, %v2239_v31  ;;  %v2241_v32 = vpop.f32.mrb[55].mxu1  ;;  %v2485_v53 = vpop.f32.mrb[91].mxu0  ;;  %v8934_v31 = vmax.f32 %v6288_v23, 0.0 }
 0x2c7   : > { %v8935_v32 = vmax.f32 %v6291_v25, 0.0 }
 0x2cb   : > { %v2244_v36 = vpop.f32.mrb[56].mxu1  ;;  %v2488_v15 = vpop.f32.mrb[92].mxu0 }
 0x2cc   : > { %v7278_v21 = vadd.f32 %v2480_v12, %v2244_v36  ;;  %v2246_v42 = vpop.f32.mrb[57].mxu1  ;;  %v2490_v20 = vpop.f32.mrb[93].mxu0 }
 0x2cd   : > { %v2247_v49 = vpop.f32.mrb[58].mxu1  ;;  %v2491_v41 = vpop.f32.mrb[94].mxu0  ;;  %v8936_v42 = vmax.f32 %v6294_v27, 0.0 }
 0x2ce   : > { %8930 = vst [vmem:[#allocation32_spill] sm:$0xff] %v7278_v21  ;;  %v7280_v11 = vadd.f32 %v2483_v22, %v2247_v49  ;;  %v2249_v7 = vpop.f32.mrb[59].mxu1  ;;  %v2493_v26 = vpop.f32.mrb[95].mxu0 }
 0x2cf   : > { %v8937_v7 = vld [vmem:[#allocation3_spill] sm:$0xff] }
 0x2d0   : > { %8931 = vst [vmem:[#allocation33_spill] sm:$0xff] %v7280_v11  ;;  %v8938_v26 = vmax.f32 %v8937_v7, 0.0 }
 0x2d3   : > { %v2252_v13 = vpop.f32.mrb[60].mxu1  ;;  %v5764_v46 = vpop.f32.mrb[96].mxu0 }
 0x2d4   : > { %v7282_v63 = vadd.f32 %v2488_v15, %v2252_v13  ;;  %v3097_v57 = vadd.f32 %v7287_v39, %v5764_v46  ;;  %v2254_v6 = vpop.f32.mrb[61].mxu1  ;;  %v3088_v54 = vpop.f32.mrb[97].mxu0 }
 0x2d5   : > { %v3089_v51 = vadd.f32 %v7287_v39, %v3088_v54  ;;  %v2255_v35 = vpop.f32.mrb[62].mxu1  ;;  %v5765_v1 = vpop.f32.mrb[98].mxu0 }
 0x2d6   : > { %8932 = vst [vmem:[#allocation34_spill] sm:$0xff] %v7282_v63  ;;  %v3217_v62 = vmax.f32 %v3097_v57, 0.0  ;;  %v7291_v56 = vadd.f32 %v2491_v41, %v2255_v35  ;;  %v3100_v28 = vadd.f32 %v7287_v39, %v5765_v1  ;;  %v2257_v2 = vpop.f32.mrb[63].mxu1  ;;  %v3091_v45 = vpop.f32.mrb[99].mxu0 }
 0x2d7   : > { %v3215_v12 = vmax.f32 %v3089_v51, 0.0  ;;  %v3092_v38 = vadd.f32 %v7287_v39, %v3091_v45 }
 0x2d8   : > { %8933 = vst [vmem:[#allocation35_spill] sm:$0xff] %v7291_v56  ;;  %v3218_v17 = vmax.f32 %v3100_v28, 0.0  ;;  %v5112_v22 = vsub.f32 %v8934_v31, %v3217_v62 }
 0x2d9   : > { %v5110_v53 = vsub.f32 %v8935_v32, %v3215_v12  ;;  %v3216_v36 = vmax.f32 %v3092_v38, 0.0 }
 0x2da   : > { %v3248_v15 = vpack.c.bf16 %v3218_v17, %v3217_v62  ;;  %v5113_v20 = vsub.f32 %v8936_v42, %v3218_v17  ;;  %v5144_v25 = vmul.f32 %v5112_v22, %v5112_v22 }
 0x2db   : > { %v5142_v49 = vmul.f32 %v5110_v53, %v5110_v53  ;;  %v3247_v41 = vpack.c.bf16 %v3216_v36, %v3215_v12  ;;  %v5111_v13 = vsub.f32 %v8938_v26, %v3216_v36  ;;  %v2665_v46 = vpop.f32.mrb[64].mxu1  ;;  %v5768_v57 = vpop.f32.mrb[100].mxu0 }
 0x2dc   : > { %v3280_v6 = vrot.slane %v3248_v15, 4  ;;  %v7304_v54 = vadd.f32 %v2665_v46, %v7211_v24  ;;  %v2667_v23 = vpop.f32.mrb[65].mxu1  ;;  %v3104_v51 = vpop.f32.mrb[101].mxu0  ;;  %v3113_v62 = vadd.f32 %v7287_v39, %v5768_v57  ;;  %v5145_v45 = vmul.f32 %v5113_v20, %v5113_v20 }
 0x2dd   : > { %v3279_v35 = vrot.slane %v3247_v41, 4  ;;  %v5143_v1 = vmul.f32 %v5111_v13, %v5111_v13  ;;  %v2668_v27 = vpop.f32.mrb[66].mxu1  ;;  %v5769_v28 = vpop.f32.mrb[102].mxu0  ;;  %v5174_v2 = vsel %vm305_vm2, %v5142_v49, 0.0  ;;  %v3105_v12 = vadd.f32 %v7287_v39, %v3104_v51  ;;  %v8941_v41 = vld [vmem:[#allocation4_spill] sm:$0xff]  ;;  %v8943_v13 = vld [vmem:[#allocation5_spill] sm:$0xff] }
 0x2de   : > { %8939 = vst [vmem:[#allocation3_spill] sm:$0xff] %v7304_v54  ;;  %3313 = vst.msk [vmem:[#allocation2 + $0x20] sm:$0xf0] %vm330_vm4, %v3280_v6  ;;  %v7312_v24 = vadd.f32 %v2668_v27, %v7214_v48  ;;  %v2670_v38 = vpop.f32.mrb[67].mxu1  ;;  %v3107_v17 = vpop.f32.mrb[103].mxu0  ;;  %v3221_v22 = vmax.f32 %v3113_v62, 0.0  ;;  %v3116_v32 = vadd.f32 %v7287_v39, %v5769_v28 }
 0x2df   : > { %3314 = vst.msk [vmem:[#allocation2 + $0x28] sm:$0xf] %vm311_vm3, %v3280_v6  ;;  %3312 = vst.msk [vmem:[#allocation2 + $0x18] sm:$0xf] %vm311_vm3, %v3279_v35  ;;  %v5175_v31 = vsel %vm305_vm2, %v5143_v1, 0.0  ;;  %v3108_v53 = vadd.f32 %v7287_v39, %v3107_v17  ;;  %v3219_v15 = vmax.f32 %v3105_v12, 0.0 }
 0x2e0   : > { %8940 = vst [vmem:[#allocation36_spill] sm:$0xff] %v7312_v24  ;;  %3311 = vst.msk [vmem:[#allocation2 + $0x10] sm:$0xf0] %vm330_vm4, %v3279_v35  ;;  %v5176_v36 = vadd.f32 %v5175_v31, %v5174_v2  ;;  %v5177_v42 = vsel %vm305_vm2, %v5144_v25, 0.0  ;;  %v3222_v20 = vmax.f32 %v3116_v32, 0.0  ;;  %v8942_v7 = vmax.f32 %v8941_v41, 0.0 }
 0x2e1   : > { %v3220_v48 = vmax.f32 %v3108_v53, 0.0  ;;  %v8944_v46 = vmax.f32 %v8943_v13, 0.0  ;;  %v5179_v6 = vsel %vm305_vm2, %v5145_v45, 0.0  ;;  %v8945_v51 = vld [vmem:[#allocation6_spill] sm:$0xff]  ;;  %v8947_v12 = vld [vmem:[#allocation7_spill] sm:$0xff] }
 0x2e2   : > { %v5178_v49 = vadd.f32 %v5177_v42, %v5176_v36  ;;  %v5116_v26 = vsub.f32 %v8942_v7, %v3221_v22  ;;  %v3250_v23 = vpack.c.bf16 %v3222_v20, %v3221_v22  ;;  %v8946_v35 = vmax.f32 %v8945_v51, 0.0 }
 0x2e3   : > { %v5114_v57 = vsub.f32 %v8944_v46, %v3219_v15  ;;  %v3249_v62 = vpack.c.bf16 %v3220_v48, %v3219_v15  ;;  %v2673_v27 = vpop.f32.mrb[68].mxu1  ;;  %v5772_v28 = vpop.f32.mrb[104].mxu0  ;;  %v8948_v38 = vmax.f32 %v8947_v12, 0.0 }
 0x2e4   : > { %v5117_v1 = vsub.f32 %v8946_v35, %v3222_v20  ;;  %v5180_v25 = vadd.f32 %v5179_v6, %v5178_v49  ;;  %v7330_v31 = vadd.f32 %v2673_v27, %v7219_v43  ;;  %v2675_v32 = vpop.f32.mrb[69].mxu1  ;;  %v3120_v53 = vpop.f32.mrb[105].mxu0  ;;  %v3282_v36 = vrot.slane %v3250_v23, 4 }
 0x2e5   : > { %v5146_v2 = vmul.f32 %v5114_v57, %v5114_v57  ;;  %v5115_v17 = vsub.f32 %v8948_v38, %v3220_v48  ;;  %v3281_v42 = vrot.slane %v3249_v62, 4  ;;  %v2676_v45 = vpop.f32.mrb[70].mxu1  ;;  %v5773_v22 = vpop.f32.mrb[106].mxu0  ;;  %v5148_v41 = vmul.f32 %v5116_v26, %v5116_v26 }
 0x2e6   : > { %8949 = vst [vmem:[#allocation4_spill] sm:$0xff] %v7330_v31  ;;  %v3129_v7 = vadd.f32 %v7287_v39, %v5772_v28  ;;  %v2678_v13 = vpop.f32.mrb[71].mxu1  ;;  %v3123_v49 = vpop.f32.mrb[107].mxu0  ;;  %3317 = vst.msk [vmem:[#allocation2 + $0x40] sm:$0xf0] %vm330_vm4, %v3282_v36  ;;  %v5149_v43 = vmul.f32 %v5117_v1, %v5117_v1  ;;  %v3121_v48 = vadd.f32 %v7287_v39, %v3120_v53  ;;  %v7345_v27 = vld [vmem:[#allocation2 + $0x18] sm:$0xff] }
 0x2e7   : > { %v5181_v20 = vsel %vm305_vm2, %v5146_v2, 0.0  ;;  %v5147_v15 = vmul.f32 %v5115_v17, %v5115_v17  ;;  %3318 = vst.msk [vmem:[#allocation2 + $0x48] sm:$0xf] %vm311_vm3, %v3282_v36  ;;  %3316 = vst.msk [vmem:[#allocation2 + $0x38] sm:$0xf] %vm311_vm3, %v3281_v42  ;;  %v7340_v26 = vadd.f32 %v2676_v45, %v7221_v37  ;;  %v3132_v23 = vadd.f32 %v7287_v39, %v5773_v22  ;;  %v8951_v28 = vld [vmem:[#allocation8_spill] sm:$0xff] }
 0x2e8   : > { %v5182_v46 = vadd.f32 %v5181_v20, %v5180_v25  ;;  %3315 = vst.msk [vmem:[#allocation2 + $0x30] sm:$0xf0] %vm330_vm4, %v3281_v42  ;;  %v3225_v6 = vmax.f32 %v3129_v7, 0.0  ;;  %v3223_v35 = vmax.f32 %v3121_v48, 0.0  ;;  %v3124_v62 = vadd.f32 %v7287_v39, %v3123_v49  ;;  %v8953_v17 = vld [vmem:[#allocation9_spill] sm:$0xff]  ;;  %v8955_v20 = vld [vmem:[#allocation10_spill] sm:$0xff] }
 0x2e9   : > { %8950 = vst [vmem:[#allocation5_spill] sm:$0xff] %v7340_v26  ;;  %v5183_v57 = vsel %vm305_vm2, %v5147_v15, 0.0  ;;  %v5185_v1 = vsel %vm305_vm2, %v5148_v41, 0.0  ;;  %v8952_v2 = vmax.f32 %v8951_v28, 0.0  ;;  %v3226_v12 = vmax.f32 %v3132_v23, 0.0  ;;  %v8958_v23 = vld [vmem:[#allocation11_spill] sm:$0xff] }
 0x2ea   : > { %v5184_v51 = vadd.f32 %v5183_v57, %v5182_v46  ;;  %v5187_v37 = vsel %vm305_vm2, %v5149_v43, 0.0  ;;  %v8954_v32 = vmax.f32 %v8953_v17, 0.0  ;;  %v3224_v36 = vmax.f32 %v3124_v62, 0.0  ;;  %v7403_v26 = vld [vmem:[#allocation2 + $0x20] sm:$0xff] }
 0x2eb   : > { %v5120_v25 = vsub.f32 %v8952_v2, %v3225_v6  ;;  %v2681_v42 = vpop.f32.mrb[72].mxu1  ;;  %v5776_v45 = vpop.f32.mrb[108].mxu0  ;;  %v3252_v22 = vpack.c.bf16 %v3226_v12, %v3225_v6  ;;  %v8956_v15 = vmax.f32 %v8955_v20, 0.0  ;;  %v3402_v46 = vshll.u32 %v7345_v27, 16  ;;  %8970 = vst [vmem:[#allocation9_spill] sm:$0xff] %v7403_v26 }
 0x2ec   : > { %v5186_v38 = vadd.f32 %v5185_v1, %v5184_v51  ;;  %v5118_v53 = vsub.f32 %v8954_v32, %v3223_v35  ;;  %v7356_v13 = vadd.f32 %v2681_v42, %v7226_v16  ;;  %v2683_v41 = vpop.f32.mrb[73].mxu1  ;;  %v3136_v49 = vpop.f32.mrb[109].mxu0  ;;  %v3251_v57 = vpack.c.bf16 %v3224_v36, %v3223_v35 }
 0x2ed   : > { %v5121_v7 = vsub.f32 %v8956_v15, %v3226_v12  ;;  %v8959_v51 = vmax.f32 %v8958_v23, 0.0  ;;  %v5777_v62 = vpop.f32.mrb[110].mxu0  ;;  %v2684_v28 = vpop.f32.mrb[74].mxu1  ;;  %v5152_v2 = vmul.f32 %v5120_v25, %v5120_v25  ;;  %v3284_v6 = vrot.slane %v3252_v22, 4 }
 0x2ee   : > { %8957 = vst [vmem:[#allocation6_spill] sm:$0xff] %v7356_v13  ;;  %v5150_v48 = vmul.f32 %v5118_v53, %v5118_v53  ;;  %v5188_v43 = vadd.f32 %v5187_v37, %v5186_v38  ;;  %v3139_v17 = vpop.f32.mrb[111].mxu0  ;;  %v2686_v32 = vpop.f32.mrb[75].mxu1  ;;  %v3283_v16 = vrot.slane %v3251_v57, 4  ;;  %v3145_v20 = vadd.f32 %v7287_v39, %v5776_v45 }
 0x2ef   : > { %v5119_v1 = vsub.f32 %v8959_v51, %v3224_v36  ;;  %3321 = vst.msk [vmem:[#allocation2 + $0x60] sm:$0xf0] %vm330_vm4, %v3284_v6  ;;  %v5153_v35 = vmul.f32 %v5121_v7, %v5121_v7  ;;  %v3137_v37 = vadd.f32 %v7287_v39, %v3136_v49  ;;  %v3406_v38 = vshrl.u32 %v7345_v27, 16  ;;  %v8961_v49 = vld [vmem:[#allocation12_spill] sm:$0xff] }
 0x2f0   : > { %v5189_v12 = vsel %vm305_vm2, %v5150_v48, 0.0  ;;  %3322 = vst.msk [vmem:[#allocation2 + $0x68] sm:$0xf] %vm311_vm3, %v3284_v6  ;;  %3320 = vst.msk [vmem:[#allocation2 + $0x58] sm:$0xf] %vm311_vm3, %v3283_v16  ;;  %v3229_v53 = vmax.f32 %v3145_v20, 0.0  ;;  %v3148_v36 = vadd.f32 %v7287_v39, %v5777_v62  ;;  %v7373_v7 = vadd.f32 %v2684_v28, %v7228_v30 }
 0x2f1   : > { %v5151_v42 = vmul.f32 %v5119_v1, %v5119_v1  ;;  %v5190_v15 = vadd.f32 %v5189_v12, %v5188_v43  ;;  %3319 = vst.msk [vmem:[#allocation2 + $0x50] sm:$0xf0] %vm330_vm4, %v3283_v16  ;;  %v3404_v45 = vrot.slane %v3402_v46, 1  ;;  %v5193_v22 = vsel %vm305_vm2, %v5152_v2, 0.0  ;;  %v3345_v6 = vld [vmem:[#allocation2 + $0x10] sm:$0xff] }
 0x2f2   : > { %v3227_v48 = vmax.f32 %v3137_v37, 0.0  ;;  %8960 = vst [vmem:[#allocation7_spill] sm:$0xff] %v7373_v7  ;;  %v8962_v43 = vmax.f32 %v8961_v49, 0.0  ;;  %v3230_v23 = vmax.f32 %v3148_v36, 0.0  ;;  %v3140_v1 = vadd.f32 %v7287_v39, %v3139_v17  ;;  %v8963_v2 = vld [vmem:[#allocation13_spill] sm:$0xff]  ;;  %v8965_v37 = vld [vmem:[#allocation14_spill] sm:$0xff] }
 0x2f3   : > { %v5191_v25 = vsel %vm305_vm2, %v5151_v42, 0.0  ;;  %v3408_v51 = vor.u32 %v3406_v38, %v3404_v45  ;;  %v7378_v32 = vpop.f32.mrb[76].mxu1  ;;  %v7380_v12 = vpop.f32.mrb[112].mxu0  ;;  %v5195_v46 = vsel %vm305_vm2, %v5153_v35, 0.0  ;;  %v8964_v16 = vmax.f32 %v8963_v2, 0.0  ;;  %v7390_v36 = vld [vmem:[#allocation2 + $0x28] sm:$0xff] }
 0x2f4   : > { %v5192_v41 = vadd.f32 %v5191_v25, %v5190_v15  ;;  %v5124_v57 = vsub.f32 %v8962_v43, %v3229_v53  ;;  %v2691_v30 = vpop.f32.mrb[77].mxu1  ;;  %v7385_v28 = vpop.f32.mrb[113].mxu0  ;;  %v3254_v15 = vpack.c.bf16 %v3230_v23, %v3229_v53  ;;  %v8966_v38 = vmax.f32 %v8965_v37, 0.0  ;;  %8967 = vst [vmem:[#allocation8_spill] sm:$0xff] %v7390_v36 }
 0x2f5   : > { %v5122_v42 = vsub.f32 %v8964_v16, %v3227_v48  ;;  %3625 = vrot.lane.b32.xlu1 %v3408_v51, %s5979_s21  ;;  %v3228_v17 = vmax.f32 %v3140_v1, 0.0  ;;  %v7392_v49 = vpop.f32.mrb[114].mxu0  ;;  %v7394_v35 = vpop.f32.mrb[78].mxu1  ;;  %v3397_v43 = vshll.u32 %v3345_v6, 16  ;;  %v3719_v53 = vrot.slane %v7345_v27, 1  ;;  %v8968_v1 = vld [vmem:[#allocation15_spill] sm:$0xff] }
 0x2f6   : > { %v5194_v62 = vadd.f32 %v5193_v22, %v5192_v41  ;;  %v5156_v20 = vmul.f32 %v5124_v57, %v5124_v57  ;;  %v5125_v25 = vsub.f32 %v8966_v38, %v3230_v23  ;;  %v7396_v2 = vpop.f32.mrb[115].mxu0  ;;  %v2694_v16 = vpop.f32.mrb[79].mxu1  ;;  %v3286_v57 = vrot.slane %v3254_v15, 4 }
 0x2f7   : > { %v5154_v22 = vmul.f32 %v5122_v42, %v5122_v42  ;;  %v3253_v30 = vpack.c.bf16 %v3228_v17, %v3227_v48  ;;  %v3395_v23 = vshrl.u32 %v3345_v6, 16  ;;  %v8969_v37 = vmax.f32 %v8968_v1, 0.0 }
 0x2f8   : > { %v5196_v41 = vadd.f32 %v5195_v46, %v5194_v62  ;;  %v3399_v7 = vrot.slane %v3397_v43, 1  ;;  %v3417_v13 = vshll.u32 %v7390_v36, 16  ;;  %v5201_v46 = vsel %vm305_vm2, %v5156_v20, 0.0  ;;  %3325 = vst.msk [vmem:[#allocation2 + $0x80] sm:$0xf0] %vm330_vm4, %v3286_v57 }
 0x2f9   : > { %v5197_v51 = vsel %vm305_vm2, %v5154_v22, 0.0  ;;  %v5123_v38 = vsub.f32 %v8969_v37, %v3228_v17  ;;  %3326 = vst.msk [vmem:[#allocation2 + $0x88] sm:$0xf] %vm311_vm3, %v3286_v57  ;;  %v5157_v27 = vmul.f32 %v5125_v25, %v5125_v25  ;;  %v3285_v48 = vrot.slane %v3253_v30, 4 }
 0x2fa   : > { %v5198_v62 = vadd.f32 %v5197_v51, %v5196_v41  ;;  %v3400_v15 = vor.u32 %v3399_v7, %v3395_v23  ;;  %v3419_v22 = vrot.slane %v3417_v13, 1  ;;  %v3421_v16 = vshrl.u32 %v7390_v36, 16 }
 0x2fb   : > { %v5155_v42 = vmul.f32 %v5123_v38, %v5123_v38  ;;  %3323 = vst.msk [vmem:[#allocation2 + $0x70] sm:$0xf0] %vm330_vm4, %v3285_v48  ;;  %v3718_v17 = vrot.slane %v3345_v6, 1  ;;  %v3883_v43 = vshrl.u32 %v3719_v53, 16  ;;  %v3886_v1 = vshll.u32 %v3719_v53, 16  ;;  %v7412_v41 = vpop.f32.mrb[80].mxu1 }
 0x2fc   : > { %3324 = vst.msk [vmem:[#allocation2 + $0x78] sm:$0xf] %vm311_vm3, %v3285_v48  ;;  %v3410_v20 = vshrl.u32 %v7403_v26, 16  ;;  %v7414_v51 = vpop.f32.mrb[116].mxu0  ;;  %v3405_v7 = vsel %vm938_vm6, %v3400_v15, %v3404_v45  ;;  %v3423_v13 = vor.u32 %v3421_v16, %v3419_v22  ;;  %v3412_v57 = vshll.u32 %v7403_v26, 16  ;;  %v2699_v30 = vpop.f32.mrb[81].mxu1 }
 0x2fd   : > { %v5199_v25 = vsel %vm305_vm2, %v5155_v42, 0.0  ;;  %v7419_v23 = vpop.f32.mrb[117].mxu0  ;;  %3623 = vrot.lane.b32.xlu0 %v3405_v7, %s5979_s21  ;;  %v3720_v6 = vsel %vm1275_vm7, %v3718_v17, %v3719_v53  ;;  %v3885_v38 = vrot.slane %v3883_v43, 3  ;;  %v3888_v48 = vrot.slane %v3886_v1, 4  ;;  %v7425_v24 = vpop.f32.mrb[82].mxu1  ;;  %v7439_v7 = vld [vmem:[#allocation2 + $0x38] sm:$0xff] }
 0x2fe   : > { %v5200_v37 = vadd.f32 %v5199_v25, %v5198_v62  ;;  %v7423_v31 = vpop.f32.mrb[118].mxu0  ;;  %3629 = vrot.lane.b32.xlu1 %v3423_v13, %s5979_s21  ;;  %v3875_v45 = vshrl.u32 %v3720_v6, 16  ;;  %v3878_v42 = vshll.u32 %v3720_v6, 16  ;;  %v3414_v15 = vrot.slane %v3412_v57, 1  ;;  %v2702_v25 = vpop.f32.mrb[83].mxu1  ;;  %8972 = vst [vmem:[#allocation11_spill] sm:$0xff] %v7439_v7 }
 0x2ff   : > { %v7430_v16 = vadd.f32 %v7378_v32, %v7233_v10  ;;  %v7432_v62 = vpop.f32.mrb[119].mxu0  ;;  %v5203_v53 = vsel %vm305_vm2, %v5157_v27, 0.0  ;;  %v3161_v43 = vadd.f32 %v7287_v39, %v7380_v12  ;;  %v3153_v1 = vadd.f32 %v7287_v39, %v7385_v28  ;;  %v8973_v28 = vld [vmem:[#allocation17_spill] sm:$0xff] }
 0x300   : > { %v5202_v17 = vadd.f32 %v5201_v46, %v5200_v37  ;;  %v3877_v13 = vrot.slane %v3875_v45, 3  ;;  %v3880_v57 = vrot.slane %v3878_v42, 4  ;;  %v3889_v30 = vor.u32 %v3888_v48, %v3885_v38 }
 0x301   : > { %8971 = vst [vmem:[#allocation10_spill] sm:$0xff] %v7430_v16  ;;  %v3415_v6 = vor.u32 %v3414_v15, %v3410_v20  ;;  %v3233_v10 = vmax.f32 %v3161_v43, 0.0  ;;  %v3231_v32 = vmax.f32 %v3153_v1, 0.0  ;;  %v3164_v25 = vadd.f32 %v7287_v39, %v7392_v49 }
 0x302   : > { %v5204_v16 = vadd.f32 %v5203_v53, %v5202_v17  ;;  %v3881_v27 = vor.u32 %v3880_v57, %v3877_v13  ;;  %v3432_v12 = vshll.u32 %v7439_v7, 16  ;;  %v8974_v37 = vmax.f32 %v8973_v28, 0.0  ;;  %v8977_v17 = vld [vmem:[#allocation16_spill] sm:$0xff] }
 0x303   : > { %v3420_v46 = vsel %vm938_vm6, %v3415_v6, %v3419_v22  ;;  %v3234_v45 = vmax.f32 %v3164_v25, 0.0  ;;  %v3436_v38 = vshrl.u32 %v7439_v7, 16  ;;  %v7449_v20 = vpop.f32.mrb[84].mxu1  ;;  %v7451_v48 = vpop.f32.mrb[120].mxu0  ;;  %v7458_v22 = vadd.f32 %v7394_v35, %v7235_v19  ;;  %v7466_v6 = vld [vmem:[#allocation2 + $0x30] sm:$0xff]  ;;  %v7474_v35 = vld [vmem:[#allocation2 + $0x48] sm:$0xff] }
 0x304   : > { %3627 = vrot.lane.b32.xlu0 %v3420_v46, %s5979_s21  ;;  %v5126_v54 = vsub.f32 %v8974_v37, %v3231_v32  ;;  %v7454_v42 = vsel %vm1388_vm8, %v3881_v27, %v3889_v30  ;;  %v3434_v49 = vrot.slane %v3432_v12, 1  ;;  %v2707_v15 = vpop.f32.mrb[85].mxu1  ;;  %v7460_v53 = vpop.f32.mrb[121].mxu0  ;;  %v8978_v43 = vmax.f32 %v8977_v17, 0.0  ;;  %8979 = vst [vmem:[#allocation14_spill] sm:$0xff] %v7466_v6  ;;  %8980 = vst [vmem:[#allocation15_spill] sm:$0xff] %v7474_v35 }
 0x305   : > { %8975 = vst [vmem:[#allocation12_spill] sm:$0xff] %v7454_v42  ;;  %8976 = vst [vmem:[#allocation13_spill] sm:$0xff] %v7458_v22  ;;  %5634 = vmatprep.mubr.msk.bf16.mxu0 %vm305_vm2, %v7454_v42  ;;  %v3256_v57 = vpack.c.bf16 %v3234_v45, %v3233_v10  ;;  %v7468_v30 = vpop.f32.mrb[122].mxu0  ;;  %v7470_v25 = vpop.f32.mrb[86].mxu1  ;;  %v3156_v19 = vadd.f32 %v7287_v39, %v7396_v2  ;;  %v3425_v15 = vshrl.u32 %v7466_v6, 16  ;;  %v3427_v17 = vshll.u32 %v7466_v6, 16 }
 0x306   : > { %v5128_v1 = vsub.f32 %v8978_v43, %v3233_v10  ;;  %v5158_v13 = vmul.f32 %v5126_v54, %v5126_v54  ;;  %v3438_v27 = vor.u32 %v3436_v38, %v3434_v49  ;;  %v7476_v46 = vpop.f32.mrb[123].mxu0  ;;  %v2710_v12 = vpop.f32.mrb[87].mxu1  ;;  %v7482_v38 = vld [vmem:[#allocation2 + $0x40] sm:$0xff]  ;;  %v8982_v2 = vld [vmem:[#allocation18_spill] sm:$0xff] }
 0x307   : > { %v3288_v37 = vrot.slane %v3256_v57, 4  ;;  %v3232_v10 = vmax.f32 %v3156_v19, 0.0  ;;  %8981 = vst [vmem:[#allocation17_spill] sm:$0xff] %v7482_v38  ;;  %v8983_v12 = vmax.f32 %v8982_v2, 0.0  ;;  %v3429_v56 = vrot.slane %v3427_v17, 1  ;;  %v7493_v42 = vld [vmem:[#allocation2 + $0x118] sm:$0xff] }
 0x308   : > { %v5205_v28 = vsel %vm305_vm2, %v5158_v13, 0.0  ;;  %3633 = vrot.lane.b32.xlu1 %v3438_v27, %s5979_s21  ;;  %v5160_v43 = vmul.f32 %v5128_v1, %v5128_v1  ;;  %v3447_v13 = vshll.u32 %v7474_v35, 16  ;;  %v8984_v27 = vld [vmem:[#allocation19_spill] sm:$0xff]  ;;  %v3440_v63 = vshrl.u32 %v7482_v38, 16 }
 0x309   : > { %v5206_v54 = vadd.f32 %v5205_v28, %v5204_v16  ;;  %3329 = vst.msk [vmem:[#allocation2 + $0xa0] sm:$0xf0] %vm330_vm4, %v3288_v37  ;;  %v5129_v22 = vsub.f32 %v8983_v12, %v3234_v45  ;;  %v3451_v16 = vshrl.u32 %v7474_v35, 16  ;;  %v3255_v57 = vpack.c.bf16 %v3232_v10, %v3231_v32 }
 0x30a   : > { %3330 = vst.msk [vmem:[#allocation2 + $0xa8] sm:$0xf] %vm311_vm3, %v3288_v37  ;;  %v8985_v19 = vmax.f32 %v8984_v27, 0.0  ;;  %v3449_v1 = vrot.slane %v3447_v13, 1  ;;  %v3442_v5 = vshll.u32 %v7482_v38, 16  ;;  %v7498_v37 = vadd.f32 %v7412_v41, %v7238_v14 }
 0x30b   : > { %v3177_v45 = vadd.f32 %v7287_v39, %v7414_v51  ;;  %v7502_v2 = vpop.f32.mrb[88].mxu1  ;;  %v7504_v32 = vpop.f32.mrb[124].mxu0  ;;  %v3430_v12 = vor.u32 %v3429_v56, %v3425_v15  ;;  %v7508_v27 = vadd.f32 %v7287_v39, %v7419_v23  ;;  %v5161_v38 = vmul.f32 %v5129_v22, %v5129_v22 }
 0x30c   : > { %v5127_v28 = vsub.f32 %v8985_v19, %v3232_v10  ;;  %8986 = vst [vmem:[#allocation16_spill] sm:$0xff] %v7498_v37  ;;  %v3287_v10 = vrot.slane %v3255_v57, 4  ;;  %v2715_v13 = vpop.f32.mrb[89].mxu1  ;;  %v7510_v19 = vpop.f32.mrb[125].mxu0  ;;  %v3453_v14 = vor.u32 %v3451_v16, %v3449_v1  ;;  %v3444_v41 = vrot.slane %v3442_v5, 1  ;;  %v7512_v37 = vld [vmem:[#allocation2 + $0x58] sm:$0xff] }
 0x30d   : > { %8987 = vst [vmem:[#allocation18_spill] sm:$0xff] %v7512_v37  ;;  %v7514_v51 = vpop.f32.mrb[126].mxu0  ;;  %v2503_v35 = vshll.u32 %v7493_v42, 16  ;;  %v7517_v6 = vpop.f32.mrb[90].mxu1  ;;  %v3435_v23 = vsel %vm938_vm6, %v3430_v12, %v3434_v49  ;;  %v3235_v22 = vmax.f32 %v7508_v27, 0.0  ;;  %v3180_v5 = vadd.f32 %v7287_v39, %v7423_v31 }
 0x30e   : > { %v5159_v17 = vmul.f32 %v5127_v28, %v5127_v28  ;;  %3327 = vst.msk [vmem:[#allocation2 + $0x90] sm:$0xf0] %vm330_vm4, %v3287_v10  ;;  %v7526_v15 = vpop.f32.mrb[127].mxu0  ;;  %v2718_v16 = vpop.f32.mrb[91].mxu1  ;;  %v5209_v57 = vsel %vm305_vm2, %v5160_v43, 0.0  ;;  %3631 = vrot.lane.b32.xlu0 %v3435_v23, %s5979_s21  ;;  %3637 = vrot.lane.b32.xlu1 %v3453_v14, %s5979_s21  ;;  %v3237_v13 = vmax.f32 %v3177_v45, 0.0 }
 0x30f   : > { %3328 = vst.msk [vmem:[#allocation2 + $0x98] sm:$0xf] %vm311_vm3, %v3287_v10  ;;  %v3445_v10 = vor.u32 %v3444_v41, %v3440_v63  ;;  %v3238_v12 = vmax.f32 %v3180_v5, 0.0  ;;  %v3462_v27 = vshll.u32 %v7512_v37, 16  ;;  %v3466_v31 = vshrl.u32 %v7512_v37, 16  ;;  %v7538_v63 = vld [vmem:[#allocation2 + $0x110] sm:$0xff] }
 0x310   : > { %v5207_v56 = vsel %vm305_vm2, %v5159_v17, 0.0  ;;  %v8988_v17 = vld [vmem:[#allocation21_spill] sm:$0xff]  ;;  %v8998_v43 = vld [vmem:[#allocation23_spill] sm:$0xff] }
 0x311   : > { %v5208_v28 = vadd.f32 %v5207_v56, %v5206_v54  ;;  %v8989_v7 = vmax.f32 %v8988_v17, 0.0  ;;  %v3450_v16 = vsel %vm938_vm6, %v3445_v10, %v3449_v1  ;;  %v5211_v54 = vsel %vm305_vm2, %v5161_v38, 0.0  ;;  %v7551_v38 = vld [vmem:[#allocation2 + $0x68] sm:$0xff] }
 0x312   : > { %v3258_v23 = vpack.c.bf16 %v3238_v12, %v3237_v13  ;;  %v3464_v14 = vrot.slane %v3462_v27, 1  ;;  %3635 = vrot.lane.b32.xlu0 %v3450_v16, %s5979_s21  ;;  %v3172_v1 = vadd.f32 %v7287_v39, %v7432_v62  ;;  %v7556_v16 = vrot.slane %v2503_v35, 1 }
 0x313   : > { %v5130_v49 = vsub.f32 %v8989_v7, %v3235_v22  ;;  %v5210_v26 = vadd.f32 %v5209_v57, %v5208_v28  ;;  %v8990_v7 = vld [vmem:[#allocation20_spill] sm:$0xff]  ;;  %v7545_v57 = vadd.f32 %v7425_v24, %v7240_v61  ;;  %v7549_v28 = vld [vmem:[#allocation2 + $0x50] sm:$0xff]  ;;  %v7553_v10 = vpop.f32.mrb[92].mxu1  ;;  %v7558_v61 = vld [vmem:[#allocation2 + $0x60] sm:$0xff]  ;;  %v2498_v62 = vshll.u32 %v7538_v63, 16 }
 0x314   : > { %v8991_v45 = vmax.f32 %v8990_v7, 0.0  ;;  %8993 = vst [vmem:[#allocation21_spill] sm:$0xff] %v7549_v28  ;;  %8994 = vst [vmem:[#allocation20_spill] sm:$0xff] %v7551_v38  ;;  %v3468_v27 = vor.u32 %v3466_v31, %v3464_v14  ;;  %v3455_v35 = vshrl.u32 %v7549_v28, 16  ;;  %v3457_v31 = vshll.u32 %v7549_v28, 16 }
 0x315   : > { %v5162_v56 = vmul.f32 %v5130_v49, %v5130_v49  ;;  %v5212_v5 = vadd.f32 %v5211_v54, %v5210_v26  ;;  %8992 = vst [vmem:[#allocation19_spill] sm:$0xff] %v7545_v57  ;;  %v3290_v49 = vrot.slane %v3258_v23, 4  ;;  %v2723_v26 = vpop.f32.mrb[93].mxu1  ;;  %v3236_v54 = vmax.f32 %v3172_v1, 0.0  ;;  %8995 = vst [vmem:[#allocation37_spill] sm:$0xff] %v7558_v61  ;;  %v8996_v1 = vld [vmem:[#allocation22_spill] sm:$0xff] }
 0x316   : > { %v5132_v41 = vsub.f32 %v8991_v45, %v3237_v13  ;;  %v7562_v7 = vpop.f32.mrb[94].mxu1  ;;  %3641 = vrot.lane.b32.xlu1 %v3468_v27, %s5979_s21  ;;  %v3481_v23 = vshrl.u32 %v7551_v38, 16  ;;  %v8999_v57 = vmax.f32 %v8998_v43, 0.0  ;;  %v3470_v27 = vshrl.u32 %v7558_v61, 16 }
 0x317   : > { %v5213_v17 = vsel %vm305_vm2, %v5162_v56, 0.0  ;;  %3333 = vst.msk [vmem:[#allocation2 + $0xc0] sm:$0xf0] %vm330_vm4, %v3290_v49  ;;  %v3477_v56 = vshll.u32 %v7551_v38, 16  ;;  %v2726_v45 = vpop.f32.mrb[95].mxu1  ;;  %v3257_v24 = vpack.c.bf16 %v3236_v54, %v3235_v22  ;;  %v3472_v11 = vshll.u32 %v7558_v61, 16 }
 0x318   : > { %v5214_v13 = vadd.f32 %v5213_v17, %v5212_v5  ;;  %3334 = vst.msk [vmem:[#allocation2 + $0xc8] sm:$0xf] %vm311_vm3, %v3290_v49  ;;  %v5164_v5 = vmul.f32 %v5132_v41, %v5132_v41  ;;  %v8997_v17 = vmax.f32 %v8996_v1, 0.0  ;;  %v5131_v37 = vsub.f32 %v8999_v57, %v3236_v54  ;;  %v7587_v57 = vld [vmem:[#allocation2 + $0x78] sm:$0xff] }
 0x319   : > { %v3459_v49 = vrot.slane %v3457_v31, 1  ;;  %v3479_v36 = vrot.slane %v3477_v56, 1  ;;  %v3289_v28 = vrot.slane %v3257_v24, 4  ;;  %v7579_v38 = vadd.f32 %v7449_v20, %v7242_v44 }
 0x31a   : > { %v5133_v26 = vsub.f32 %v8997_v17, %v3238_v12  ;;  %v5163_v21 = vmul.f32 %v5131_v37, %v5131_v37  ;;  %v3193_v41 = vadd.f32 %v7287_v39, %v7451_v48  ;;  %v3474_v45 = vrot.slane %v3472_v11, 1 }
 0x31b   : > { %9000 = vst [vmem:[#allocation22_spill] sm:$0xff] %v7579_v38  ;;  %v3460_v12 = vor.u32 %v3459_v49, %v3455_v35  ;;  %v3483_v22 = vor.u32 %v3481_v23, %v3479_v36  ;;  %v7585_v43 = vadd.f32 %v7287_v39, %v7460_v53  ;;  %3331 = vst.msk [vmem:[#allocation2 + $0xb0] sm:$0xf0] %vm330_vm4, %v3289_v28  ;;  %v2500_v48 = vrot.slane %v2498_v62, 1  ;;  %v7594_v37 = vpop.f32.mrb[96].mxu1 }
 0x31c   : > { %v5165_v54 = vmul.f32 %v5133_v26, %v5133_v26  ;;  %3332 = vst.msk [vmem:[#allocation2 + $0xb8] sm:$0xf] %vm311_vm3, %v3289_v28  ;;  %v5215_v44 = vsel %vm305_vm2, %v5163_v21, 0.0  ;;  %v3196_v20 = vadd.f32 %v7287_v39, %v7468_v30  ;;  %v3475_v53 = vor.u32 %v3474_v45, %v3470_v27  ;;  %v2731_v31 = vpop.f32.mrb[97].mxu1 }
 0x31d   : > { %v5216_v11 = vadd.f32 %v5215_v44, %v5214_v13  ;;  %v3465_v24 = vsel %vm938_vm6, %v3460_v12, %v3464_v14  ;;  %3645 = vrot.lane.b32.xlu1 %v3483_v22, %s5979_s21  ;;  %v3239_v35 = vmax.f32 %v7585_v43, 0.0  ;;  %v5217_v56 = vsel %vm305_vm2, %v5164_v5, 0.0  ;;  %v7602_v62 = vpop.f32.mrb[98].mxu1  ;;  %v9001_v14 = vld [vmem:[#allocation25_spill] sm:$0xff]  ;;  %v7609_v22 = vld [vmem:[#allocation2 + $0x8] sm:$0xff] }
 0x31e   : > { %3639 = vrot.lane.b32.xlu0 %v3465_v24, %s5979_s21  ;;  %v3241_v21 = vmax.f32 %v3193_v41, 0.0  ;;  %v3242_v28 = vmax.f32 %v3196_v20, 0.0  ;;  %v3492_v30 = vshll.u32 %v7587_v57, 16  ;;  %v3480_v13 = vsel %vm938_vm6, %v3475_v53, %v3479_v36  ;;  %v2734_v49 = vpop.f32.mrb[99].mxu1  ;;  %v7615_v44 = vld [vmem:[#allocation2 + $0x70] sm:$0xff]  ;;  %v7617_v36 = vld [vmem:[#allocation2 + $0x88] sm:$0xff] }
 0x31f   : > { %v5218_v23 = vadd.f32 %v5217_v56, %v5216_v11  ;;  %v9002_v1 = vmax.f32 %v9001_v14, 0.0  ;;  %v3496_v26 = vshrl.u32 %v7587_v57, 16  ;;  %v5219_v27 = vsel %vm305_vm2, %v5165_v54, 0.0  ;;  %9004 = vst [vmem:[#allocation25_spill] sm:$0xff] %v7615_v44  ;;  %v9009_v49 = vld [vmem:[#allocation26_spill] sm:$0xff] }
 0x320   : > { %v3260_v5 = vpack.c.bf16 %v3242_v28, %v3241_v21  ;;  %v3494_v12 = vrot.slane %v3492_v30, 1  ;;  %v7613_v43 = vadd.f32 %v7470_v25, %v7244_v58  ;;  %v9005_v54 = vshrl.u32 %v7493_v42, 16  ;;  %v7628_v58 = vld [vmem:[#allocation2 + $0x80] sm:$0xff] }
 0x321   : > { %v5134_v17 = vsub.f32 %v9002_v1, %v3239_v35  ;;  %v5220_v45 = vadd.f32 %v5219_v27, %v5218_v23  ;;  %v3188_v31 = vadd.f32 %v7287_v39, %v7476_v46  ;;  %v9006_v25 = vshrl.u32 %v7538_v63, 16 }
 0x322   : > { %9003 = vst [vmem:[#allocation23_spill] sm:$0xff] %v7613_v43  ;;  %3643 = vrot.lane.b32.xlu0 %v3480_v13, %s5979_s21  ;;  %v3292_v20 = vrot.slane %v3260_v5, 4  ;;  %v3498_v11 = vor.u32 %v3496_v26, %v3494_v12  ;;  %v7623_v24 = vor.u32 %v9005_v54, %v7556_v16  ;;  %v3387_v30 = vshll.u32 %v7609_v22, 16 }
 0x323   : > { %v5166_v41 = vmul.f32 %v5134_v17, %v5134_v17  ;;  %v7632_v56 = vor.u32 %v2500_v48, %v9006_v25  ;;  %v3485_v13 = vshrl.u32 %v7615_v44, 16  ;;  %v3487_v14 = vshll.u32 %v7615_v44, 16  ;;  %v7641_v1 = vpop.f32.mrb[100].mxu1  ;;  %v9007_v17 = vld [vmem:[#allocation24_spill] sm:$0xff]  ;;  %v9011_v44 = vld [vmem:[#allocation27_spill] sm:$0xff] }
 0x324   : > { %3337 = vst.msk [vmem:[#allocation2 + $0xe0] sm:$0xf0] %vm330_vm4, %v3292_v20  ;;  %3649 = vrot.lane.b32.xlu1 %v3498_v11, %s5979_s21  ;;  %v3507_v46 = vshll.u32 %v7617_v36, 16  ;;  %v9008_v48 = vmax.f32 %v9007_v17, 0.0  ;;  %v9010_v27 = vmax.f32 %v9009_v49, 0.0  ;;  %v3502_v25 = vshll.u32 %v7628_v58, 16 }
 0x325   : > { %v5221_v53 = vsel %vm305_vm2, %v5166_v41, 0.0  ;;  %3338 = vst.msk [vmem:[#allocation2 + $0xe8] sm:$0xf] %vm311_vm3, %v3292_v20  ;;  %v3240_v41 = vmax.f32 %v3188_v31, 0.0  ;;  %v2739_v20 = vpop.f32.mrb[101].mxu1  ;;  %v3489_v54 = vrot.slane %v3487_v14, 1  ;;  %v3201_v49 = vadd.f32 %v7287_v39, %v7510_v19 }
 0x326   : > { %v5222_v23 = vadd.f32 %v5221_v53, %v5220_v45  ;;  %v5136_v26 = vsub.f32 %v9008_v48, %v3241_v21  ;;  %v5137_v5 = vsub.f32 %v9010_v27, %v3242_v28  ;;  %v3511_v45 = vshrl.u32 %v7617_v36, 16  ;;  %v7650_v43 = vpop.f32.mrb[102].mxu1 }
 0x327   : > { %v3509_v11 = vrot.slane %v3507_v46, 1  ;;  %v3500_v53 = vshrl.u32 %v7628_v58, 16  ;;  %v3259_v38 = vpack.c.bf16 %v3240_v41, %v3239_v35  ;;  %v9012_v61 = vmax.f32 %v9011_v44, 0.0  ;;  %v2742_v31 = vpop.f32.mrb[103].mxu1 }
 0x328   : > { %v7656_v21 = vadd.f32 %v7502_v2, %v7246_v4  ;;  %v7660_v28 = vadd.f32 %v7287_v39, %v7504_v32  ;;  %v3490_v14 = vor.u32 %v3489_v54, %v3485_v13  ;;  %v3504_v48 = vrot.slane %v3502_v25, 1  ;;  %v7671_v13 = vld [vmem:[#allocation2 + $0x98] sm:$0xff]  ;;  %v9015_v54 = vld [vmem:[#allocation29_spill] sm:$0xff] }
 0x329   : > { %v5135_v17 = vsub.f32 %v9012_v61, %v3240_v41  ;;  %v3513_v46 = vor.u32 %v3511_v45, %v3509_v11  ;;  %v5168_v27 = vmul.f32 %v5136_v26, %v5136_v26  ;;  %v3291_v35 = vrot.slane %v3259_v38, 4  ;;  %v7673_v41 = vld [vmem:[#allocation2] sm:$0xff] }
 0x32a   : > { %9013 = vst [vmem:[#allocation24_spill] sm:$0xff] %v7656_v21  ;;  %v3391_v61 = vshrl.u32 %v7609_v22, 16  ;;  %v3495_v44 = vsel %vm938_vm6, %v3490_v14, %v3494_v12  ;;  %v3505_v4 = vor.u32 %v3504_v48, %v3500_v53  ;;  %v3243_v2 = vmax.f32 %v3201_v49, 0.0 }
 0x32b   : > { %v5167_v20 = vmul.f32 %v5135_v17, %v5135_v17  ;;  %3653 = vrot.lane.b32.xlu1 %v3513_v46, %s5979_s21  ;;  %v7669_v32 = vadd.f32 %v7287_v39, %v7514_v51  ;;  %v5169_v19 = vmul.f32 %v5137_v5, %v5137_v5  ;;  %3335 = vst.msk [vmem:[#allocation2 + $0xd0] sm:$0xf0] %vm330_vm4, %v3291_v35  ;;  %v8884_v12 = vmax.f32 %v7660_v28, 0.0  ;;  %v7688_v17 = vpop.f32.mrb[104].mxu1 }
 0x32c   : > { %3336 = vst.msk [vmem:[#allocation2 + $0xd8] sm:$0xf] %vm311_vm3, %v3291_v35  ;;  %3647 = vrot.lane.b32.xlu0 %v3495_v44, %s5979_s21  ;;  %v7682_v26 = vadd.f32 %v7517_v6, %v7248_v8  ;;  %v3510_v45 = vsel %vm938_vm6, %v3505_v4, %v3509_v11  ;;  %v9016_v53 = vmax.f32 %v9015_v54, 0.0  ;;  %v5225_v31 = vsel %vm305_vm2, %v5168_v27, 0.0  ;;  %v2747_v6 = vpop.f32.mrb[105].mxu1  ;;  %v7709_v44 = vld [vmem:[#allocation2 + $0x90] sm:$0xff] }
 0x32d   : > { %v5223_v38 = vsel %vm305_vm2, %v5167_v20, 0.0  ;;  %v8883_v25 = vmax.f32 %v7669_v32, 0.0  ;;  %v7693_v14 = vadd.f32 %v7287_v39, %v7526_v15  ;;  %v3522_v46 = vshll.u32 %v7671_v13, 16  ;;  %v7703_v27 = vpop.f32.mrb[106].mxu1 }
 0x32e   : > { %9014 = vst [vmem:[#allocation26_spill] sm:$0xff] %v7682_v26  ;;  %v5224_v51 = vadd.f32 %v5223_v38, %v5222_v23  ;;  %v5138_v5 = vsub.f32 %v9016_v53, %v3243_v2  ;;  %v3382_v8 = vshll.u32 %v7673_v41, 16  ;;  %v3389_v49 = vrot.slane %v3387_v30, 1  ;;  %v2750_v4 = vpop.f32.mrb[107].mxu1 }
 0x32f   : > { %v3262_v48 = vpack.c.bf16 %v8883_v25, %v8884_v12  ;;  %2512 = vrot.lane.b32.xlu1 %v7623_v24, %s5979_s21  ;;  %v5227_v39 = vsel %vm305_vm2, %v5169_v19, 0.0  ;;  %v8885_v15 = vmax.f32 %v7693_v14, 0.0  ;;  %v3524_v35 = vrot.slane %v3522_v46, 1  ;;  %v7717_v19 = vld [vmem:[#allocation2 + $0xa8] sm:$0xff] }
 0x330   : > { %v5226_v23 = vadd.f32 %v5225_v31, %v5224_v51  ;;  %v5170_v11 = vmul.f32 %v5138_v5, %v5138_v5  ;;  %3651 = vrot.lane.b32.xlu0 %v3510_v45, %s5979_s21  ;;  %v3526_v20 = vshrl.u32 %v7671_v13, 16  ;;  %v7715_v30 = vsel %vm938_vm6, %v7632_v56, %v7556_v16 }
 0x331   : > { %v3294_v54 = vrot.slane %v3262_v48, 4  ;;  %v3261_v45 = vpack.c.bf16 %v8885_v15, %v3243_v2  ;;  %v3380_v5 = vshrl.u32 %v7673_v41, 16  ;;  %v3384_v31 = vrot.slane %v3382_v8, 1  ;;  %v7740_v48 = vld [vmem:[#allocation2 + $0xa0] sm:$0xff] }
 0x332   : > { %v5228_v38 = vadd.f32 %v5227_v39, %v5226_v23  ;;  %v5229_v51 = vsel %vm305_vm2, %v5170_v11, 0.0  ;;  %v3528_v53 = vor.u32 %v3526_v20, %v3524_v35  ;;  %v3515_v6 = vshrl.u32 %v7709_v44, 16 }
 0x333   : > { %3341 = vst.msk [vmem:[#allocation2 + $0x100] sm:$0xf0] %vm330_vm4, %v3294_v54  ;;  %v3517_v16 = vshll.u32 %v7709_v44, 16  ;;  %v7730_v56 = vadd.f32 %v7553_v10, %v7250_v55  ;;  %v3293_v23 = vrot.slane %v3261_v45, 4  ;;  %v3393_v2 = vor.u32 %v3391_v61, %v3389_v49  ;;  %v7743_v55 = vld [vmem:[#allocation2 + $0xb8] sm:$0xff]  ;;  %v7745_v10 = vpop.f32.mrb[108].mxu1 }
 0x334   : > { %v7722_v46 = vadd.f32 %v5229_v51, %v5228_v38  ;;  %3342 = vst.msk [vmem:[#allocation2 + $0x108] sm:$0xf] %vm311_vm3, %v3294_v54  ;;  %2510 = vrot.lane.b32.xlu0 %v7715_v30, %s5979_s21  ;;  %3657 = vrot.lane.b32.xlu1 %v3528_v53, %s5979_s21  ;;  %v7737_v8 = vadd.f32 %v7562_v7, %v7252_v50  ;;  %v3537_v11 = vshll.u32 %v7717_v19, 16  ;;  %v3541_v20 = vshrl.u32 %v7717_v19, 16  ;;  %v2755_v38 = vpop.f32.mrb[109].mxu1  ;;  %v7755_v45 = vld [vmem:[#allocation2 + $0xb0] sm:$0xff] }
 0x335   : > { %9017 = vst [vmem:[#allocation27_spill] sm:$0xff] %v7730_v56  ;;  %v3519_v39 = vrot.slane %v3517_v16, 1  ;;  %3339 = vst.msk [vmem:[#allocation2 + $0xf0] sm:$0xf0] %vm330_vm4, %v3293_v23  ;;  %v3385_v61 = vor.u32 %v3384_v31, %v3380_v5  ;;  %v3530_v7 = vshrl.u32 %v7740_v48, 16  ;;  %v3532_v51 = vshll.u32 %v7740_v48, 16 }
 0x336   : > { %9018 = vst [vmem:[#allocation29_spill] sm:$0xff] %v7737_v8  ;;  %3340 = vst.msk [vmem:[#allocation2 + $0xf8] sm:$0xf] %vm311_vm3, %v3293_v23  ;;  %v3539_v4 = vrot.slane %v3537_v11, 1  ;;  %v7753_v54 = vadd.f32 %v7594_v37, %v7254_v52  ;;  %v7757_v53 = vpop.f32.mrb[110].mxu1  ;;  %v3552_v5 = vshll.u32 %v7743_v55, 16  ;;  %v7768_v37 = vadd.f32 %v7602_v62, %v7256_v0 }
 0x337   : > { %v3520_v50 = vor.u32 %v3519_v39, %v3515_v6  ;;  %v3556_v31 = vshrl.u32 %v7743_v55, 16  ;;  %v7762_v6 = vld [vmem:[#allocation2 + $0xc8] sm:$0xff]  ;;  %v2758_v23 = vpop.f32.mrb[111].mxu1  ;;  %v3534_v39 = vrot.slane %v3532_v51, 1  ;;  %v3390_v38 = vsel %vm938_vm6, %v3385_v61, %v3389_v49  ;;  %v3371_v56 = vld [vmem:[#allocation2 + $0xe0] sm:$0xff] }
 0x338   : > { %9019 = vst [vmem:[#allocation38_spill] sm:$0xff] %v7753_v54  ;;  %3621 = vrot.lane.b32.xlu1 %v3393_v2, %s5979_s21  ;;  %v3543_v16 = vor.u32 %v3541_v20, %v3539_v4  ;;  %v3554_v52 = vrot.slane %v3552_v5, 1  ;;  %9020 = vst [vmem:[#allocation39_spill] sm:$0xff] %v7768_v37  ;;  %v3547_v2 = vshll.u32 %v7755_v45, 16  ;;  %v7771_v20 = vld [vmem:[#allocation2 + $0xc0] sm:$0xff]  ;;  %v3545_v12 = vshrl.u32 %v7755_v45, 16 }
 0x339   : > { %v3525_v11 = vsel %vm938_vm6, %v3520_v50, %v3524_v35  ;;  %v3535_v25 = vor.u32 %v3534_v39, %v3530_v7  ;;  %v3567_v23 = vshll.u32 %v7762_v6, 16  ;;  %v3370_v35 = vld [vmem:[#allocation2 + $0xd8] sm:$0xff]  ;;  %v3571_v5 = vshrl.u32 %v7762_v6, 16  ;;  %v3369_v39 = vld [vmem:[#allocation2 + $0xd0] sm:$0xff] }
 0x33a   : > { %3655 = vrot.lane.b32.xlu0 %v3525_v11, %s5979_s21  ;;  %v3558_v50 = vor.u32 %v3556_v31, %v3554_v52  ;;  %v3549_v51 = vrot.slane %v3547_v2, 1  ;;  %v3562_v62 = vshll.u32 %v7771_v20, 16  ;;  %v7785_v61 = vadd.f32 %v7641_v1, %v7258_v60 }
 0x33b   : > { %v3569_v0 = vrot.slane %v3567_v23, 1  ;;  %v7779_v11 = vpop.f32.mrb[112].mxu1  ;;  %v3540_v49 = vsel %vm938_vm6, %v3535_v25, %v3539_v4  ;;  %v3582_v7 = vshll.u32 %v3370_v35, 16  ;;  %v3560_v15 = vshrl.u32 %v7771_v20, 16 }
 0x33c   : > { %3661 = vrot.lane.b32.xlu1 %v3543_v16, %s5979_s21  ;;  %9021 = vst [vmem:[#allocation40_spill] sm:$0xff] %v7785_v61  ;;  %v3372_v16 = vld [vmem:[#allocation2 + $0xe8] sm:$0xff]  ;;  %v2763_v31 = vpop.f32.mrb[113].mxu1  ;;  %v3550_v2 = vor.u32 %v3549_v51, %v3545_v12  ;;  %v3564_v23 = vrot.slane %v3562_v62, 1  ;;  %v3586_v37 = vshrl.u32 %v3370_v35, 16  ;;  %v7791_v25 = vadd.f32 %v7650_v43, %v7260_v59  ;;  %v3373_v43 = vld [vmem:[#allocation2 + $0xf0] sm:$0xff] }
 0x33d   : > { %v2764_v54 = vpop.f32.mrb[114].mxu1  ;;  %v3573_v8 = vor.u32 %v3571_v5, %v3569_v0  ;;  %v3575_v1 = vshrl.u32 %v3369_v39, 16  ;;  %v3577_v4 = vshll.u32 %v3369_v39, 16  ;;  %v3597_v61 = vshll.u32 %v3372_v16, 16  ;;  %v3374_v12 = vld [vmem:[#allocation2 + $0xf8] sm:$0xff] }
 0x33e   : > { %3619 = vrot.lane.b32.xlu0 %v3390_v38, %s5979_s21  ;;  %v3584_v38 = vrot.slane %v3582_v7, 1  ;;  %9022 = vst [vmem:[#allocation41_spill] sm:$0xff] %v7791_v25  ;;  %v2766_v60 = vpop.f32.mrb[115].mxu1  ;;  %v3555_v51 = vsel %vm938_vm6, %v3550_v2, %v3554_v52  ;;  %v3565_v35 = vor.u32 %v3564_v23, %v3560_v15  ;;  %v3601_v5 = vshrl.u32 %v3372_v16, 16  ;;  %v3376_v15 = vld [vmem:[#allocation2 + $0x108] sm:$0xff] }
 0x33f   : > { %v3579_v31 = vrot.slane %v3577_v4, 1  ;;  %v3592_v7 = vshll.u32 %v3371_v56, 16  ;;  %v7798_v59 = vadd.f32 %v7688_v17, %v7262_v18  ;;  %v9024_v39 = vmax.f32 %v7693_v14, 0.0  ;;  %v9025_v60 = vld [vmem:[#allocation31_spill] sm:$0xff] }
 0x340   : > { %3665 = vrot.lane.b32.xlu1 %v3558_v50, %s5979_s21  ;;  %v3588_v62 = vor.u32 %v3586_v37, %v3584_v38  ;;  %v3599_v50 = vrot.slane %v3597_v61, 1  ;;  %v3612_v52 = vshll.u32 %v3374_v12, 16  ;;  %v3616_v16 = vshrl.u32 %v3374_v12, 16 }
 0x341   : > { %9023 = vst [vmem:[#allocation42_spill] sm:$0xff] %v7798_v59  ;;  %v3580_v26 = vor.u32 %v3579_v31, %v3575_v1  ;;  %v3594_v61 = vrot.slane %v3592_v7, 1  ;;  %v7807_v2 = vadd.f32 %v7703_v27, %v7264_v34  ;;  %v3570_v17 = vsel %vm938_vm6, %v3565_v35, %v3569_v0  ;;  %v9032_v27 = vld [vmem:[#allocation30_spill] sm:$0xff] }
 0x342   : > { %3659 = vrot.lane.b32.xlu0 %v3540_v49, %s5979_s21  ;;  %v9026_v49 = vmax.f32 %v9025_v60, 0.0  ;;  %v3614_v14 = vrot.slane %v3612_v52, 1  ;;  %v3607_v23 = vshll.u32 %v3373_v43, 16  ;;  %v3603_v1 = vor.u32 %v3601_v5, %v3599_v50 }
 0x343   : > { %v2769_v37 = vpop.f32.mrb[116].mxu1  ;;  %9027 = vst [vmem:[#allocation31_spill] sm:$0xff] %v7807_v2  ;;  %v4363_v31 = vshll.u32 %v3376_v15, 16  ;;  %v9031_v34 = vmax.f32 %v7669_v32, 0.0  ;;  %v3585_v35 = vsel %vm938_vm6, %v3580_v26, %v3584_v38  ;;  %v3605_v52 = vshrl.u32 %v3373_v43, 16 }
 0x344   : > { %3669 = vrot.lane.b32.xlu1 %v3573_v8, %s5979_s21  ;;  %v5139_v25 = vsub.f32 %v9026_v49, %v9024_v39  ;;  %v3590_v8 = vshrl.u32 %v3371_v56, 16  ;;  %v2771_v18 = vpop.f32.mrb[117].mxu1  ;;  %v3375_v39 = vld [vmem:[#allocation2 + $0x100] sm:$0xff]  ;;  %v9028_v56 = vmax.f32 %v7660_v28, 0.0  ;;  %v9033_v49 = vmax.f32 %v9032_v27, 0.0 }
 0x345   : > { %v2772_v4 = vpop.f32.mrb[118].mxu1  ;;  %v3618_v5 = vor.u32 %v3616_v16, %v3614_v14  ;;  %v3609_v2 = vrot.slane %v3607_v23, 1  ;;  %v4358_v59 = vshll.u32 %v3375_v39, 16  ;;  %v7823_v28 = vadd.f32 %v7745_v10, %v7266_v40  ;;  %v9042_v23 = vld [vmem:[#allocation33_spill] sm:$0xff] }
 0x346   : > { %3663 = vrot.lane.b32.xlu0 %v3555_v51, %s5979_s21  ;;  %v2774_v60 = vpop.f32.mrb[119].mxu1  ;;  %v9029_v51 = vld [vmem:[#allocation28_spill] sm:$0xff]  ;;  %v5141_v18 = vsub.f32 %v9033_v49, %v9031_v34  ;;  %v5171_v0 = vmul.f32 %v5139_v25, %v5139_v25  ;;  %v7827_v32 = vadd.f32 %v7757_v53, %v7268_v3  ;;  %v4365_v25 = vrot.slane %v4363_v31, 1 }
 0x347   : > { %v9030_v12 = vmax.f32 %v9029_v51, 0.0  ;;  %v4367_v60 = vshrl.u32 %v3376_v15, 16  ;;  %9034 = vst [vmem:[#allocation28_spill] sm:$0xff] %v7823_v28  ;;  %v7832_v26 = vadd.f32 %v7779_v11, %v7270_v33  ;;  %v7835_v38 = vadd.f32 %v2764_v54, %v7272_v29  ;;  %v9040_v29 = vld [vmem:[#allocation32_spill] sm:$0xff] }
 0x348   : > { %3673 = vrot.lane.b32.xlu1 %v3588_v62, %s5979_s21  ;;  %v3595_v62 = vor.u32 %v3594_v61, %v3590_v8  ;;  %9035 = vst [vmem:[#allocation30_spill] sm:$0xff] %v7827_v32  ;;  %v7838_v43 = vadd.f32 %v2769_v37, %v7274_v47  ;;  %v5231_v10 = vsel %vm305_vm2, %v5171_v0, 0.0  ;;  %v7844_v53 = vadd.f32 %v2772_v4, %v7276_v9 }
 0x349   : > { %v5140_v7 = vsub.f32 %v9030_v12, %v9028_v56  ;;  %9036 = vst [vmem:[#allocation43_spill] sm:$0xff] %v7832_v26  ;;  %9037 = vst [vmem:[#allocation44_spill] sm:$0xff] %v7835_v38  ;;  %v3610_v33 = vor.u32 %v3609_v2, %v3605_v52  ;;  %v4356_v11 = vshrl.u32 %v3375_v39, 16  ;;  %v4360_v61 = vrot.slane %v4358_v59, 1  ;;  %v8073_v26 = vld [vmem:[%s8797_s4 + $0xf8] sm:$0xff]  }
 0x34a   : > { %3667 = vrot.lane.b32.xlu0 %v3570_v17, %s5979_s21  ;;  %9038 = vst [vmem:[#allocation45_spill] sm:$0xff] %v7838_v43  ;;  %v3600_v3 = vsel %vm938_vm6, %v3595_v62, %v3599_v50  ;;  %9039 = vst [vmem:[#allocation46_spill] sm:$0xff] %v7844_v53  ;;  %v5173_v37 = vmul.f32 %v5141_v18, %v5141_v18  ;;  %v4369_v16 = vor.u32 %v4367_v60, %v4365_v25  ;;  %v9045_v60 = vld [vmem:[#allocation9_spill] sm:$0xff] }
 0x34b   : > { %v2777_v15 = vpop.f32.mrb[120].mxu1  ;;  %v5172_v40 = vmul.f32 %v5140_v7, %v5140_v7  ;;  %v5232_v50 = vadd.f32 %v5231_v10, %v7722_v46  ;;  %v3615_v59 = vsel %vm938_vm6, %v3610_v33, %v3614_v14  ;;  %v4361_v2 = vor.u32 %v4360_v61, %v4356_v11  ;;  %v9048_v33 = vld [vmem:[#allocation14_spill] sm:$0xff] }
 0x34c   : > { %3677 = vrot.lane.b32.xlu1 %v3603_v1, %s5979_s21  ;;  %v2779_v8 = vpop.f32.mrb[121].mxu1  ;;  %v7847_v54 = vadd.f32 %v2777_v15, %v9040_v29  ;;  %v5235_v31 = vsel %vm305_vm2, %v5173_v37, 0.0  ;;  %v2517_v46 = vrot.slane %v7493_v42, 1  ;;  %v2516_v14 = vrot.slane %v7538_v63, 1  ;;  %v5934_v15 = vld [vmem:[#allocation2 + $0x18] sm:$0xff] }
 0x34d   : > { %v2780_v47 = vpop.f32.mrb[122].mxu1  ;;  %v5233_v9 = vsel %vm305_vm2, %v5172_v40, 0.0  ;;  %v4366_v56 = vsel %vm938_vm6, %v4361_v2, %v4365_v25  ;;  %v3721_v42 = vrot.slane %v9045_v60, 1  ;;  %v3724_v11 = vrot.slane %v9048_v33, 1  ;;  %v9051_v60 = vld [vmem:[#allocation18_spill] sm:$0xff] }
 0x34e   : > { %3671 = vrot.lane.b32.xlu0 %v3585_v35, %s5979_s21  ;;  %9041 = vst [vmem:[#allocation32_spill] sm:$0xff] %v7847_v54  ;;  %v2782_v17 = vpop.f32.mrb[123].mxu1  ;;  %v7851_v1 = vadd.f32 %v2780_v47, %v9042_v23  ;;  %v5234_v4 = vadd.f32 %v5233_v9, %v5232_v50  ;;  %v2547_v51 = vshrl.u32 %v2517_v46, 16  ;;  %v2550_v12 = vshll.u32 %v2517_v46, 16  ;;  %v9049_v50 = vld [vmem:[#allocation15_spill] sm:$0xff] }
 0x34f   : > { %v2518_v7 = vsel %vm1275_vm7, %v2516_v14, %v2517_v46  ;;  %v7882_v9 = vrot.slane %v9049_v50, 1 }
 0x350   : > { %3681 = vrot.lane.b32.xlu1 %v3618_v5, %s5979_s21  ;;  %9043 = vst [vmem:[#allocation33_spill] sm:$0xff] %v7851_v1  ;;  %v7859_v39 = vadd.f32 %v5235_v31, %v5234_v4  ;;  %v2539_v34 = vshrl.u32 %v2518_v7, 16  ;;  %v2542_v27 = vshll.u32 %v2518_v7, 16  ;;  %v2549_v49 = vrot.slane %v2547_v51, 3  ;;  %v9044_v5 = vld [vmem:[#allocation8_spill] sm:$0xff]  ;;  %v5935_v51 = vld [vmem:[#allocation2 + $0x10] sm:$0xff] }
 0x351   : > { %v2552_v18 = vrot.slane %v2550_v12, 4  ;;  %v3722_v52 = vrot.slane %v9044_v5, 1  ;;  %v9050_v5 = vld [vmem:[#allocation17_spill] sm:$0xff] }
 0x352   : > { %3675 = vrot.lane.b32.xlu0 %v3600_v3, %s5979_s21  ;;  %v2541_v0 = vrot.slane %v2539_v34, 3  ;;  %v2544_v35 = vrot.slane %v2542_v27, 4  ;;  %v9047_v3 = vld [vmem:[#allocation11_spill] sm:$0xff]  ;;  %v9056_v1 = vld [vmem:[#allocation25_spill] sm:$0xff] }
 0x353   : > { %v2553_v62 = vor.u32 %v2552_v18, %v2549_v49  ;;  %v3723_v10 = vsel %vm1275_vm7, %v3721_v42, %v3722_v52  ;;  %v3725_v8 = vrot.slane %v9047_v3, 1  ;;  %v3915_v61 = vshrl.u32 %v3722_v52, 16 }
 0x354   : > { %4372 = vrot.lane.b32.xlu1 %v4369_v16, %s5979_s21  ;;  %v2545_v25 = vor.u32 %v2544_v35, %v2541_v0  ;;  %v3907_v37 = vshrl.u32 %v3723_v10, 16  ;;  %v3918_v16 = vshll.u32 %v3722_v52, 16  ;;  %v3910_v17 = vshll.u32 %v3723_v10, 16  ;;  %v5936_v35 = vld [vmem:[#allocation2 + $0x28] sm:$0xff] }
 0x355   : > { %v3726_v23 = vsel %vm1275_vm7, %v3724_v11, %v3725_v8  ;;  %v3947_v2 = vshrl.u32 %v3725_v8, 16  ;;  %v3727_v52 = vrot.slane %v9050_v5, 1  ;;  %v7888_v42 = vrot.slane %v9051_v60, 1 }
 0x356   : > { %3679 = vrot.lane.b32.xlu0 %v3615_v59, %s5979_s21  ;;  %v3917_v59 = vrot.slane %v3915_v61, 3  ;;  %v3909_v46 = vrot.slane %v3907_v37, 3  ;;  %v3920_v14 = vrot.slane %v3918_v16, 4  ;;  %v3912_v34 = vrot.slane %v3910_v17, 4 }
 0x357   : > { %v3939_v27 = vshrl.u32 %v3726_v23, 16  ;;  %v3942_v49 = vshll.u32 %v3726_v23, 16  ;;  %v3979_v37 = vshrl.u32 %v7882_v9, 16  ;;  %v3736_v54 = vrot.slane %v9056_v1, 1 }
 0x358   : > { %v3913_v61 = vor.u32 %v3912_v34, %v3909_v46  ;;  %4806 = vrot.lane.b32.xlu1 %v7623_v24, %s5979_s21  ;;  %v5942_v24 = vld [vmem:[#allocation2 + $0x40] sm:$0xff] }
 0x359   : > { %v3941_v23 = vrot.slane %v3939_v27, 3 }
 0x35a   : > { %4370 = vrot.lane.b32.xlu0 %v4366_v56, %s5979_s21 }
 0x35e   : > { %4804 = vrot.lane.b32.xlu0 %v7715_v30, %s5979_s21  ;;  %v7872_v30 = vsel %vm1388_vm8, %v2545_v25, %v2553_v62 }
 0x35f   : > { %9046 = vst [vmem:[#allocation8_spill] sm:$0xff] %v7872_v30  ;;  %5600 = vmatprep.mubr.msk.bf16.mxu1 %vm305_vm2, %v7872_v30 }
 0x367   : > { %v3626_v63 = vpop.permute.xlu1 %3625 }
 0x368   : > { %v3770_v40 = vsel %vm305_vm2, %v5934_v15, %v3626_v63  ;;  %v3949_v63 = vrot.slane %v3947_v2, 3 }
 0x369   : > { %v3866_v29 = vshrl.u32 %v3770_v40, 16  ;;  %v3869_v47 = vshll.u32 %v3770_v40, 16 }
 0x36b   : > { %v3868_v4 = vrot.slane %v3866_v29, 3  ;;  %v3871_v31 = vrot.slane %v3869_v47, 4  ;;  %v3921_v29 = vor.u32 %v3920_v14, %v3917_v59  ;;  %v3950_v47 = vshll.u32 %v3725_v8, 16 }
 0x36d   : > { %v3872_v15 = vor.u32 %v3871_v31, %v3868_v4  ;;  %v3982_v4 = vshll.u32 %v7882_v9, 16  ;;  %v9052_v31 = vld [vmem:[#allocation21_spill] sm:$0xff]  ;;  %v7901_v34 = vsel %vm1388_vm8, %v3913_v61, %v3921_v29  ;;  %v3952_v27 = vrot.slane %v3950_v47, 4 }
 0x36f   : > { %v3624_v56 = vpop.permute.xlu0 %3623  ;;  %v3953_v29 = vor.u32 %v3952_v27, %v3949_v63  ;;  %v7930_v63 = vrot.slane %v7587_v57, 1  ;;  %v4014_v27 = vshll.u32 %v7888_v42, 16 }
 0x370   : > { %v3768_v12 = vsel %vm305_vm2, %v5935_v51, %v3624_v56  ;;  %v3630_v7 = vpop.permute.xlu1 %3629  ;;  %v3944_v56 = vrot.slane %v3942_v49, 4  ;;  %v3729_v51 = vsel %vm1275_vm7, %v3727_v52, %v7882_v9  ;;  %v7906_v9 = vld [vmem:[%s8797_s4 + $0xc0] sm:$0xff]  }
 0x371   : > { %v3859_v18 = vshrl.u32 %v3768_v12, 16  ;;  %v3862_v0 = vshll.u32 %v3768_v12, 16  ;;  %v3774_v62 = vsel %vm305_vm2, %v5936_v35, %v3630_v7  ;;  %v5937_v7 = vld [vmem:[#allocation2 + $0x20] sm:$0xff]  ;;  %v3971_v49 = vshrl.u32 %v3729_v51, 16 }
 0x372   : > { %v3898_v25 = vshrl.u32 %v3774_v62, 16  ;;  %v3901_v11 = vshll.u32 %v3774_v62, 16  ;;  %v3945_v52 = vor.u32 %v3944_v56, %v3941_v23 }
 0x373   : > { %v3861_v40 = vrot.slane %v3859_v18, 3  ;;  %v3864_v10 = vrot.slane %v3862_v0, 4  ;;  %v3730_v18 = vrot.slane %v9052_v31, 1  ;;  %v3974_v0 = vshll.u32 %v3729_v51, 16 }
 0x374   : > { %v3900_v12 = vrot.slane %v3898_v25, 3  ;;  %v3903_v46 = vrot.slane %v3901_v11, 4  ;;  %v9053_v25 = vmov 0   ;;  %v3973_v47 = vrot.slane %v3971_v49, 3 }
 0x375   : > { %v3865_v16 = vor.u32 %v3864_v10, %v3861_v40  ;;  %v3732_v61 = vsel %vm1275_vm7, %v3730_v18, %v7888_v42  ;;  %v7918_v51 = vrot.slane %v7609_v22, 1  ;;  %v4011_v22 = vshrl.u32 %v7888_v42, 16 }
 0x376   : > { %v3628_v17 = vpop.permute.xlu0 %3627  ;;  %v3904_v40 = vor.u32 %v3903_v46, %v3900_v12  ;;  %v4003_v12 = vshrl.u32 %v3732_v61, 16  ;;  %v7940_v46 = vsel %vm1388_vm8, %v3945_v52, %v3953_v29  ;;  %v7944_v49 = vrot.slane %v7617_v36, 1 }
 0x377   : > { %v3772_v2 = vsel %vm305_vm2, %v5937_v7, %v3628_v17  ;;  %v7897_v14 = vsel %vm1388_vm8, %v3865_v16, %v3872_v15  ;;  %v3981_v15 = vrot.slane %v3979_v37, 3  ;;  %v3976_v16 = vrot.slane %v3974_v0, 4 }
 0x378   : > { %v3891_v59 = vshrl.u32 %v3772_v2, 16  ;;  %v3894_v8 = vshll.u32 %v3772_v2, 16  ;;  %4497 = vmatmul.mubr.bf16.vlgmr.msra.gmra.mrb[128].mxu0 %v7897_v14  ;;  %v3984_v17 = vrot.slane %v3982_v4, 4  ;;  %v4006_v2 = vshll.u32 %v3732_v61, 16  ;;  %v9055_v4 = vld [vmem:[#allocation37_spill] sm:$0xff] }
 0x379   : > { %4854 = vmatpush1.bf16.msra.mxu0 %v7906_v9  ;;  %5635 = vmatprep.mubr.msk.bf16.mxu0 %vm305_vm2, %v7901_v34  ;;  %v3733_v18 = vrot.slane %v9055_v4, 1  ;;  %v4110_v32 = vshll.u32 %v7944_v49, 16 }
 0x37a   : > { %v3893_v35 = vrot.slane %v3891_v59, 3  ;;  %v3896_v62 = vrot.slane %v3894_v8, 4  ;;  %v3634_v5 = vpop.permute.xlu1 %3633  ;;  %4855 = vmatprep.subr.bf16.mxu0 %v9053_v25  ;;  %v3977_v59 = vor.u32 %v3976_v16, %v3973_v47  ;;  %v3985_v8 = vor.u32 %v3984_v17, %v3981_v15 }
 0x37b   : > { %v3778_v11 = vsel %vm305_vm2, %v9047_v3, %v3634_v5  ;;  %v9054_v3 = vld [vmem:[#allocation20_spill] sm:$0xff]  ;;  %v7958_v15 = vrot.slane %v4003_v12, 3  ;;  %v4008_v29 = vrot.slane %v4006_v2, 4  ;;  %v7973_v2 = vld [vmem:[%s8797_s4 + $0xd8] sm:$0xff]  }
 0x37c   : > { %v3897_v10 = vor.u32 %v3896_v62, %v3893_v35  ;;  %v3930_v23 = vshrl.u32 %v3778_v11, 16  ;;  %v3933_v56 = vshll.u32 %v3778_v11, 16  ;;  %v7927_v37 = vrot.slane %v9054_v3, 1 }
 0x37d   : > { %5237 = vadd.xlane.f32.xlu0 %v7859_v39  ;;  %v7923_v39 = vld [vmem:[%s8797_s4 + $0xc8] sm:$0xff]   ;;  %v7968_v17 = vsel %vm1388_vm8, %v3977_v59, %v3985_v8 }
 0x37e   : > { %4856 = vmatpush1.bf16.msra.mxu0 %v7923_v39  ;;  %v7935_v7 = vsel %vm1388_vm8, %v3897_v10, %v3904_v40  ;;  %v3932_v0 = vrot.slane %v3930_v23, 3  ;;  %v3935_v35 = vrot.slane %v3933_v56, 4  ;;  %v7951_v40 = vld [vmem:[%s8797_s4 + $0xd0] sm:$0xff]   ;;  %v7960_v10 = vrot.slane %v4011_v22, 3 }
 0x37f   : > { %4857 = vmatprep.subr.bf16.mxu0 %v9053_v25  ;;  %v3735_v47 = vsel %vm1275_vm7, %v3733_v18, %v7927_v37  ;;  %v4043_v4 = vshrl.u32 %v7927_v37, 16  ;;  %v4046_v8 = vshll.u32 %v7927_v37, 16 }
 0x380   : > { %4505 = vmatmul.mubr.bf16.gmra.mrb[132].mxu0 %v7935_v7  ;;  %v3632_v62 = vpop.permute.xlu0 %3631  ;;  %v3638_v5 = vpop.permute.xlu1 %3637  ;;  %v3936_v23 = vor.u32 %v3935_v35, %v3932_v0  ;;  %v4038_v59 = vshll.u32 %v3735_v47, 16 }
 0x381   : > { %5636 = vmatprep.mubr.msk.bf16.mxu0 %vm305_vm2, %v7940_v46  ;;  %v3776_v42 = vsel %vm305_vm2, %v9048_v33, %v3632_v62  ;;  %v3782_v52 = vsel %vm305_vm2, %v9049_v50, %v3638_v5  ;;  %v4016_v50 = vrot.slane %v4014_v27, 4  ;;  %v4035_v62 = vshrl.u32 %v3735_v47, 16 }
 0x382   : > { %4858 = vmatpush1.bf16.msra.mxu0 %v7951_v40  ;;  %v3923_v11 = vshrl.u32 %v3776_v42, 16  ;;  %v3926_v61 = vshll.u32 %v3776_v42, 16  ;;  %v3962_v16 = vshrl.u32 %v3782_v52, 16  ;;  %v3965_v33 = vshll.u32 %v3782_v52, 16 }
 0x383   : > { %4859 = vmatprep.subr.bf16.mxu0 %v9053_v25  ;;  %v3715_v5 = vrot.slane %v7673_v41, 1  ;;  %v4017_v41 = vor.u32 %v4016_v50, %v7960_v10  ;;  %v3854_v10 = vshll.u32 %v7918_v51, 16  ;;  %v8014_v50 = vrot.slane %v7671_v13, 1 }
 0x384   : > { %v3925_v56 = vrot.slane %v3923_v11, 3  ;;  %v3928_v12 = vrot.slane %v3926_v61, 4  ;;  %v3636_v22 = vpop.permute.xlu0 %3635  ;;  %v3964_v42 = vrot.slane %v3962_v16, 3  ;;  %v3967_v52 = vrot.slane %v3965_v33, 4 }
 0x385   : > { %v3780_v18 = vsel %vm305_vm2, %v5942_v24, %v3636_v22  ;;  %v4009_v61 = vor.u32 %v4008_v29, %v7958_v15  ;;  %v7996_v15 = vrot.slane %v4035_v62, 3  ;;  %v7998_v29 = vrot.slane %v4043_v4, 3 }
 0x386   : > { %4860 = vmatpush1.bf16.msra.mxu0 %v7973_v2  ;;  %v3929_v27 = vor.u32 %v3928_v12, %v3925_v56  ;;  %v3955_v0 = vshrl.u32 %v3780_v18, 16  ;;  %v3958_v35 = vshll.u32 %v3780_v18, 16  ;;  %v7991_v56 = vld [vmem:[%s8797_s4 + $0xe0] sm:$0xff]   ;;  %v8000_v16 = vrot.slane %v4046_v8, 4 }
 0x387   : > { %4861 = vmatprep.subr.bf16.mxu0 %v9053_v25  ;;  %v8009_v33 = vsel %vm1275_vm7, %v3715_v5, %v7918_v51  ;;  %v8017_v12 = vrot.slane %v7717_v19, 1  ;;  %v8020_v4 = vrot.slane %v7743_v55, 1  ;;  %v3968_v18 = vor.u32 %v3967_v52, %v3964_v42 }
 0x388   : > { %v3642_v11 = vpop.permute.xlu1 %3641  ;;  %v3957_v53 = vrot.slane %v3955_v0, 3  ;;  %v3960_v22 = vrot.slane %v3958_v35, 4  ;;  %v7986_v37 = vsel %vm1388_vm8, %v3929_v27, %v3936_v23  ;;  %v3851_v23 = vshrl.u32 %v7918_v51, 16  ;;  %v8027_v51 = vld [vmem:[%s8797_s4 + $0xe8] sm:$0xff]  }
 0x389   : > { %v3786_v47 = vsel %vm305_vm2, %v9051_v60, %v3642_v11  ;;  %4513 = vmatmul.mubr.bf16.gmra.mrb[136].mxu0 %v7986_v37  ;;  %v8005_v60 = vrot.slane %v4038_v59, 4  ;;  %v3738_v8 = vsel %vm1275_vm7, %v3736_v54, %v7930_v63  ;;  %v8031_v19 = vsel %vm1388_vm8, %v4009_v61, %v4017_v41 }
 0x38a   : > { %4862 = vmatpush1.bf16.msra.mxu0 %v7991_v56  ;;  %5637 = vmatprep.mubr.msk.bf16.mxu0 %vm305_vm2, %v7968_v17  ;;  %v3994_v24 = vshrl.u32 %v3786_v47, 16  ;;  %v3961_v62 = vor.u32 %v3960_v22, %v3957_v53  ;;  %v3997_v59 = vshll.u32 %v3786_v47, 16  ;;  %v4049_v55 = vor.u32 %v8000_v16, %v7998_v29 }
 0x38b   : > { %4863 = vmatprep.subr.bf16.mxu0 %v9053_v25  ;;  %v3843_v53 = vshrl.u32 %v8009_v33, 16  ;;  %v3846_v0 = vshll.u32 %v8009_v33, 16  ;;  %v4041_v35 = vor.u32 %v8005_v60, %v7996_v15  ;;  %v8040_v5 = vrot.slane %v3851_v23, 3  ;;  %v8055_v15 = vld [vmem:[%s8797_s4 + $0xf0] sm:$0xff]  }
 0x38c   : > { %v8042_v42 = vrot.slane %v3854_v10, 4  ;;  %v3739_v52 = vrot.slane %v7628_v58, 1  ;;  %v3996_v11 = vrot.slane %v3994_v24, 3  ;;  %v4067_v47 = vshrl.u32 %v3738_v8, 16 }
 0x38d   : > { %v3999_v41 = vrot.slane %v3997_v59, 4  ;;  %v8050_v33 = vsel %vm1388_vm8, %v3961_v62, %v3968_v18  ;;  %v4070_v60 = vshll.u32 %v3738_v8, 16  ;;  %v4078_v23 = vshll.u32 %v7930_v63, 16 }
 0x38e   : > { %4864 = vmatpush1.bf16.msra.mxu0 %v8027_v51  ;;  %v3741_v59 = vsel %vm1275_vm7, %v3739_v52, %v7944_v49 }
 0x38f   : > { %v3646_v27 = vpop.permute.xlu1 %3645  ;;  %4865 = vmatprep.subr.bf16.mxu0 %v9053_v25  ;;  %v4099_v52 = vshrl.u32 %v3741_v59, 16 }
 0x390   : > { %v3640_v54 = vpop.permute.xlu0 %3639  ;;  %v3790_v22 = vsel %vm305_vm2, %v9054_v3, %v3646_v27  ;;  %v4075_v3 = vshrl.u32 %v7930_v63, 16  ;;  %v4000_v63 = vor.u32 %v3999_v41, %v3996_v11  ;;  %v4072_v41 = vrot.slane %v4070_v60, 4  ;;  %v8092_v60 = vld [vmem:[%s8797_s4 + $0x100] sm:$0xff]  }
 0x391   : > { %v3784_v61 = vsel %vm305_vm2, %v9052_v31, %v3640_v54  ;;  %4521 = vmatmul.mubr.bf16.gmra.mrb[140].mxu0 %v8050_v33  ;;  %v8059_v31 = vrot.slane %v3843_v53, 3  ;;  %v4026_v18 = vshrl.u32 %v3790_v22, 16  ;;  %v4029_v27 = vshll.u32 %v3790_v22, 16  ;;  %v5946_v53 = vld [vmem:[#allocation2 + $0x60] sm:$0xff] }
 0x392   : > { %v3987_v29 = vshrl.u32 %v3784_v61, 16  ;;  %v3990_v16 = vshll.u32 %v3784_v61, 16  ;;  %4866 = vmatpush1.bf16.msra.mxu0 %v8055_v15  ;;  %5638 = vmatprep.mubr.msk.bf16.mxu0 %vm305_vm2, %v8031_v19  ;;  %v4069_v54 = vrot.slane %v4067_v47, 3  ;;  %v4107_v61 = vshrl.u32 %v7944_v49, 16 }
 0x393   : > { %4867 = vmatprep.subr.bf16.mxu0 %v9053_v25  ;;  %v4102_v22 = vshll.u32 %v3741_v59, 16  ;;  %v3742_v47 = vrot.slane %v7709_v44, 1  ;;  %v4028_v11 = vrot.slane %v4026_v18, 3  ;;  %v8085_v59 = vsel %vm1388_vm8, %v4041_v35, %v4049_v55 }
 0x394   : > { %v3989_v10 = vrot.slane %v3987_v29, 3  ;;  %v3992_v24 = vrot.slane %v3990_v16, 4  ;;  %v3644_v62 = vpop.permute.xlu0 %3643  ;;  %9058 = vst [vmem:[#allocation11_spill] sm:$0xff] %v8085_v59  ;;  %v8087_v49 = vrot.slane %v3846_v0, 4  ;;  %v4109_v30 = vrot.slane %v4107_v61, 3 }
 0x395   : > { %v3788_v8 = vsel %vm305_vm2, %v5946_v53, %v3644_v62  ;;  %v4031_v62 = vrot.slane %v4029_v27, 4  ;;  %v8102_v27 = vrot.slane %v7762_v6, 1  ;;  %v8114_v6 = vld [vmem:[%s8797_s4 + $0x108] sm:$0xff]  }
 0x396   : > { %v3993_v43 = vor.u32 %v3992_v24, %v3989_v10  ;;  %v4019_v38 = vshrl.u32 %v3788_v8, 16  ;;  %v4022_v29 = vshll.u32 %v3788_v8, 16  ;;  %v3650_v16 = vpop.permute.xlu1 %3649  ;;  %4868 = vmatpush1.bf16.msra.mxu0 %v8073_v26  ;;  %v4077_v10 = vrot.slane %v4075_v3, 3 }
 0x397   : > { %4869 = vmatprep.subr.bf16.mxu0 %v9053_v25  ;;  %v4080_v24 = vrot.slane %v4078_v23, 4  ;;  %v3794_v28 = vsel %vm305_vm2, %v7587_v57, %v3650_v16  ;;  %v4104_v57 = vrot.slane %v4102_v22, 4  ;;  %v4112_v3 = vrot.slane %v4110_v32, 4  ;;  %v8123_v32 = vld [vmem:[#allocation2 + $0x118] sm:$0xff] }
 0x398   : > { %v4021_v53 = vrot.slane %v4019_v38, 3  ;;  %v4024_v8 = vrot.slane %v4022_v29, 4  ;;  %v8082_v21 = vsel %vm1388_vm8, %v3993_v43, %v4000_v63  ;;  %v4101_v38 = vrot.slane %v4099_v52, 3  ;;  %9060 = vst [vmem:[#allocation15_spill] sm:$0xff] %v8123_v32 }
 0x399   : > { %9057 = vst [vmem:[#allocation9_spill] sm:$0xff] %v8082_v21  ;;  %4529 = vmatmul.mubr.bf16.gmra.mrb[144].mxu0 %v8082_v21  ;;  %v3744_v43 = vsel %vm1275_vm7, %v3742_v47, %v8014_v50  ;;  %v4058_v55 = vshrl.u32 %v3794_v28, 16  ;;  %v4061_v0 = vshll.u32 %v3794_v28, 16  ;;  %v4073_v23 = vor.u32 %v4072_v41, %v4069_v54 }
 0x39a   : > { %4870 = vmatpush1.bf16.msra.mxu0 %v8092_v60  ;;  %5639 = vmatprep.mubr.msk.bf16.mxu0 %vm305_vm2, %v8085_v59  ;;  %v4081_v18 = vor.u32 %v4080_v24, %v4077_v10  ;;  %v4032_v61 = vor.u32 %v4031_v62, %v4028_v11  ;;  %v4025_v63 = vor.u32 %v4024_v8, %v4021_v53  ;;  %v4131_v52 = vshrl.u32 %v3744_v43, 16 }
 0x39b   : > { %4871 = vmatprep.subr.bf16.mxu0 %v9053_v25  ;;  %v4139_v22 = vshrl.u32 %v8014_v50, 16  ;;  %v4105_v11 = vor.u32 %v4104_v57, %v4101_v38  ;;  %v4113_v41 = vor.u32 %v4112_v3, %v4109_v30  ;;  %v4063_v10 = vrot.slane %v4061_v0, 4 }
 0x39c   : > { %v8119_v62 = vsel %vm1388_vm8, %v4073_v23, %v4081_v18  ;;  %v4134_v53 = vshll.u32 %v3744_v43, 16  ;;  %v8128_v30 = vsel %vm1388_vm8, %v4025_v63, %v4032_v61  ;;  %v8135_v43 = vld [vmem:[%s8797_s4 + $0x110] sm:$0xff]   ;;  %v3745_v63 = vrot.slane %v7740_v48, 1 }
 0x39d   : > { %v3654_v35 = vpop.permute.xlu1 %3653  ;;  %9059 = vst [vmem:[#allocation14_spill] sm:$0xff] %v8119_v62  ;;  %9061 = vst [vmem:[#allocation17_spill] sm:$0xff] %v8128_v30  ;;  %v8144_v23 = vrot.slane %v4139_v22, 3 }
 0x39e   : > { %v3648_v29 = vpop.permute.xlu0 %3647  ;;  %4872 = vmatpush1.bf16.msra.mxu0 %v8114_v6  ;;  %9062 = vst [vmem:[#allocation18_spill] sm:$0xff] %v8135_v43  ;;  %v8152_v22 = vrot.slane %v4134_v53, 4  ;;  %v4174_v53 = vshll.u32 %v8017_v12, 16 }
 0x39f   : > { %v3792_v16 = vsel %vm305_vm2, %v9056_v1, %v3648_v29  ;;  %4873 = vmatprep.subr.bf16.mxu0 %v9053_v25  ;;  %v4060_v1 = vrot.slane %v4058_v55, 3  ;;  %v3798_v29 = vsel %vm305_vm2, %v7617_v36, %v3654_v35  ;;  %v8140_v36 = vsel %vm1388_vm8, %v4105_v11, %v4113_v41 }
 0x3a0   : > { %v4051_v54 = vshrl.u32 %v3792_v16, 16  ;;  %v4054_v47 = vshll.u32 %v3792_v16, 16  ;;  %v8142_v35 = vrot.slane %v4131_v52, 3  ;;  %v4090_v18 = vshrl.u32 %v3798_v29, 16 }
 0x3a1   : > { %v2513_v24 = vpop.permute.xlu1 %2512  ;;  %4537 = vmatmul.mubr.bf16.gmra.mrb[148].mxu0 %v8128_v30  ;;  %v4093_v61 = vshll.u32 %v3798_v29, 16  ;;  %v4171_v16 = vshrl.u32 %v8017_v12, 16 }
 0x3a2   : > { %v4053_v8 = vrot.slane %v4051_v54, 3  ;;  %v3652_v28 = vpop.permute.xlu0 %3651  ;;  %v2522_v38 = vsel %vm305_vm2, %v8123_v32, %v2513_v24  ;;  %v4056_v57 = vrot.slane %v4054_v47, 4  ;;  %4874 = vmatpush1.bf16.msra.mxu0 %v8135_v43  ;;  %5640 = vmatprep.mubr.msk.bf16.mxu0 %vm305_vm2, %v8119_v62  ;;  %v8161_v32 = vld [vmem:[%s8797_s4 + $0x118] sm:$0xff]  }
 0x3a3   : > { %v3796_v3 = vsel %vm305_vm2, %v7628_v58, %v3652_v28  ;;  %v2530_v55 = vshrl.u32 %v2522_v38, 16  ;;  %v2533_v0 = vshll.u32 %v2522_v38, 16  ;;  %v4142_v58 = vshll.u32 %v8014_v50, 16  ;;  %4875 = vmatprep.subr.bf16.mxu0 %v9053_v25  ;;  %v8154_v38 = vld [vmem:[#allocation2 + $0x110] sm:$0xff]  ;;  %9064 = vst [vmem:[#allocation20_spill] sm:$0xff] %v8161_v32 }
 0x3a4   : > { %v4064_v28 = vor.u32 %v4063_v10, %v4060_v1  ;;  %v4083_v54 = vshrl.u32 %v3796_v3, 16  ;;  %v4086_v47 = vshll.u32 %v3796_v3, 16  ;;  %v4057_v41 = vor.u32 %v4056_v57, %v4053_v8  ;;  %9063 = vst [vmem:[#allocation21_spill] sm:$0xff] %v8154_v38 }
 0x3a5   : > { %v2532_v50 = vrot.slane %v2530_v55, 3  ;;  %v2535_v24 = vrot.slane %v2533_v0, 4  ;;  %v8164_v3 = vrot.slane %v4142_v58, 4  ;;  %v4092_v8 = vrot.slane %v4090_v18, 3  ;;  %v5954_v58 = vld [vmem:[#allocation2 + $0x8] sm:$0xff] }
 0x3a6   : > { %v2511_v52 = vpop.permute.xlu0 %2510  ;;  %v3658_v11 = vpop.permute.xlu1 %3657  ;;  %4876 = vmatpush1.bf16.msra.mxu0 %v8161_v32  ;;  %v4095_v57 = vrot.slane %v4093_v61, 4  ;;  %v3747_v55 = vsel %vm1275_vm7, %v3745_v63, %v8017_v12  ;;  %v8169_v0 = vrot.slane %v4171_v16, 3  ;;  %v8175_v18 = vsel %vm1388_vm8, %v4057_v41, %v4064_v28 }
 0x3a7   : > { %v2520_v29 = vsel %vm305_vm2, %v8154_v38, %v2511_v52  ;;  %v4085_v52 = vrot.slane %v4083_v54, 3  ;;  %v4088_v38 = vrot.slane %v4086_v47, 4  ;;  %v2536_v59 = vor.u32 %v2535_v24, %v2532_v50 }
 0x3a8   : > { %v2523_v1 = vshrl.u32 %v2520_v29, 16  ;;  %v2526_v10 = vshll.u32 %v2520_v29, 16  ;;  %v3802_v29 = vsel %vm305_vm2, %v7671_v13, %v3658_v11  ;;  %v8178_v16 = vrot.slane %v4174_v53, 4 }
 0x3a9   : > { %4545 = vmatmul.mubr.bf16.gmra.mrb[152].mxu0 %v8175_v18  ;;  %v9065_v13 = vor.u32 %v8042_v42, %v8040_v5  ;;  %v4089_v47 = vor.u32 %v4088_v38, %v4085_v52  ;;  %v4122_v11 = vshrl.u32 %v3802_v29, 16  ;;  %v4137_v41 = vor.u32 %v8152_v22, %v8142_v35 }
 0x3aa   : > { %v2525_v62 = vrot.slane %v2523_v1, 3  ;;  %v2528_v30 = vrot.slane %v2526_v10, 4  ;;  %v3622_v43 = vpop.permute.xlu1 %3621  ;;  %5641 = vmatprep.mubr.msk.bf16.mxu0 %vm305_vm2, %v8140_v36  ;;  %v4145_v1 = vor.u32 %v8164_v3, %v8144_v23  ;;  %v4177_v38 = vor.u32 %v8178_v16, %v8169_v0  ;;  %v5955_v10 = vld [vmem:[#allocation2] sm:$0xff] }
 0x3ab   : > { %v3766_v32 = vsel %vm305_vm2, %v5954_v58, %v3622_v43  ;;  %v9066_v43 = vor.u32 %v8087_v49, %v8059_v31  ;;  %v5956_v58 = vld [vmem:[#allocation2 + $0xa8] sm:$0xff] }
 0x3ac   : > { %v2529_v61 = vor.u32 %v2528_v30, %v2525_v62  ;;  %v3656_v21 = vpop.permute.xlu0 %3655  ;;  %v3834_v12 = vshrl.u32 %v3766_v32, 16  ;;  %v3837_v63 = vshll.u32 %v3766_v32, 16  ;;  %v4163_v62 = vshrl.u32 %v3747_v55, 16 }
 0x3ad   : > { %v3800_v54 = vsel %vm305_vm2, %v7709_v44, %v3656_v21  ;;  %v3858_v28 = vsel %vm1388_vm8, %v9066_v43, %v9065_v13  ;;  %v4166_v32 = vshll.u32 %v3747_v55, 16  ;;  %v4096_v30 = vor.u32 %v4095_v57, %v4092_v8 }
 0x3ae   : > { %v4125_v21 = vshll.u32 %v3802_v29, 16  ;;  %v4115_v44 = vshrl.u32 %v3800_v54, 16  ;;  %v4118_v50 = vshll.u32 %v3800_v54, 16  ;;  %v2537_v5 = vsel %vm1388_vm8, %v2529_v61, %v2536_v59  ;;  %v3662_v24 = vpop.permute.xlu1 %3661 }
 0x3af   : > { %v3836_v42 = vrot.slane %v3834_v12, 3  ;;  %v3839_v31 = vrot.slane %v3837_v63, 4  ;;  %2784 = vmatmul.mubr.bf16.gmra.mrb[124].mxu1 %v2537_v5  ;;  %v4165_v35 = vrot.slane %v4163_v62, 3  ;;  %v4168_v22 = vrot.slane %v4166_v32, 4 }
 0x3b0   : > { %v3620_v49 = vpop.permute.xlu0 %3619  ;;  %5650 = vmatprep.mubr.msk.bf16.mxu1 %vm305_vm2, %v3858_v28  ;;  %v3748_v59 = vrot.slane %v7755_v45, 1  ;;  %v4124_v8 = vrot.slane %v4122_v11, 3  ;;  %v8202_v52 = vsel %vm1388_vm8, %v4089_v47, %v4096_v30  ;;  %v4127_v29 = vrot.slane %v4125_v21, 4 }
 0x3b1   : > { %v3764_v53 = vsel %vm305_vm2, %v5955_v10, %v3620_v49  ;;  %v4117_v23 = vrot.slane %v4115_v44, 3  ;;  %v4120_v3 = vrot.slane %v4118_v50, 4  ;;  %v3806_v0 = vsel %vm305_vm2, %v5956_v58, %v3662_v24  ;;  %4553 = vmatmul.mubr.bf16.gmra.mrb[156].mxu0 %v8202_v52 }
 0x3b2   : > { %v3827_v57 = vshrl.u32 %v3764_v53, 16  ;;  %v3830_v55 = vshll.u32 %v3764_v53, 16  ;;  %v3840_v61 = vor.u32 %v3839_v31, %v3836_v42  ;;  %v8207_v45 = vsel %vm1388_vm8, %v4137_v41, %v4145_v1  ;;  %v3666_v50 = vpop.permute.xlu1 %3665  ;;  %v9067_v53 = vld [vmem:[#allocation12_spill] sm:$0xff] }
 0x3b3   : > { %5642 = vmatprep.mubr.msk.bf16.mxu0 %vm305_vm2, %v8207_v45  ;;  %v4169_v13 = vor.u32 %v4168_v22, %v4165_v35  ;;  %v3750_v43 = vsel %vm1275_vm7, %v3748_v59, %v8020_v4  ;;  %v4203_v28 = vshrl.u32 %v8020_v4, 16  ;;  %v4154_v32 = vshrl.u32 %v3806_v0, 16 }
 0x3b4   : > { %v3829_v12 = vrot.slane %v3827_v57, 3  ;;  %v3832_v63 = vrot.slane %v3830_v55, 4  ;;  %v3660_v16 = vpop.permute.xlu0 %3659  ;;  %v4157_v30 = vshll.u32 %v3806_v0, 16  ;;  %v3751_v47 = vrot.slane %v7771_v20, 1  ;;  %v5958_v55 = vld [vmem:[#allocation2 + $0xb0] sm:$0xff] }
 0x3b5   : > { %v3804_v54 = vsel %vm305_vm2, %v7740_v48, %v3660_v16  ;;  %v4128_v11 = vor.u32 %v4127_v29, %v4124_v8  ;;  %v4121_v41 = vor.u32 %v4120_v3, %v4117_v23  ;;  %v4195_v5 = vshrl.u32 %v3750_v43, 16  ;;  %v5957_v8 = vld [vmem:[#allocation2 + $0xb8] sm:$0xff] }
 0x3b6   : > { %v3833_v62 = vor.u32 %v3832_v63, %v3829_v12  ;;  %v4147_v21 = vshrl.u32 %v3804_v54, 16  ;;  %v4150_v44 = vshll.u32 %v3804_v54, 16  ;;  %v4198_v42 = vshll.u32 %v3750_v43, 16 }
 0x3b7   : > { %v4206_v31 = vshll.u32 %v8020_v4, 16  ;;  %v4205_v24 = vrot.slane %v4203_v28, 3  ;;  %v4156_v1 = vrot.slane %v4154_v32, 3  ;;  %v4159_v10 = vrot.slane %v4157_v30, 4  ;;  %v5959_v28 = vld [vmem:[#allocation2 + $0xd8] sm:$0xff]  ;;  %v3670_v32 = vpop.permute.xlu1 %3669 }
 0x3b8   : > { %v3841_v48 = vsel %vm1388_vm8, %v3833_v62, %v3840_v61  ;;  %v3664_v49 = vpop.permute.xlu0 %3663  ;;  %v8222_v20 = vsel %vm1388_vm8, %v4169_v13, %v4177_v38  ;;  %v3753_v35 = vsel %vm1275_vm7, %v3751_v47, %v8102_v27  ;;  %v4149_v22 = vrot.slane %v4147_v21, 3 }
 0x3b9   : > { %4661 = vmatmul.mubr.bf16.vlgmr.msra.gmra.mrb[128].mxu1 %v3841_v48  ;;  %v4152_v59 = vrot.slane %v4150_v44, 4  ;;  %v3810_v4 = vsel %vm305_vm2, %v5957_v8, %v3666_v50  ;;  %v8229_v57 = vsel %vm1388_vm8, %v4121_v41, %v4128_v11  ;;  %v3808_v29 = vsel %vm305_vm2, %v5958_v55, %v3664_v49  ;;  %v5960_v11 = vld [vmem:[#allocation2 + $0xd0] sm:$0xff]  ;;  %v5961_v49 = vld [vmem:[#allocation2 + $0xc8] sm:$0xff] }
 0x3ba   : > { %5651 = vmatprep.mubr.msk.bf16.mxu1 %vm305_vm2, %v9067_v53  ;;  %5806 = vmatpush1.bf16.msra.mxu1 %v7906_v9  ;;  %v4197_v38 = vrot.slane %v4195_v5, 3  ;;  %v4200_v9 = vrot.slane %v4198_v42, 4  ;;  %v4208_v23 = vrot.slane %v4206_v31, 4  ;;  %v4227_v3 = vshrl.u32 %v3753_v35, 16 }
 0x3bb   : > { %5795 = vmatprep.subr.bf16.mxu1 %v9053_v25  ;;  %4561 = vmatmul.mubr.bf16.gmra.mrb[160].mxu0 %v8229_v57  ;;  %v4230_v58 = vshll.u32 %v3753_v35, 16  ;;  %v4235_v0 = vshrl.u32 %v8102_v27, 16  ;;  %v4238_v61 = vshll.u32 %v8102_v27, 16  ;;  %v4186_v12 = vshrl.u32 %v3810_v4, 16  ;;  %v8256_v35 = vld [vmem:[#allocation2 + $0xe8] sm:$0xff] }
 0x3bc   : > { %5643 = vmatprep.mubr.msk.bf16.mxu0 %vm305_vm2, %v8222_v20  ;;  %v4189_v63 = vshll.u32 %v3810_v4, 16  ;;  %v4160_v16 = vor.u32 %v4159_v10, %v4156_v1  ;;  %v4153_v54 = vor.u32 %v4152_v59, %v4149_v22  ;;  %v4179_v13 = vshrl.u32 %v3808_v29, 16  ;;  %v3668_v21 = vpop.permute.xlu0 %3667 }
 0x3bd   : > { %v4182_v43 = vshll.u32 %v3808_v29, 16  ;;  %v8240_v62 = vrot.slane %v5959_v28, 1  ;;  %v4201_v30 = vor.u32 %v4200_v9, %v4197_v38  ;;  %v4209_v47 = vor.u32 %v4208_v23, %v4205_v24  ;;  %v8266_v38 = vld [vmem:[#allocation2 + $0xe0] sm:$0xff] }
 0x3be   : > { %5807 = vmatpush1.bf16.msra.mxu1 %v7923_v39  ;;  %v3754_v41 = vrot.slane %v5960_v11, 1  ;;  %v4229_v27 = vrot.slane %v4227_v3, 3  ;;  %v4232_v44 = vrot.slane %v4230_v58, 4  ;;  %v4237_v39 = vrot.slane %v4235_v0, 3 }
 0x3bf   : > { %5796 = vmatprep.subr.bf16.mxu1 %v9053_v25  ;;  %v4240_v50 = vrot.slane %v4238_v61, 4  ;;  %v4188_v48 = vrot.slane %v4186_v12, 3  ;;  %v4191_v5 = vrot.slane %v4189_v63, 4  ;;  %v4181_v42 = vrot.slane %v4179_v13, 3  ;;  %v3674_v61 = vpop.permute.xlu1 %3673 }
 0x3c0   : > { %v4184_v31 = vrot.slane %v4182_v43, 4  ;;  %v3814_v24 = vsel %vm305_vm2, %v5961_v49, %v3670_v32  ;;  %v8248_v1 = vsel %vm1388_vm8, %v4153_v54, %v4160_v16  ;;  %v8254_v53 = vsel %vm1388_vm8, %v4201_v30, %v4209_v47  ;;  %v3672_v54 = vpop.permute.xlu0 %3671 }
 0x3c1   : > { %4669 = vmatmul.mubr.bf16.gmra.mrb[132].mxu1 %v7897_v14  ;;  %v5962_v14 = vld [vmem:[#allocation2 + $0xc0] sm:$0xff]  ;;  %v4233_v22 = vor.u32 %v4232_v44, %v4229_v27  ;;  %v4241_v59 = vor.u32 %v4240_v50, %v4237_v39  ;;  %v3756_v8 = vsel %vm1275_vm7, %v3754_v41, %v8240_v62  ;;  %v4218_v4 = vshrl.u32 %v3814_v24, 16 }
 0x3c2   : > { %5652 = vmatprep.mubr.msk.bf16.mxu1 %vm305_vm2, %v7901_v34  ;;  %5808 = vmatpush1.bf16.msra.mxu1 %v7951_v40  ;;  %v3812_v10 = vsel %vm305_vm2, %v5962_v14, %v3668_v21  ;;  %v8259_v40 = vrot.slane %v8256_v35, 1  ;;  %v4221_v55 = vshll.u32 %v3814_v24, 16  ;;  %v4267_v29 = vshrl.u32 %v8240_v62, 16  ;;  %v8297_v24 = vld [vmem:[#allocation2 + $0xf0] sm:$0xff] }
 0x3c3   : > { %5797 = vmatprep.subr.bf16.mxu1 %v9053_v25  ;;  %4569 = vmatmul.mubr.bf16.gmra.mrb[164].mxu0 %v8248_v1  ;;  %v3757_v9 = vrot.slane %v8266_v38, 1  ;;  %v4192_v23 = vor.u32 %v4191_v5, %v4188_v48  ;;  %v4185_v3 = vor.u32 %v4184_v31, %v4181_v42  ;;  %v4211_v58 = vshrl.u32 %v3812_v10, 16  ;;  %v8288_v48 = vld [vmem:[#allocation2 + $0xf8] sm:$0xff] }
 0x3c4   : > { %5644 = vmatprep.mubr.msk.bf16.mxu0 %vm305_vm2, %v8254_v53  ;;  %v4214_v0 = vshll.u32 %v3812_v10, 16  ;;  %v4259_v12 = vshrl.u32 %v3756_v8, 16  ;;  %v4262_v63 = vshll.u32 %v3756_v8, 16  ;;  %v4270_v16 = vshll.u32 %v8240_v62, 16 }
 0x3c5   : > { %v8274_v13 = vsel %vm1388_vm8, %v4233_v22, %v4241_v59  ;;  %v4220_v43 = vrot.slane %v4218_v4, 3  ;;  %v4223_v32 = vrot.slane %v4221_v55, 4  ;;  %v3759_v30 = vsel %vm1275_vm7, %v3757_v9, %v8259_v40  ;;  %v3678_v4 = vpop.permute.xlu1 %3677  ;;  %v3676_v9 = vpop.permute.xlu0 %3675 }
 0x3c6   : > { %5809 = vmatpush1.bf16.msra.mxu1 %v7973_v2  ;;  %v4269_v2 = vrot.slane %v4267_v29, 3  ;;  %v4213_v47 = vrot.slane %v4211_v58, 3  ;;  %v4216_v41 = vrot.slane %v4214_v0, 4  ;;  %v3818_v62 = vsel %vm305_vm2, %v5959_v28, %v3674_v61 }
 0x3c7   : > { %5798 = vmatprep.subr.bf16.mxu1 %v9053_v25  ;;  %v8283_v21 = vsel %vm1388_vm8, %v4185_v3, %v4192_v23  ;;  %v3816_v27 = vsel %vm305_vm2, %v5960_v11, %v3672_v54  ;;  %v4261_v44 = vrot.slane %v4259_v12, 3  ;;  %v4264_v39 = vrot.slane %v4262_v63, 4 }
 0x3c8   : > { %v4272_v50 = vrot.slane %v4270_v16, 4  ;;  %v4291_v28 = vshrl.u32 %v3759_v30, 16  ;;  %v4294_v5 = vshll.u32 %v3759_v30, 16  ;;  %v4299_v42 = vshrl.u32 %v8259_v40, 16 }
 0x3c9   : > { %4677 = vmatmul.mubr.bf16.gmra.mrb[136].mxu1 %v7935_v7  ;;  %v4250_v31 = vshrl.u32 %v3818_v62, 16  ;;  %v4253_v49 = vshll.u32 %v3818_v62, 16  ;;  %v4302_v11 = vshll.u32 %v8259_v40, 16  ;;  %v3760_v14 = vrot.slane %v8297_v24, 1 }
 0x3ca   : > { %5653 = vmatprep.mubr.msk.bf16.mxu1 %vm305_vm2, %v7940_v46  ;;  %5810 = vmatpush1.bf16.msra.mxu1 %v7991_v56  ;;  %v8291_v56 = vrot.slane %v8288_v48, 1  ;;  %v4224_v10 = vor.u32 %v4223_v32, %v4220_v43  ;;  %v4217_v22 = vor.u32 %v4216_v41, %v4213_v47  ;;  %v4243_v59 = vshrl.u32 %v3816_v27, 16 }
 0x3cb   : > { %5799 = vmatprep.subr.bf16.mxu1 %v9053_v25  ;;  %4577 = vmatmul.mubr.bf16.gmra.mrb[168].mxu0 %v8283_v21  ;;  %v4246_v8 = vshll.u32 %v3816_v27, 16  ;;  %v4265_v55 = vor.u32 %v4264_v39, %v4261_v44  ;;  %v4273_v29 = vor.u32 %v4272_v50, %v4269_v2  ;;  %v4293_v23 = vrot.slane %v4291_v28, 3 }
 0x3cc   : > { %5645 = vmatprep.mubr.msk.bf16.mxu0 %vm305_vm2, %v8274_v13  ;;  %v4296_v40 = vrot.slane %v4294_v5, 4  ;;  %v4301_v3 = vrot.slane %v4299_v42, 3  ;;  %v4252_v58 = vrot.slane %v4250_v31, 3  ;;  %v4255_v0 = vrot.slane %v4253_v49, 4  ;;  %v5967_v5 = vld [vmem:[#allocation2 + $0x108] sm:$0xff]  ;;  %v3680_v31 = vpop.permute.xlu0 %3679  ;;  %v5968_v49 = vld [vmem:[#allocation2 + $0x100] sm:$0xff] }
 0x3cd   : > { %v3762_v61 = vsel %vm1275_vm7, %v3760_v14, %v8291_v56  ;;  %v4245_v12 = vrot.slane %v4243_v59, 3  ;;  %v4248_v63 = vrot.slane %v4246_v8, 4  ;;  %v3822_v16 = vsel %vm305_vm2, %v8256_v35, %v3678_v4 }
 0x3ce   : > { %5811 = vmatpush1.bf16.msra.mxu1 %v8027_v51  ;;  %v4304_v51 = vrot.slane %v4302_v11, 4  ;;  %v8311_v54 = vsel %vm1388_vm8, %v4217_v22, %v4224_v10  ;;  %v3820_v43 = vsel %vm305_vm2, %v8266_v38, %v3676_v9  ;;  %v8318_v32 = vsel %vm1388_vm8, %v4265_v55, %v4273_v29  ;;  %v3682_v38 = vpop.permute.xlu1 %3681 }
 0x3cf   : > { %5800 = vmatprep.subr.bf16.mxu1 %v9053_v25  ;;  %v4282_v2 = vshrl.u32 %v3822_v16, 16  ;;  %v4285_v30 = vshll.u32 %v3822_v16, 16  ;;  %v4323_v47 = vshrl.u32 %v3762_v61, 16  ;;  %v4256_v41 = vor.u32 %v4255_v0, %v4252_v58 }
 0x3d0   : > { %v4305_v35 = vor.u32 %v4304_v51, %v4301_v3  ;;  %v4249_v62 = vor.u32 %v4248_v63, %v4245_v12  ;;  %v4275_v27 = vshrl.u32 %v3820_v43, 16  ;;  %v4278_v44 = vshll.u32 %v3820_v43, 16 }
 0x3d1   : > { %4685 = vmatmul.mubr.bf16.gmra.mrb[140].mxu1 %v7986_v37  ;;  %v4326_v39 = vshll.u32 %v3762_v61, 16  ;;  %v4331_v50 = vshrl.u32 %v8291_v56, 16  ;;  %v4334_v28 = vshll.u32 %v8291_v56, 16  ;;  %v4377_v42 = vrot.slane %v5967_v5, 1 }
 0x3d2   : > { %5654 = vmatprep.mubr.msk.bf16.mxu1 %vm305_vm2, %v7968_v17  ;;  %5812 = vmatpush1.bf16.msra.mxu1 %v8055_v15  ;;  %v4297_v15 = vor.u32 %v4296_v40, %v4293_v23  ;;  %v4376_v11 = vrot.slane %v5968_v49, 1  ;;  %v4287_v14 = vrot.slane %v4285_v30, 4  ;;  %v4325_v22 = vrot.slane %v4323_v47, 3  ;;  %v4373_v12 = vpop.permute.xlu1 %4372  ;;  %v9068_v30 = vld [vmem:[#allocation9_spill] sm:$0xff] }
 0x3d3   : > { %5801 = vmatprep.subr.bf16.mxu1 %v9053_v25  ;;  %4585 = vmatmul.mubr.bf16.gmra.mrb[172].mxu0 %v8311_v54  ;;  %v4277_v59 = vrot.slane %v4275_v27, 3  ;;  %v4280_v56 = vrot.slane %v4278_v44, 4  ;;  %v3826_v8 = vsel %vm305_vm2, %v8288_v48, %v3682_v38  ;;  %v8336_v4 = vsel %vm1388_vm8, %v4249_v62, %v4256_v41  ;;  %v9069_v41 = vld [vmem:[#allocation11_spill] sm:$0xff]  ;;  %v9070_v27 = vld [vmem:[#allocation18_spill] sm:$0xff] }
 0x3d4   : > { %5646 = vmatprep.mubr.msk.bf16.mxu0 %vm305_vm2, %v8318_v32  ;;  %v8330_v10 = vsel %vm1388_vm8, %v4297_v15, %v4305_v35  ;;  %v3824_v55 = vsel %vm305_vm2, %v8297_v24, %v3680_v31  ;;  %v4328_v29 = vrot.slane %v4326_v39, 4  ;;  %v4333_v9 = vrot.slane %v4331_v50, 3 }
 0x3d5   : > { %v4336_v23 = vrot.slane %v4334_v28, 4  ;;  %v4314_v40 = vshrl.u32 %v3826_v8, 16  ;;  %v4317_v48 = vshll.u32 %v3826_v8, 16  ;;  %v4407_v3 = vshrl.u32 %v4377_v42, 16 }
 0x3d6   : > { %5813 = vmatpush1.bf16.msra.mxu1 %v8073_v26  ;;  %v4284_v26 = vrot.slane %v4282_v2, 3  ;;  %v4410_v58 = vshll.u32 %v4377_v42, 16  ;;  %v4281_v51 = vor.u32 %v4280_v56, %v4277_v59  ;;  %v4307_v61 = vshrl.u32 %v3824_v55, 16  ;;  %v4371_v2 = vpop.permute.xlu0 %4370 }
 0x3d7   : > { %5802 = vmatprep.subr.bf16.mxu1 %v9053_v25  ;;  %v4310_v24 = vshll.u32 %v3824_v55, 16  ;;  %v4329_v63 = vor.u32 %v4328_v29, %v4325_v22  ;;  %v4337_v16 = vor.u32 %v4336_v23, %v4333_v9  ;;  %v4316_v35 = vrot.slane %v4314_v40, 3  ;;  %v9072_v55 = vld [vmem:[#allocation17_spill] sm:$0xff]  ;;  %v9073_v9 = vld [vmem:[#allocation14_spill] sm:$0xff] }
 0x3d8   : > { %v4288_v0 = vor.u32 %v4287_v14, %v4284_v26  ;;  %v4319_v47 = vrot.slane %v4317_v48, 4  ;;  %v4412_v62 = vrot.slane %v4410_v58, 4  ;;  %v4309_v44 = vrot.slane %v4307_v61, 3 }
 0x3d9   : > { %4693 = vmatmul.mubr.bf16.gmra.mrb[144].mxu1 %v8050_v33  ;;  %v4312_v38 = vrot.slane %v4310_v24, 4  ;;  %v4382_v39 = vsel %vm305_vm2, %v5967_v5, %v4373_v12  ;;  %v4380_v28 = vsel %vm305_vm2, %v5968_v49, %v4371_v2  ;;  %v9071_v5 = vld [vmem:[#allocation20_spill] sm:$0xff] }
 0x3da   : > { %5655 = vmatprep.mubr.msk.bf16.mxu1 %vm305_vm2, %v8031_v19  ;;  %5814 = vmatpush1.bf16.msra.mxu1 %v8092_v60  ;;  %v4378_v60 = vsel %vm1275_vm7, %v4376_v11, %v4377_v42  ;;  %v8353_v50 = vsel %vm1388_vm8, %v4281_v51, %v4288_v0  ;;  %v8359_v42 = vsel %vm1388_vm8, %v4329_v63, %v4337_v16  ;;  %v4390_v26 = vshrl.u32 %v4382_v39, 16  ;;  %v4805_v61 = vpop.permute.xlu0 %4804 }
 0x3db   : > { %5803 = vmatprep.subr.bf16.mxu1 %v9053_v25  ;;  %4593 = vmatmul.mubr.bf16.gmra.mrb[176].mxu0 %v8336_v4  ;;  %v4399_v43 = vshrl.u32 %v4378_v60, 16  ;;  %v4402_v15 = vshll.u32 %v4378_v60, 16  ;;  %v4393_v14 = vshll.u32 %v4382_v39, 16  ;;  %v4320_v22 = vor.u32 %v4319_v47, %v4316_v35 }
 0x3dc   : > { %5647 = vmatprep.mubr.msk.bf16.mxu0 %vm305_vm2, %v8330_v10  ;;  %v4313_v59 = vor.u32 %v4312_v38, %v4309_v44  ;;  %v4383_v56 = vshrl.u32 %v4380_v28, 16  ;;  %v4392_v29 = vrot.slane %v4390_v26, 3 }
 0x3dd   : > { %v4401_v31 = vrot.slane %v4399_v43, 3  ;;  %v4404_v11 = vrot.slane %v4402_v15, 4  ;;  %v4395_v23 = vrot.slane %v4393_v14, 4 }
 0x3de   : > { %5815 = vmatpush1.bf16.msra.mxu1 %v8114_v6  ;;  %v4409_v6 = vrot.slane %v4407_v3, 3  ;;  %v4385_v60 = vrot.slane %v4383_v56, 3  ;;  %v8368_v48 = vsel %vm1388_vm8, %v4313_v59, %v4320_v22 }
 0x3df   : > { %5804 = vmatprep.subr.bf16.mxu1 %v9053_v25  ;;  %v4405_v8 = vor.u32 %v4404_v11, %v4401_v31  ;;  %v4396_v58 = vor.u32 %v4395_v23, %v4392_v29 }
 0x3e0   : > { %v4413_v49 = vor.u32 %v4412_v62, %v4409_v6 }
 0x3e1   : > { %4701 = vmatmul.mubr.bf16.gmra.mrb[148].mxu1 %v9068_v30 }
 0x3e2   : > { %5656 = vmatprep.mubr.msk.bf16.mxu1 %vm305_vm2, %v9069_v41  ;;  %5816 = vmatpush1.bf16.msra.mxu1 %v9070_v27  ;;  %v8372_v3 = vsel %vm1388_vm8, %v4405_v8, %v4413_v49 }
 0x3e3   : > { %5805 = vmatprep.subr.bf16.mxu1 %v9053_v25  ;;  %4601 = vmatmul.mubr.bf16.gmra.mrb[180].mxu0 %v8353_v50  ;;  %v4386_v25 = vshll.u32 %v4380_v28, 16 }
 0x3e4   : > { %5648 = vmatprep.mubr.msk.bf16.mxu0 %vm305_vm2, %v8359_v42 }
 0x3e5   : > { %v4388_v40 = vrot.slane %v4386_v25, 4 }
 0x3e6   : > { %5817 = vmatpush1.bf16.msra.mxu1 %v9071_v5 }
 0x3e7   : > { %v4389_v0 = vor.u32 %v4388_v40, %v4385_v60 }
 0x3e9   : > { %4709 = vmatmul.mubr.bf16.gmra.mrb[152].mxu1 %v9072_v55  ;;  %v8380_v51 = vsel %vm1388_vm8, %v4389_v0, %v4396_v58 }
 0x3ea   : > { %5657 = vmatprep.mubr.msk.bf16.mxu1 %vm305_vm2, %v9073_v9 }
 0x3eb   : > { %4609 = vmatmul.mubr.bf16.gmra.mrb[184].mxu0 %v8368_v48 }
 0x3ec   : > { %5649 = vmatprep.mubr.msk.bf16.mxu0 %vm305_vm2, %v8372_v3 }
 0x3f1   : > { %4717 = vmatmul.mubr.bf16.gmra.mrb[156].mxu1 %v8175_v18 }
 0x3f2   : > { %5658 = vmatprep.mubr.msk.bf16.mxu1 %vm305_vm2, %v8140_v36 }
 0x3f3   : > { %4617 = vmatmul.mubr.bf16.gmra.mrb[188].mxu0 %v8380_v51 }
 0x3f4   : > { %5666 = vmatprep.mubr.msk.bf16.mxu0 %vm305_vm2, %v7901_v34 }
 0x3f9   : > { %4725 = vmatmul.mubr.bf16.gmra.mrb[160].mxu1 %v8202_v52 }
 0x3fa   : > { %5659 = vmatprep.mubr.msk.bf16.mxu1 %vm305_vm2, %v8207_v45 }
 0x3fb   : > { %4886 = vmatmul.mubr.bf16.vlgmr.msra.gmra.mrb[192].mxu0 %v7935_v7 }
 0x3fc   : > { %5667 = vmatprep.mubr.msk.bf16.mxu0 %vm305_vm2, %v7940_v46 }
 0x401   : > { %4733 = vmatmul.mubr.bf16.gmra.mrb[164].mxu1 %v8229_v57 }
 0x402   : > { %5660 = vmatprep.mubr.msk.bf16.mxu1 %vm305_vm2, %v8222_v20 }
 0x403   : > { %4894 = vmatmul.mubr.bf16.gmra.mrb[196].mxu0 %v7986_v37 }
 0x404   : > { %5668 = vmatprep.mubr.msk.bf16.mxu0 %vm305_vm2, %v7968_v17 }
 0x409   : > { %4741 = vmatmul.mubr.bf16.gmra.mrb[168].mxu1 %v8248_v1 }
 0x40a   : > { %v5238_v34 = vpop.xlane.xlu0 %5237  ;;  %5661 = vmatprep.mubr.msk.bf16.mxu1 %vm305_vm2, %v8254_v53 }
 0x40b   : > { %v5239_v7 = vrot.slane %v5238_v34, 4  ;;  %4902 = vmatmul.mubr.bf16.gmra.mrb[200].mxu0 %v8050_v33  ;;  %v9074_v33 = vld [vmem:[#allocation21_spill] sm:$0xff] }
 0x40c   : > { %5669 = vmatprep.mubr.msk.bf16.mxu0 %vm305_vm2, %v8031_v19  ;;  %v4807_v19 = vpop.permute.xlu1 %4806 }
 0x40d   : > { %v5240_v46 = vadd.f32 %v5239_v7, %v5238_v34 }
 0x40f   : > { %v5241_v24 = vrot.slane %v5240_v46, 2 }
 0x411   : > { %4749 = vmatmul.mubr.bf16.gmra.mrb[172].mxu1 %v8283_v21  ;;  %v5242_v37 = vadd.f32 %v5241_v24, %v5240_v46 }
 0x412   : > { %5662 = vmatprep.mubr.msk.bf16.mxu1 %vm305_vm2, %v8274_v13 }
 0x413   : > { %v5243_v17 = vrot.slane %v5242_v37, 1  ;;  %4910 = vmatmul.mubr.bf16.gmra.mrb[204].mxu0 %v9068_v30  ;;  %v9076_v30 = vld [vmem:[#allocation8_spill] sm:$0xff] }
 0x414   : > { %5670 = vmatprep.mubr.msk.bf16.mxu0 %vm305_vm2, %v9069_v41 }
 0x415   : > { %v5244_v12 = vadd.f32 %v5243_v17, %v5242_v37 }
 0x417   : > { %5818 = vpush %v5244_v12 }
 0x419   : > { %4757 = vmatmul.mubr.bf16.gmra.mrb[176].mxu1 %v8311_v54 }
 0x41a   : > { %5663 = vmatprep.mubr.msk.bf16.mxu1 %vm305_vm2, %v8318_v32 }
 0x41b   : > { %4918 = vmatmul.mubr.bf16.gmra.mrb[208].mxu0 %v9072_v55 }
 0x41c   : > { %5671 = vmatprep.mubr.msk.bf16.mxu0 %vm305_vm2, %v9073_v9  ;;  %v9077_v9 = vld [vmem:[#allocation34_spill] sm:$0xff] }
 0x421   : > { %4765 = vmatmul.mubr.bf16.gmra.mrb[180].mxu1 %v8336_v4 }
 0x422   : > { %5664 = vmatprep.mubr.msk.bf16.mxu1 %vm305_vm2, %v8330_v10 }
 0x423   : > { %4926 = vmatmul.mubr.bf16.gmra.mrb[212].mxu0 %v8175_v18  ;;  %v9075_v18 = vld [vmem:[#allocation15_spill] sm:$0xff] }
 0x424   : > { %5672 = vmatprep.mubr.msk.bf16.mxu0 %vm305_vm2, %v8140_v36  ;;  %v4814_v36 = vsel %vm305_vm2, %v9074_v33, %v4805_v61 }
 0x429   : > { %4773 = vmatmul.mubr.bf16.gmra.mrb[184].mxu1 %v8353_v50 }
 0x42a   : > { %5665 = vmatprep.mubr.msk.bf16.mxu1 %vm305_vm2, %v8359_v42 }
 0x42b   : > { %4934 = vmatmul.mubr.bf16.gmra.mrb[216].mxu0 %v8202_v52  ;;  %v4816_v52 = vsel %vm305_vm2, %v9075_v18, %v4807_v19 }
 0x42c   : > { %5673 = vmatprep.mubr.msk.bf16.mxu0 %vm305_vm2, %v8207_v45 }
 0x431   : > { %4781 = vmatmul.mubr.bf16.gmra.mrb[188].mxu1 %v8368_v48 }
 0x432   : > { %5677 = vmatprep.mubr.msk.bf16.mxu1 %vm305_vm2, %v8318_v32 }
 0x433   : > { %4942 = vmatmul.mubr.bf16.gmra.mrb[220].mxu0 %v8229_v57  ;;  %v4820_v57 = vshll.u32 %v4814_v36, 16 }
 0x434   : > { %5674 = vmatprep.mubr.msk.bf16.mxu0 %vm305_vm2, %v8222_v20  ;;  %v4817_v20 = vshrl.u32 %v4814_v36, 16 }
 0x435   : > { %v4822_v32 = vrot.slane %v4820_v57, 4 }
 0x439   : > { %4974 = vmatmul.mubr.bf16.vlgmr.msra.gmra.mrb[192].mxu1 %v8336_v4 }
 0x43a   : > { %5678 = vmatprep.mubr.msk.bf16.mxu1 %vm305_vm2, %v8330_v10 }
 0x43b   : > { %4950 = vmatmul.mubr.bf16.gmra.mrb[224].mxu0 %v8248_v1  ;;  %v4824_v1 = vshrl.u32 %v4816_v52, 16 }
 0x43c   : > { %5675 = vmatprep.mubr.msk.bf16.mxu0 %vm305_vm2, %v8254_v53  ;;  %v4827_v53 = vshll.u32 %v4816_v52, 16 }
 0x43d   : > { %v4826_v10 = vrot.slane %v4824_v1, 3 }
 0x43e   : > { %v4829_v4 = vrot.slane %v4827_v53, 4 }
 0x440   : > { %v4830_v2 = vor.u32 %v4829_v4, %v4826_v10 }
 0x441   : > { %4982 = vmatmul.mubr.bf16.gmra.mrb[196].mxu1 %v8353_v50 }
 0x442   : > { %5679 = vmatprep.mubr.msk.bf16.mxu1 %vm305_vm2, %v8359_v42 }
 0x443   : > { %4958 = vmatmul.mubr.bf16.gmra.mrb[228].mxu0 %v8283_v21  ;;  %v4819_v21 = vrot.slane %v4817_v20, 3 }
 0x444   : > { %5676 = vmatprep.mubr.msk.bf16.mxu0 %vm305_vm2, %v8274_v13 }
 0x445   : > { %v4823_v15 = vor.u32 %v4822_v32, %v4819_v21 }
 0x447   : > { %v4831_v47 = vsel %vm1388_vm8, %v4823_v15, %v4830_v2 }
 0x448   : > { %s5819_s9 = spop %5818 }
 0x449   : > { %v5246_v45 = vstv %s5819_s9  ;;  %4990 = vmatmul.mubr.bf16.gmra.mrb[200].mxu1 %v8368_v48  ;;  %v9078_v48 = vld [vmem:[#allocation35_spill] sm:$0xff] }
 0x44a   : > { %5249 = vst.msk [vmem:[%s300_s8] sm:$0x1] %vm5248_vm9, %v5246_v45  ;;  %5680 = vmatprep.mubr.msk.bf16.mxu1 %vm305_vm2, %v8372_v3 }
 0x44b   : > { %4966 = vmatmul.mubr.bf16.gmra.mrb[232].mxu0 %v8311_v54  ;;  %v4498_v13 = vpop.f32.mrb[128].mxu0 }
 0x44c   : > { %v4500_v63 = vpop.f32.mrb[129].mxu0 }
 0x44d   : > { %v4501_v16 = vpop.f32.mrb[130].mxu0 }
 0x44e   : > { %v4503_v43 = vpop.f32.mrb[131].mxu0 }
 0x451   : > { %4998 = vmatmul.mubr.bf16.gmra.mrb[204].mxu1 %v8380_v51 }
 0x452   : > { %5681 = vmatprep.mubr.msk.bf16.mxu1 %vm305_vm2, %v9076_v30 }
 0x453   : > { %v4506_v35 = vpop.f32.mrb[132].mxu0 }
 0x454   : > { %v4508_v41 = vpop.f32.mrb[133].mxu0 }
 0x455   : > { %v4509_v54 = vpop.f32.mrb[134].mxu0 }
 0x456   : > { %v4511_v6 = vpop.f32.mrb[135].mxu0 }
 0x459   : > { %5006 = vmatmul.mubr.bf16.gmra.mrb[208].mxu1 %v4831_v47 }
 0x45c   : > { %v4514_v62 = vpop.f32.mrb[136].mxu0 }
 0x45d   : > { %v4516_v27 = vpop.f32.mrb[137].mxu0 }
 0x45e   : > { %v4517_v44 = vpop.f32.mrb[138].mxu0 }
 0x45f   : > { %v4519_v38 = vpop.f32.mrb[139].mxu0 }
 0x464   : > { %v4522_v39 = vpop.f32.mrb[140].mxu0 }
 0x465   : > { %v4524_v50 = vpop.f32.mrb[141].mxu0 }
 0x466   : > { %v4525_v28 = vpop.f32.mrb[142].mxu0 }
 0x467   : > { %v4527_v42 = vpop.f32.mrb[143].mxu0 }
 0x46c   : > { %v8462_v31 = vpop.f32.mrb[144].mxu0 }
 0x46d   : > { %v4532_v11 = vpop.f32.mrb[145].mxu0 }
 0x46e   : > { %v8464_v26 = vpop.f32.mrb[146].mxu0 }
 0x46f   : > { %v4535_v14 = vpop.f32.mrb[147].mxu0 }
 0x474   : > { %v8466_v5 = vpop.f32.mrb[148].mxu0 }
 0x475   : > { %v4540_v22 = vpop.f32.mrb[149].mxu0 }
 0x476   : > { %v8468_v59 = vpop.f32.mrb[150].mxu0 }
 0x477   : > { %v4543_v56 = vpop.f32.mrb[151].mxu0 }
 0x47c   : > { %v8470_v25 = vpop.f32.mrb[152].mxu0 }
 0x47d   : > { %v4548_v8 = vpop.f32.mrb[153].mxu0 }
 0x47e   : > { %v8472_v49 = vpop.f32.mrb[154].mxu0 }
 0x47f   : > { %v4551_v55 = vpop.f32.mrb[155].mxu0 }
 0x482   : > { %v2785_v29 = vpop.f32.mrb[124].mxu1 }
 0x483   : > { %v8475_v23 = vadd.f32 %v2785_v29, %v9077_v9  ;;  %v2787_v60 = vpop.f32.mrb[125].mxu1 }
 0x484   : > { %v2788_v40 = vpop.f32.mrb[126].mxu1  ;;  %v8480_v0 = vpop.f32.mrb[156].mxu0 }
 0x485   : > { %v8478_v3 = vadd.f32 %v2788_v40, %v9078_v48  ;;  %v2790_v58 = vpop.f32.mrb[127].mxu1  ;;  %v4556_v51 = vpop.f32.mrb[157].mxu0 }
 0x486   : > { %v8482_v61 = vpop.f32.mrb[158].mxu0 }
 0x487   : > { %v4559_v34 = vpop.f32.mrb[159].mxu0 }
 0x48c   : > { %v4662_v7 = vpop.f32.mrb[128].mxu1 }
 0x48d   : > { %v8484_v46 = vadd.f32 %v4662_v7, %v4498_v13  ;;  %v4664_v24 = vpop.f32.mrb[129].mxu1 }
 0x48e   : > { %v4665_v37 = vpop.f32.mrb[130].mxu1  ;;  %v8488_v19 = vpop.f32.mrb[160].mxu0 }
 0x48f   : > { %v8486_v17 = vadd.f32 %v4665_v37, %v4501_v16  ;;  %v4667_v12 = vpop.f32.mrb[131].mxu1  ;;  %v4564_v33 = vpop.f32.mrb[161].mxu0 }
 0x490   : > { %v8490_v36 = vpop.f32.mrb[162].mxu0 }
 0x491   : > { %v4567_v18 = vpop.f32.mrb[163].mxu0 }
 0x494   : > { %v4670_v52 = vpop.f32.mrb[132].mxu1 }
 0x495   : > { %v8492_v45 = vadd.f32 %v4670_v52, %v4506_v35  ;;  %v4672_v20 = vpop.f32.mrb[133].mxu1 }
 0x496   : > { %v4673_v57 = vpop.f32.mrb[134].mxu1  ;;  %v8496_v13 = vpop.f32.mrb[164].mxu0 }
 0x497   : > { %v8494_v1 = vadd.f32 %v4673_v57, %v4509_v54  ;;  %v4675_v53 = vpop.f32.mrb[135].mxu1  ;;  %v4572_v21 = vpop.f32.mrb[165].mxu0 }
 0x498   : > { %v8498_v32 = vpop.f32.mrb[166].mxu0 }
 0x499   : > { %v4575_v10 = vpop.f32.mrb[167].mxu0 }
 0x49c   : > { %v4678_v4 = vpop.f32.mrb[136].mxu1 }
 0x49d   : > { %v8500_v63 = vadd.f32 %v4678_v4, %v4514_v62  ;;  %v4680_v16 = vpop.f32.mrb[137].mxu1 }
 0x49e   : > { %v4681_v43 = vpop.f32.mrb[138].mxu1  ;;  %v8504_v30 = vpop.f32.mrb[168].mxu0 }
 0x49f   : > { %v8502_v15 = vadd.f32 %v4681_v43, %v4517_v44  ;;  %v4683_v2 = vpop.f32.mrb[139].mxu1  ;;  %v4580_v35 = vpop.f32.mrb[169].mxu0 }
 0x4a0   : > { %v8506_v47 = vpop.f32.mrb[170].mxu0 }
 0x4a1   : > { %v4583_v41 = vpop.f32.mrb[171].mxu0 }
 0x4a4   : > { %v4686_v54 = vpop.f32.mrb[140].mxu1 }
 0x4a5   : > { %v8508_v6 = vadd.f32 %v4686_v54, %v4522_v39  ;;  %v4688_v27 = vpop.f32.mrb[141].mxu1 }
 0x4a6   : > { %v4689_v38 = vpop.f32.mrb[142].mxu1  ;;  %v8512_v42 = vpop.f32.mrb[172].mxu0 }
 0x4a7   : > { %v8510_v50 = vadd.f32 %v4689_v38, %v4525_v28  ;;  %v4691_v62 = vpop.f32.mrb[143].mxu1  ;;  %v4588_v11 = vpop.f32.mrb[173].mxu0 }
 0x4a8   : > { %v8514_v44 = vpop.f32.mrb[174].mxu0  ;;  %v8559_v62 = vld [vmem:[%s8798_s5] ss:$0 sm:$0xff] }
 0x4a9   : > { %v4591_v14 = vpop.f32.mrb[175].mxu0 }
 0x4ac   : > { %v4694_v22 = vpop.f32.mrb[144].mxu1 }
 0x4ad   : > { %v8517_v56 = vadd.f32 %v4694_v22, %v8462_v31  ;;  %v4696_v8 = vpop.f32.mrb[145].mxu1 }
 0x4ae   : > { %v4697_v55 = vpop.f32.mrb[146].mxu1  ;;  %v8522_v9 = vpop.f32.mrb[176].mxu0 }
 0x4af   : > { %v8520_v39 = vadd.f32 %v4697_v55, %v8464_v26  ;;  %v4699_v29 = vpop.f32.mrb[147].mxu1  ;;  %v4596_v28 = vpop.f32.mrb[177].mxu0  ;;  %v9079_v55 = vld [vmem:[#allocation3_spill] sm:$0xff] }
 0x4b0   : > { %v8524_v60 = vpop.f32.mrb[178].mxu0  ;;  %v2830_v29 = vadd.f32 %v8559_v62, %v9079_v55 }
 0x4b1   : > { %v4599_v40 = vpop.f32.mrb[179].mxu0 }
 0x4b4   : > { %v4702_v48 = vpop.f32.mrb[148].mxu1 }
 0x4b5   : > { %v8527_v58 = vadd.f32 %v4702_v48, %v8466_v5  ;;  %v4704_v51 = vpop.f32.mrb[149].mxu1 }
 0x4b6   : > { %v4705_v34 = vpop.f32.mrb[150].mxu1  ;;  %v8532_v24 = vpop.f32.mrb[180].mxu0  ;;  %v9080_v51 = vld [vmem:[#allocation36_spill] sm:$0xff] }
 0x4b7   : > { %v8530_v31 = vadd.f32 %v4705_v34, %v8468_v59  ;;  %v4707_v7 = vpop.f32.mrb[151].mxu1  ;;  %v4604_v26 = vpop.f32.mrb[181].mxu0  ;;  %v2831_v34 = vadd.f32 %v8559_v62, %v9080_v51 }
 0x4b8   : > { %v8534_v37 = vpop.f32.mrb[182].mxu0 }
 0x4b9   : > { %v4607_v12 = vpop.f32.mrb[183].mxu0 }
 0x4ba   : > { %v2862_v12 = vmax.f32 %v2830_v29, 0.0 }
 0x4bc   : > { %v4710_v33 = vpop.f32.mrb[152].mxu1 }
 0x4bd   : > { %v8537_v18 = vadd.f32 %v4710_v33, %v8470_v25  ;;  %v4712_v52 = vpop.f32.mrb[153].mxu1 }
 0x4be   : > { %v4713_v20 = vpop.f32.mrb[154].mxu1  ;;  %v8542_v53 = vpop.f32.mrb[184].mxu0 }
 0x4bf   : > { %v8540_v5 = vadd.f32 %v4713_v20, %v8472_v49  ;;  %v4715_v57 = vpop.f32.mrb[155].mxu1  ;;  %v4612_v59 = vpop.f32.mrb[185].mxu0 }
 0x4c0   : > { %v8544_v21 = vpop.f32.mrb[186].mxu0 }
 0x4c1   : > { %v4615_v10 = vpop.f32.mrb[187].mxu0 }
 0x4c4   : > { %v4718_v4 = vpop.f32.mrb[156].mxu1 }
 0x4c5   : > { %v8547_v16 = vadd.f32 %v4718_v4, %v8480_v0  ;;  %v4720_v43 = vpop.f32.mrb[157].mxu1 }
 0x4c6   : > { %v4721_v2 = vpop.f32.mrb[158].mxu1  ;;  %v8552_v41 = vpop.f32.mrb[188].mxu0  ;;  %v9081_v43 = vld [vmem:[#allocation4_spill] sm:$0xff] }
 0x4c7   : > { %v8550_v25 = vadd.f32 %v4721_v2, %v8482_v61  ;;  %v4723_v35 = vpop.f32.mrb[159].mxu1  ;;  %v4620_v49 = vpop.f32.mrb[189].mxu0  ;;  %v2832_v2 = vadd.f32 %v8559_v62, %v9081_v43 }
 0x4c8   : > { %v8554_v54 = vpop.f32.mrb[190].mxu0 }
 0x4c9   : > { %v4623_v27 = vpop.f32.mrb[191].mxu0 }
 0x4cc   : > { %v4726_v38 = vpop.f32.mrb[160].mxu1 }
 0x4cd   : > { %v8562_v0 = vadd.f32 %v4726_v38, %v8488_v19  ;;  %v4728_v11 = vpop.f32.mrb[161].mxu1 }
 0x4ce   : > { %v4729_v14 = vpop.f32.mrb[162].mxu1  ;;  %v4887_v8 = vpop.f32.mrb[192].mxu0 }
 0x4cf   : > { %v8565_v61 = vadd.f32 %v4729_v14, %v8490_v36  ;;  %v4731_v22 = vpop.f32.mrb[163].mxu1  ;;  %v5014_v28 = vadd.f32 %v4887_v8, %v8484_v46  ;;  %v4889_v40 = vpop.f32.mrb[193].mxu0  ;;  %v2863_v46 = vmax.f32 %v2831_v34, 0.0 }
 0x4d0   : > { %v4890_v48 = vpop.f32.mrb[194].mxu0  ;;  %v9082_v22 = vld [vmem:[#allocation5_spill] sm:$0xff] }
 0x4d1   : > { %v5046_v19 = vadd.f32 %v8559_v62, %v5014_v28  ;;  %v5015_v7 = vadd.f32 %v4890_v48, %v8486_v17  ;;  %v4892_v26 = vpop.f32.mrb[195].mxu0  ;;  %v2833_v8 = vadd.f32 %v8559_v62, %v9082_v22  ;;  %v2864_v48 = vmax.f32 %v2832_v2, 0.0 }
 0x4d3   : > { %v5078_v33 = vmax.f32 %v5046_v19, 0.0  ;;  %v5047_v52 = vadd.f32 %v8559_v62, %v5015_v7 }
 0x4d4   : > { %v4734_v36 = vpop.f32.mrb[164].mxu1 }
 0x4d5   : > { %v8576_v20 = vadd.f32 %v4734_v36, %v8496_v13  ;;  %v4736_v57 = vpop.f32.mrb[165].mxu1  ;;  %v5250_v10 = vsub.f32 %v2862_v12, %v5078_v33  ;;  %v5079_v4 = vmax.f32 %v5047_v52, 0.0  ;;  %v2865_v36 = vmax.f32 %v2833_v8, 0.0 }
 0x4d6   : > { %v4737_v59 = vpop.f32.mrb[166].mxu1  ;;  %v4895_v49 = vpop.f32.mrb[196].mxu0 }
 0x4d7   : > { %v8581_v35 = vadd.f32 %v4737_v59, %v8498_v32  ;;  %v4739_v17 = vpop.f32.mrb[167].mxu1  ;;  %v5282_v27 = vmul.f32 %v5250_v10, %v5250_v10  ;;  %v5251_v38 = vsub.f32 %v2863_v46, %v5079_v4  ;;  %v5016_v11 = vadd.f32 %v4895_v49, %v8492_v45  ;;  %v4897_v14 = vpop.f32.mrb[197].mxu0  ;;  %v9083_v10 = vld [vmem:[#allocation6_spill] sm:$0xff]  ;;  %v9084_v49 = vld [vmem:[#allocation7_spill] sm:$0xff] }
 0x4d8   : > { %v4898_v13 = vpop.f32.mrb[198].mxu0  ;;  %v2834_v4 = vadd.f32 %v8559_v62, %v9083_v10  ;;  %v9086_v10 = vld [vmem:[#allocation13_spill] sm:$0xff] }
 0x4d9   : > { %v5283_v55 = vmul.f32 %v5251_v38, %v5251_v38  ;;  %v5048_v29 = vadd.f32 %v8559_v62, %v5016_v11  ;;  %v5017_v28 = vadd.f32 %v4898_v13, %v8494_v1  ;;  %v4900_v40 = vpop.f32.mrb[199].mxu0  ;;  %v5314_v51 = vsel %vm305_vm2, %v5282_v27, 0.0 }
 0x4da   : > { %v2835_v27 = vadd.f32 %v8559_v62, %v9084_v49 }
 0x4db   : > { %v5315_v34 = vsel %vm305_vm2, %v5283_v55, 0.0  ;;  %v5080_v19 = vmax.f32 %v5048_v29, 0.0  ;;  %v5049_v45 = vadd.f32 %v8559_v62, %v5017_v28  ;;  %v2866_v55 = vmax.f32 %v2834_v4, 0.0 }
 0x4dc   : > { %v4742_v32 = vpop.f32.mrb[168].mxu1  ;;  %v5316_v12 = vadd.f32 %v5315_v34, %v5314_v51  ;;  %v2867_v34 = vmax.f32 %v2835_v27, 0.0  ;;  %v2837_v4 = vadd.f32 %v8559_v62, %v9086_v10 }
 0x4dd   : > { %v8592_v7 = vadd.f32 %v4742_v32, %v8504_v30  ;;  %v4744_v26 = vpop.f32.mrb[169].mxu1  ;;  %v5252_v52 = vsub.f32 %v2864_v48, %v5080_v19  ;;  %v5081_v57 = vmax.f32 %v5049_v45, 0.0 }
 0x4de   : > { %v4745_v33 = vpop.f32.mrb[170].mxu1  ;;  %v4903_v59 = vpop.f32.mrb[200].mxu0 }
 0x4df   : > { %v8595_v1 = vadd.f32 %v4745_v33, %v8506_v47  ;;  %v4747_v46 = vpop.f32.mrb[171].mxu1  ;;  %v5284_v43 = vmul.f32 %v5252_v52, %v5252_v52  ;;  %v5253_v2 = vsub.f32 %v2865_v36, %v5081_v57  ;;  %v5018_v17 = vadd.f32 %v4903_v59, %v8500_v63  ;;  %v4905_v30 = vpop.f32.mrb[201].mxu0  ;;  %v9085_v33 = vld [vmem:[#allocation10_spill] sm:$0xff] }
 0x4e0   : > { %v4906_v38 = vpop.f32.mrb[202].mxu0  ;;  %v2836_v52 = vadd.f32 %v8559_v62, %v9085_v33 }
 0x4e1   : > { %v5317_v11 = vsel %vm305_vm2, %v5284_v43, 0.0  ;;  %v5285_v14 = vmul.f32 %v5253_v2, %v5253_v2  ;;  %v5050_v47 = vadd.f32 %v8559_v62, %v5018_v17  ;;  %v5019_v13 = vadd.f32 %v4906_v38, %v8502_v15  ;;  %v4908_v22 = vpop.f32.mrb[203].mxu0 }
 0x4e2   : > { %v5318_v8 = vadd.f32 %v5317_v11, %v5316_v12  ;;  %v2868_v38 = vmax.f32 %v2836_v52, 0.0 }
 0x4e3   : > { %v5319_v28 = vsel %vm305_vm2, %v5285_v14, 0.0  ;;  %v5082_v40 = vmax.f32 %v5050_v47, 0.0  ;;  %v5051_v63 = vadd.f32 %v8559_v62, %v5019_v13 }
 0x4e4   : > { %v4750_v29 = vpop.f32.mrb[172].mxu1  ;;  %v5320_v51 = vadd.f32 %v5319_v28, %v5318_v8 }
 0x4e5   : > { %v8608_v48 = vadd.f32 %v4750_v29, %v8512_v42  ;;  %v4752_v32 = vpop.f32.mrb[173].mxu1  ;;  %v5254_v45 = vsub.f32 %v2866_v55, %v5082_v40  ;;  %v5083_v26 = vmax.f32 %v5051_v63, 0.0  ;;  %v2869_v55 = vmax.f32 %v2837_v4, 0.0 }
 0x4e6   : > { %v4753_v19 = vpop.f32.mrb[174].mxu1  ;;  %v4911_v36 = vpop.f32.mrb[204].mxu0 }
 0x4e7   : > { %v8611_v15 = vadd.f32 %v4753_v19, %v8514_v44  ;;  %v4755_v12 = vpop.f32.mrb[175].mxu1  ;;  %v5286_v57 = vmul.f32 %v5254_v45, %v5254_v45  ;;  %v5255_v46 = vsub.f32 %v2867_v34, %v5083_v26  ;;  %v5020_v59 = vadd.f32 %v4911_v36, %v8508_v6  ;;  %v4913_v42 = vpop.f32.mrb[205].mxu0 }
 0x4e8   : > { %v4914_v43 = vpop.f32.mrb[206].mxu0  ;;  %v9088_v12 = vld [vmem:[#allocation19_spill] sm:$0xff] }
 0x4e9   : > { %v5321_v2 = vsel %vm305_vm2, %v5286_v57, 0.0  ;;  %v5287_v17 = vmul.f32 %v5255_v46, %v5255_v46  ;;  %v5052_v44 = vadd.f32 %v8559_v62, %v5020_v59  ;;  %v5021_v30 = vadd.f32 %v4914_v43, %v8510_v50  ;;  %v4916_v49 = vpop.f32.mrb[207].mxu0 }
 0x4ea   : > { %v5322_v27 = vadd.f32 %v5321_v2, %v5320_v51  ;;  %v9087_v51 = vld [vmem:[#allocation16_spill] sm:$0xff]  ;;  %v2839_v36 = vadd.f32 %v8559_v62, %v9088_v12 }
 0x4eb   : > { %v5323_v14 = vsel %vm305_vm2, %v5287_v17, 0.0  ;;  %v5084_v47 = vmax.f32 %v5052_v44, 0.0  ;;  %v5053_v6 = vadd.f32 %v8559_v62, %v5021_v30  ;;  %v2838_v34 = vadd.f32 %v8559_v62, %v9087_v51 }
 0x4ec   : > { %v4758_v11 = vpop.f32.mrb[176].mxu1  ;;  %v5324_v8 = vadd.f32 %v5323_v14, %v5322_v27  ;;  %v2871_v49 = vmax.f32 %v2839_v36, 0.0 }
 0x4ed   : > { %v8624_v13 = vadd.f32 %v4758_v11, %v8522_v9  ;;  %v4760_v22 = vpop.f32.mrb[177].mxu1  ;;  %v5256_v28 = vsub.f32 %v2868_v38, %v5084_v47  ;;  %v5085_v40 = vmax.f32 %v5053_v6, 0.0  ;;  %v2870_v10 = vmax.f32 %v2838_v34, 0.0  ;;  %v9089_v6 = vld [vmem:[#allocation22_spill] sm:$0xff] }
 0x4ee   : > { %v4761_v29 = vpop.f32.mrb[178].mxu1  ;;  %v4919_v32 = vpop.f32.mrb[208].mxu0  ;;  %v2840_v22 = vadd.f32 %v8559_v62, %v9089_v6 }
 0x4ef   : > { %v8627_v50 = vadd.f32 %v4761_v29, %v8524_v60  ;;  %v4763_v63 = vpop.f32.mrb[179].mxu1  ;;  %v5288_v19 = vmul.f32 %v5256_v28, %v5256_v28  ;;  %v5257_v45 = vsub.f32 %v2869_v55, %v5085_v40  ;;  %v5022_v26 = vadd.f32 %v4919_v32, %v8517_v56  ;;  %v4921_v9 = vpop.f32.mrb[209].mxu0  ;;  %v9090_v28 = vld [vmem:[#allocation23_spill] sm:$0xff] }
 0x4f0   : > { %v4922_v33 = vpop.f32.mrb[210].mxu0  ;;  %v2841_v40 = vadd.f32 %v8559_v62, %v9090_v28 }
 0x4f1   : > { %v5325_v52 = vsel %vm305_vm2, %v5288_v19, 0.0  ;;  %v5289_v57 = vmul.f32 %v5257_v45, %v5257_v45  ;;  %v5054_v60 = vadd.f32 %v8559_v62, %v5022_v26  ;;  %v5023_v46 = vadd.f32 %v4922_v33, %v8520_v39  ;;  %v4924_v59 = vpop.f32.mrb[211].mxu0 }
 0x4f2   : > { %v5326_v42 = vadd.f32 %v5325_v52, %v5324_v8  ;;  %v2872_v26 = vmax.f32 %v2840_v22, 0.0 }
 0x4f3   : > { %v5327_v43 = vsel %vm305_vm2, %v5289_v57, 0.0  ;;  %v5086_v2 = vmax.f32 %v5054_v60, 0.0  ;;  %v5055_v56 = vadd.f32 %v8559_v62, %v5023_v46  ;;  %v2873_v60 = vmax.f32 %v2841_v40, 0.0 }
 0x4f4   : > { %v4766_v4 = vpop.f32.mrb[180].mxu1  ;;  %v5328_v30 = vadd.f32 %v5327_v43, %v5326_v42  ;;  %v9091_v43 = vld [vmem:[#allocation24_spill] sm:$0xff] }
 0x4f5   : > { %v8640_v17 = vadd.f32 %v4766_v4, %v8532_v24  ;;  %v4768_v44 = vpop.f32.mrb[181].mxu1  ;;  %v5258_v38 = vsub.f32 %v2870_v10, %v5086_v2  ;;  %v5087_v11 = vmax.f32 %v5055_v56, 0.0  ;;  %v2842_v2 = vadd.f32 %v8559_v62, %v9091_v43 }
 0x4f6   : > { %v4769_v27 = vpop.f32.mrb[182].mxu1  ;;  %v4927_v47 = vpop.f32.mrb[212].mxu0 }
 0x4f7   : > { %v8643_v39 = vadd.f32 %v4769_v27, %v8534_v37  ;;  %v4771_v14 = vpop.f32.mrb[183].mxu1  ;;  %v5290_v8 = vmul.f32 %v5258_v38, %v5258_v38  ;;  %v5259_v55 = vsub.f32 %v2871_v49, %v5087_v11  ;;  %v5024_v29 = vadd.f32 %v4927_v47, %v8527_v58  ;;  %v4929_v24 = vpop.f32.mrb[213].mxu0  ;;  %v9092_v49 = vld [vmem:[#allocation26_spill] sm:$0xff] }
 0x4f8   : > { %v4930_v63 = vpop.f32.mrb[214].mxu0  ;;  %v2843_v27 = vadd.f32 %v8559_v62, %v9092_v49 }
 0x4f9   : > { %v5329_v32 = vsel %vm305_vm2, %v5290_v8, 0.0  ;;  %v5291_v51 = vmul.f32 %v5259_v55, %v5259_v55  ;;  %v5056_v37 = vadd.f32 %v8559_v62, %v5024_v29  ;;  %v5025_v34 = vadd.f32 %v4930_v63, %v8530_v31  ;;  %v4932_v19 = vpop.f32.mrb[215].mxu0 }
 0x4fa   : > { %v5330_v45 = vadd.f32 %v5329_v32, %v5328_v30  ;;  %v2874_v8 = vmax.f32 %v2842_v2, 0.0  ;;  %v2875_v32 = vmax.f32 %v2843_v27, 0.0 }
 0x4fb   : > { %v5331_v12 = vsel %vm305_vm2, %v5291_v51, 0.0  ;;  %v5088_v36 = vmax.f32 %v5056_v37, 0.0  ;;  %v5057_v58 = vadd.f32 %v8559_v62, %v5025_v34 }
 0x4fc   : > { %v4774_v9 = vpop.f32.mrb[184].mxu1  ;;  %v5332_v57 = vadd.f32 %v5331_v12, %v5330_v45 }
 0x4fd   : > { %v8656_v33 = vadd.f32 %v4774_v9, %v8542_v53  ;;  %v4776_v52 = vpop.f32.mrb[185].mxu1  ;;  %v5260_v59 = vsub.f32 %v2872_v26, %v5088_v36  ;;  %v5089_v42 = vmax.f32 %v5057_v58, 0.0  ;;  %v9093_v26 = vld [vmem:[#allocation27_spill] sm:$0xff] }
 0x4fe   : > { %v4777_v46 = vpop.f32.mrb[186].mxu1  ;;  %v4935_v4 = vpop.f32.mrb[216].mxu0  ;;  %v2844_v9 = vadd.f32 %v8559_v62, %v9093_v26  ;;  %v9094_v52 = vld [vmem:[#allocation29_spill] sm:$0xff] }
 0x4ff   : > { %v8659_v31 = vadd.f32 %v4777_v46, %v8544_v21  ;;  %v4779_v10 = vpop.f32.mrb[187].mxu1  ;;  %v5292_v56 = vmul.f32 %v5260_v59, %v5260_v59  ;;  %v5261_v44 = vsub.f32 %v2873_v60, %v5089_v42  ;;  %v5026_v30 = vadd.f32 %v4935_v4, %v8537_v18  ;;  %v4937_v53 = vpop.f32.mrb[217].mxu0 }
 0x500   : > { %v4938_v38 = vpop.f32.mrb[218].mxu0  ;;  %v2876_v43 = vmax.f32 %v2844_v9, 0.0 }
 0x501   : > { %v5333_v11 = vsel %vm305_vm2, %v5292_v56, 0.0  ;;  %v5293_v14 = vmul.f32 %v5261_v44, %v5261_v44  ;;  %v5058_v21 = vadd.f32 %v8559_v62, %v5026_v30  ;;  %v5027_v47 = vadd.f32 %v4938_v38, %v8540_v5  ;;  %v4940_v6 = vpop.f32.mrb[219].mxu0  ;;  %v9095_v30 = vld [vmem:[#allocation28_spill] sm:$0xff] }
 0x502   : > { %v5334_v22 = vadd.f32 %v5333_v11, %v5332_v57  ;;  %v2845_v57 = vadd.f32 %v8559_v62, %v9094_v52  ;;  %v2852_v53 = vadd.f32 %v8559_v62, %v9095_v30 }
 0x503   : > { %v5335_v29 = vsel %vm305_vm2, %v5293_v14, 0.0  ;;  %v5090_v24 = vmax.f32 %v5058_v21, 0.0  ;;  %v5059_v18 = vadd.f32 %v8559_v62, %v5027_v47  ;;  %v9096_v47 = vld [vmem:[#allocation30_spill] sm:$0xff] }
 0x504   : > { %v4782_v55 = vpop.f32.mrb[188].mxu1  ;;  %v5336_v63 = vadd.f32 %v5335_v29, %v5334_v22  ;;  %v2877_v11 = vmax.f32 %v2845_v57, 0.0  ;;  %v2853_v6 = vadd.f32 %v8559_v62, %v9096_v47 }
 0x505   : > { %v8672_v28 = vadd.f32 %v4782_v55, %v8552_v41  ;;  %v4784_v40 = vpop.f32.mrb[189].mxu1  ;;  %v5262_v37 = vsub.f32 %v2874_v8, %v5090_v24  ;;  %v5091_v34 = vmax.f32 %v5059_v18, 0.0  ;;  %v9097_v24 = vld [vmem:[#allocation38_spill] sm:$0xff] }
 0x506   : > { %v4785_v51 = vpop.f32.mrb[190].mxu1  ;;  %v4943_v45 = vpop.f32.mrb[220].mxu0  ;;  %v2846_v18 = vadd.f32 %v8559_v62, %v9097_v24 }
 0x507   : > { %v8675_v5 = vadd.f32 %v4785_v51, %v8554_v54  ;;  %v4787_v19 = vpop.f32.mrb[191].mxu1  ;;  %v5294_v12 = vmul.f32 %v5262_v37, %v5262_v37  ;;  %v5263_v36 = vsub.f32 %v2875_v32, %v5091_v34  ;;  %v5028_v58 = vadd.f32 %v4943_v45, %v8547_v16  ;;  %v4945_v41 = vpop.f32.mrb[221].mxu0  ;;  %v9098_v51 = vld [vmem:[#allocation39_spill] sm:$0xff] }
 0x508   : > { %v4946_v60 = vpop.f32.mrb[222].mxu0  ;;  %v2847_v37 = vadd.f32 %v8559_v62, %v9098_v51  ;;  %v2884_v34 = vmax.f32 %v2852_v53, 0.0  ;;  %v2885_v41 = vmax.f32 %v2853_v6, 0.0 }
 0x509   : > { %v5337_v46 = vsel %vm305_vm2, %v5294_v12, 0.0  ;;  %v5295_v59 = vmul.f32 %v5263_v36, %v5263_v36  ;;  %v5060_v54 = vadd.f32 %v8559_v62, %v5028_v58  ;;  %v5029_v42 = vadd.f32 %v4946_v60, %v8550_v25  ;;  %v4948_v10 = vpop.f32.mrb[223].mxu0 }
 0x50a   : > { %v5338_v4 = vadd.f32 %v5337_v46, %v5336_v63  ;;  %v2878_v60 = vmax.f32 %v2846_v18, 0.0  ;;  %v9099_v10 = vld [vmem:[#allocation43_spill] sm:$0xff] }
 0x50b   : > { %v5339_v56 = vsel %vm305_vm2, %v5295_v59, 0.0  ;;  %v5092_v44 = vmax.f32 %v5060_v54, 0.0  ;;  %v5061_v16 = vadd.f32 %v8559_v62, %v5029_v42 }
 0x50c   : > { %v4975_v2 = vpop.f32.mrb[192].mxu1  ;;  %v5340_v38 = vadd.f32 %v5339_v56, %v5338_v4  ;;  %v2854_v4 = vadd.f32 %v8559_v62, %v9099_v10  ;;  %v9104_v10 = vld [vmem:[#allocation46_spill] sm:$0xff] }
 0x50d   : > { %v5036_v49 = vadd.f32 %v4975_v2, %v8608_v48  ;;  %v4977_v27 = vpop.f32.mrb[193].mxu1  ;;  %v5264_v21 = vsub.f32 %v2876_v43, %v5092_v44  ;;  %v5093_v25 = vmax.f32 %v5061_v16, 0.0  ;;  %v2879_v44 = vmax.f32 %v2847_v37, 0.0 }
 0x50e   : > { %v4978_v14 = vpop.f32.mrb[194].mxu1  ;;  %v4951_v29 = vpop.f32.mrb[224].mxu0  ;;  %v2886_v24 = vmax.f32 %v2854_v4, 0.0  ;;  %v2857_v4 = vadd.f32 %v8559_v62, %v9104_v10 }
 0x50f   : > { %v5068_v22 = vadd.f32 %v8559_v62, %v5036_v49  ;;  %v5037_v8 = vadd.f32 %v4978_v14, %v8611_v15  ;;  %v4980_v55 = vpop.f32.mrb[195].mxu1  ;;  %v5296_v40 = vmul.f32 %v5264_v21, %v5264_v21  ;;  %v5265_v48 = vsub.f32 %v2877_v11, %v5093_v25  ;;  %v4953_v32 = vpop.f32.mrb[225].mxu0  ;;  %v9100_v49 = vld [vmem:[#allocation44_spill] sm:$0xff] }
 0x510   : > { %v5030_v63 = vadd.f32 %v4951_v29, %v8562_v0  ;;  %v4954_v26 = vpop.f32.mrb[226].mxu0  ;;  %v2855_v27 = vadd.f32 %v8559_v62, %v9100_v49  ;;  %v9101_v25 = vld [vmem:[#allocation40_spill] sm:$0xff]  ;;  %v9102_v55 = vld [vmem:[#allocation41_spill] sm:$0xff] }
 0x511   : > { %v5100_v19 = vmax.f32 %v5068_v22, 0.0  ;;  %v5069_v45 = vadd.f32 %v8559_v62, %v5037_v8  ;;  %v5341_v15 = vsel %vm305_vm2, %v5296_v40, 0.0  ;;  %v5297_v9 = vmul.f32 %v5265_v48, %v5265_v48  ;;  %v4956_v58 = vpop.f32.mrb[227].mxu0 }
 0x512   : > { %v5062_v12 = vadd.f32 %v8559_v62, %v5030_v63  ;;  %v5031_v36 = vadd.f32 %v4954_v26, %v8565_v61  ;;  %v5342_v57 = vadd.f32 %v5341_v15, %v5340_v38  ;;  %v2848_v47 = vadd.f32 %v8559_v62, %v9101_v25  ;;  %v9103_v58 = vld [vmem:[#allocation45_spill] sm:$0xff] }
 0x513   : > { %v8703_v52 = vsub.f32 %v2884_v34, %v5100_v19  ;;  %v5101_v0 = vmax.f32 %v5069_v45, 0.0  ;;  %v5343_v59 = vsel %vm305_vm2, %v5297_v9, 0.0  ;;  %v2849_v29 = vadd.f32 %v8559_v62, %v9102_v55 }
 0x514   : > { %v4983_v46 = vpop.f32.mrb[196].mxu1  ;;  %v5094_v54 = vmax.f32 %v5062_v12, 0.0  ;;  %v5063_v42 = vadd.f32 %v8559_v62, %v5031_v36  ;;  %v5344_v56 = vadd.f32 %v5343_v59, %v5342_v57  ;;  %v2887_v34 = vmax.f32 %v2855_v27, 0.0 }
 0x515   : > { %v8709_v43 = vsub.f32 %v2885_v41, %v5101_v0  ;;  %v5038_v61 = vadd.f32 %v4983_v46, %v8624_v13  ;;  %v4985_v2 = vpop.f32.mrb[197].mxu1  ;;  %v2880_v26 = vmax.f32 %v2848_v47, 0.0  ;;  %v2856_v41 = vadd.f32 %v8559_v62, %v9103_v58 }
 0x516   : > { %v4986_v16 = vpop.f32.mrb[198].mxu1  ;;  %v5266_v30 = vsub.f32 %v2878_v60, %v5094_v54  ;;  %v5095_v53 = vmax.f32 %v5063_v42, 0.0  ;;  %v4959_v21 = vpop.f32.mrb[228].mxu0  ;;  %v2881_v46 = vmax.f32 %v2849_v29, 0.0  ;;  %v2889_v55 = vmax.f32 %v2857_v4, 0.0 }
 0x517   : > { %v5070_v38 = vadd.f32 %v8559_v62, %v5038_v61  ;;  %v5039_v11 = vadd.f32 %v4986_v16, %v8627_v50  ;;  %v4988_v14 = vpop.f32.mrb[199].mxu1  ;;  %v5032_v22 = vadd.f32 %v4959_v21, %v8576_v20  ;;  %v4961_v8 = vpop.f32.mrb[229].mxu0  ;;  %v9105_v16 = vld [vmem:[#allocation42_spill] sm:$0xff]  ;;  %v5304_v4 = vmul.f32 %v8703_v52, %v8703_v52 }
 0x518   : > { %v5298_v6 = vmul.f32 %v5266_v30, %v5266_v30  ;;  %v5267_v13 = vsub.f32 %v2879_v44, %v5095_v53  ;;  %v4962_v48 = vpop.f32.mrb[230].mxu0  ;;  %v2850_v30 = vadd.f32 %v8559_v62, %v9105_v16  ;;  %v2888_v14 = vmax.f32 %v2856_v41, 0.0 }
 0x519   : > { %v5102_v18 = vmax.f32 %v5070_v38, 0.0  ;;  %v5071_v40 = vadd.f32 %v8559_v62, %v5039_v11  ;;  %v5064_v32 = vadd.f32 %v8559_v62, %v5032_v22  ;;  %v5033_v51 = vadd.f32 %v4962_v48, %v8581_v35  ;;  %v4964_v37 = vpop.f32.mrb[231].mxu0  ;;  %v9106_v38 = vld [vmem:[#allocation31_spill] sm:$0xff] }
 0x51a   : > { %v5345_v50 = vsel %vm305_vm2, %v5298_v6, 0.0  ;;  %v5299_v63 = vmul.f32 %v5267_v13, %v5267_v13  ;;  %v2851_v11 = vadd.f32 %v8559_v62, %v9106_v38  ;;  %v2861_v52 = vadd.f32 %v8559_v62, %v8478_v3 }
 0x51b   : > { %v8725_v19 = vsub.f32 %v2886_v24, %v5102_v18  ;;  %v5103_v20 = vmax.f32 %v5071_v40, 0.0  ;;  %v5346_v45 = vadd.f32 %v5345_v50, %v5344_v56  ;;  %v5096_v12 = vmax.f32 %v5064_v32, 0.0  ;;  %v9107_v32 = vld [vmem:[#allocation32_spill] sm:$0xff] }
 0x51c   : > { %v4991_v15 = vpop.f32.mrb[200].mxu1  ;;  %v5347_v9 = vsel %vm305_vm2, %v5299_v63, 0.0  ;;  %v5065_v36 = vadd.f32 %v8559_v62, %v5033_v51  ;;  %v2882_v18 = vmax.f32 %v2850_v30, 0.0  ;;  %v2858_v51 = vadd.f32 %v8559_v62, %v9107_v32 }
 0x51d   : > { %v8731_v0 = vsub.f32 %v2887_v34, %v5103_v20  ;;  %v5040_v35 = vadd.f32 %v4991_v15, %v8640_v17  ;;  %v4993_v57 = vpop.f32.mrb[201].mxu1  ;;  %v5348_v60 = vadd.f32 %v5347_v9, %v5346_v45  ;;  %v5268_v54 = vsub.f32 %v2880_v26, %v5096_v12  ;;  %v9108_v26 = vld [vmem:[#allocation33_spill] sm:$0xff] }
 0x51e   : > { %v4994_v59 = vpop.f32.mrb[202].mxu1  ;;  %v5097_v42 = vmax.f32 %v5065_v36, 0.0  ;;  %v4967_v44 = vpop.f32.mrb[232].mxu0  ;;  %v2883_v45 = vmax.f32 %v2851_v11, 0.0  ;;  %v2859_v15 = vadd.f32 %v8559_v62, %v9108_v26  ;;  %v5305_v30 = vmul.f32 %v8709_v43, %v8709_v43 }
 0x51f   : > { %v5072_v61 = vadd.f32 %v8559_v62, %v5040_v35  ;;  %v5041_v2 = vadd.f32 %v4994_v59, %v8643_v39  ;;  %v4996_v56 = vpop.f32.mrb[203].mxu1  ;;  %v5300_v53 = vmul.f32 %v5268_v54, %v5268_v54  ;;  %v5034_v49 = vadd.f32 %v4967_v44, %v8592_v7  ;;  %v4969_v27 = vpop.f32.mrb[233].mxu0 }
 0x520   : > { %v5269_v17 = vsub.f32 %v2881_v46, %v5097_v42  ;;  %v4970_v47 = vpop.f32.mrb[234].mxu0  ;;  %v2890_v46 = vmax.f32 %v2858_v51, 0.0  ;;  %v2891_v54 = vmax.f32 %v2859_v15, 0.0  ;;  %v5357_v11 = vsel %vm305_vm2, %v5304_v4, 0.0 }
 0x521   : > { %v5104_v21 = vmax.f32 %v5072_v61, 0.0  ;;  %v5073_v25 = vadd.f32 %v8559_v62, %v5041_v2  ;;  %v5349_v39 = vsel %vm305_vm2, %v5300_v53, 0.0  ;;  %v5066_v13 = vadd.f32 %v8559_v62, %v5034_v49  ;;  %v4972_v8 = vpop.f32.mrb[235].mxu0 }
 0x522   : > { %v5301_v6 = vmul.f32 %v5269_v17, %v5269_v17  ;;  %v5035_v22 = vadd.f32 %v4970_v47, %v8595_v1  ;;  %v5350_v24 = vadd.f32 %v5349_v39, %v5348_v60  ;;  %v5307_v39 = vmul.f32 %v8731_v0, %v8731_v0 }
 0x523   : > { %v5276_v29 = vsub.f32 %v2888_v14, %v5104_v21  ;;  %v5105_v7 = vmax.f32 %v5073_v25, 0.0  ;;  %v5098_v50 = vmax.f32 %v5066_v13, 0.0  ;;  %v2893_v13 = vmax.f32 %v2861_v52, 0.0 }
 0x524   : > { %v4999_v40 = vpop.f32.mrb[204].mxu1  ;;  %v5351_v48 = vsel %vm305_vm2, %v5301_v6, 0.0  ;;  %v5067_v63 = vadd.f32 %v8559_v62, %v5035_v22 }
 0x525   : > { %v5277_v37 = vsub.f32 %v2889_v55, %v5105_v7  ;;  %v5042_v34 = vadd.f32 %v4999_v40, %v8656_v33  ;;  %v5001_v20 = vpop.f32.mrb[205].mxu1  ;;  %v5352_v1 = vadd.f32 %v5351_v48, %v5350_v24  ;;  %v5270_v12 = vsub.f32 %v2882_v18, %v5098_v50 }
 0x526   : > { %v5002_v9 = vpop.f32.mrb[206].mxu1  ;;  %v5099_v36 = vmax.f32 %v5067_v63, 0.0 }
 0x527   : > { %v5074_v58 = vadd.f32 %v8559_v62, %v5042_v34  ;;  %v5043_v41 = vadd.f32 %v5002_v9, %v8659_v31  ;;  %v5004_v35 = vpop.f32.mrb[207].mxu1  ;;  %v5302_v57 = vmul.f32 %v5270_v12, %v5270_v12  ;;  %v2860_v31 = vadd.f32 %v8559_v62, %v8475_v23 }
 0x528   : > { %v5271_v60 = vsub.f32 %v2883_v45, %v5099_v36  ;;  %v5306_v23 = vmul.f32 %v8725_v19, %v8725_v19  ;;  %v5308_v19 = vmul.f32 %v5276_v29, %v5276_v29  ;;  %v5309_v18 = vmul.f32 %v5277_v37, %v5277_v37 }
 0x529   : > { %v5106_v59 = vmax.f32 %v5074_v58, 0.0  ;;  %v5075_v33 = vadd.f32 %v8559_v62, %v5043_v41  ;;  %v5353_v42 = vsel %vm305_vm2, %v5302_v57, 0.0  ;;  %v2892_v43 = vmax.f32 %v2860_v31, 0.0 }
 0x52a   : > { %v5303_v10 = vmul.f32 %v5271_v60, %v5271_v60  ;;  %v5354_v56 = vadd.f32 %v5353_v42, %v5352_v1  ;;  %v5361_v8 = vsel %vm305_vm2, %v5306_v23, 0.0  ;;  %v5365_v50 = vsel %vm305_vm2, %v5308_v19, 0.0 }
 0x52b   : > { %v5278_v61 = vsub.f32 %v2890_v46, %v5106_v59  ;;  %v5107_v2 = vmax.f32 %v5075_v33, 0.0  ;;  %v5367_v32 = vsel %vm305_vm2, %v5309_v18, 0.0 }
 0x52c   : > { %v5007_v44 = vpop.f32.mrb[208].mxu1  ;;  %v5355_v16 = vsel %vm305_vm2, %v5303_v10, 0.0 }
 0x52d   : > { %v5279_v53 = vsub.f32 %v2891_v54, %v5107_v2  ;;  %v5044_v17 = vadd.f32 %v5007_v44, %v8672_v28  ;;  %v5009_v49 = vpop.f32.mrb[209].mxu1  ;;  %v5356_v27 = vadd.f32 %v5355_v16, %v5354_v56  ;;  %v5359_v28 = vsel %vm305_vm2, %v5305_v30, 0.0 }
 0x52e   : > { %v5010_v38 = vpop.f32.mrb[210].mxu1  ;;  %v5310_v63 = vmul.f32 %v5278_v61, %v5278_v61 }
 0x52f   : > { %v5076_v14 = vadd.f32 %v8559_v62, %v5044_v17  ;;  %v5045_v21 = vadd.f32 %v5010_v38, %v8675_v5  ;;  %v5012_v25 = vpop.f32.mrb[211].mxu1  ;;  %v5358_v47 = vadd.f32 %v5357_v11, %v5356_v27  ;;  %v5363_v5 = vsel %vm305_vm2, %v5307_v39, 0.0 }
 0x530   : > { %v5369_v34 = vsel %vm305_vm2, %v5310_v63, 0.0 }
 0x531   : > { %v5108_v6 = vmax.f32 %v5076_v14, 0.0  ;;  %v5077_v3 = vadd.f32 %v8559_v62, %v5045_v21  ;;  %v5360_v22 = vadd.f32 %v5359_v28, %v5358_v47  ;;  %v5311_v62 = vmul.f32 %v5279_v53, %v5279_v53 }
 0x533   : > { %v5280_v55 = vsub.f32 %v2892_v43, %v5108_v6  ;;  %v5109_v7 = vmax.f32 %v5077_v3, 0.0  ;;  %v5362_v24 = vadd.f32 %v5361_v8, %v5360_v22  ;;  %v5371_v45 = vsel %vm305_vm2, %v5311_v62, 0.0 }
 0x535   : > { %v5281_v40 = vsub.f32 %v2893_v13, %v5109_v7  ;;  %v5364_v48 = vadd.f32 %v5363_v5, %v5362_v24  ;;  %v5312_v20 = vmul.f32 %v5280_v55, %v5280_v55 }
 0x537   : > { %v5366_v0 = vadd.f32 %v5365_v50, %v5364_v48  ;;  %v5313_v1 = vmul.f32 %v5281_v40, %v5281_v40  ;;  %v5373_v37 = vsel %vm305_vm2, %v5312_v20, 0.0 }
 0x539   : > { %v5368_v51 = vadd.f32 %v5367_v32, %v5366_v0  ;;  %v5375_v9 = vsel %vm305_vm2, %v5313_v1, 0.0 }
 0x53b   : > { %v5370_v29 = vadd.f32 %v5369_v34, %v5368_v51 }
 0x53d   : > { %v5372_v26 = vadd.f32 %v5371_v45, %v5370_v29 }
 0x53f   : > { %v5374_v15 = vadd.f32 %v5373_v37, %v5372_v26 }
 0x541   : > { %v5376_v12 = vadd.f32 %v5375_v9, %v5374_v15 }
 0x543   : > { %5377 = vadd.xlane.f32.xlu1 %v5376_v12 }
 0x5d0   : > { %v5378_v36 = vpop.xlane.xlu1 %5377 }
 0x5d1   : > { %v5379_v58 = vrot.slane %v5378_v36, 4 }
 0x5d3   : > { %v5380_v41 = vadd.f32 %v5379_v58, %v5378_v36 }
 0x5d5   : > { %v5381_v35 = vrot.slane %v5380_v41, 2 }
 0x5d7   : > { %v5382_v57 = vadd.f32 %v5381_v35, %v5380_v41 }
 0x5d9   : > { %v5383_v60 = vrot.slane %v5382_v57, 1 }
 0x5db   : > { %v5384_v46 = vadd.f32 %v5383_v60, %v5382_v57 }
 0x5dd   : > { %5820 = vpush %v5384_v46 }
 0x60e   : > { %s5821_s14 = spop %5820 }
 0x60f   : > { %v5386_v59 = vstv %s5821_s14 }
 0x610   : > { %5388 = vst.msk [vmem:[%s303_s13] sm:$0x1] %vm5248_vm9, %v5386_v59 }
 0x611 PF: > { %s18_s24 = sadd.s32 1, %s5975_s24  }
 0x612   : > { %p15_p4 = scmp.ge.s32.totalorder %s18_s24, 4  }
 0x614   :  { %17 = sbr.rel (!%p15_p4) target bundleno = 1 (0x1), region = 91 }

</bundles_post_ra>
